<compile_context>
chip_gen: v7x
topology: tpu7x:2x2x1
jax: 0.10.0
libtpu: 0.0.40
codegen_flags: <defaults>
</compile_context>

<pallas_src>
import jax
import jax.numpy as jnp
from jax.experimental import pallas as pl
from jax.experimental.pallas import tpu as pltpu

# ---------------- Argument (hyper-parameters) ----------------
DIM = 128          # Argument.initial_dim  (per-head GAT output dim)
HEADS = 2          # Argument.attention_head_num
F = DIM * HEADS    # 256 = GAT hidden width (heads concatenated, lane-dense)
LAYERS = 2         # Argument.number_of_layers
CLIN = 4           # Argument.clinical_num  (age, gender, stage, cancer_type)
N = 64             # nodes per sample (B graphs x N//B nodes each)
B = 2              # graphs per sample
S = 2              # samples batched over the Pallas grid
F_IN = 128         # raw node-feature dim fed to `preprocess`
LEAKY = 0.2        # GATConv negative_slope
LN_EPS = 1e-5      # LayerNorm eps
CAT = (LAYERS + 1) * F   # 768 = width of the pooled-feature slab
NEG_INF = -1e30


def _sample_spec(shape):
    """(1, *shape) block indexed by the sample grid axis."""
    nd = len(shape)
    return pl.BlockSpec((1,) + shape, lambda s: (s,) + (0,) * nd)


def _const_spec(shape):
    """Whole-array block with a constant index_map (weights: no re-DMA per step)."""
    zeros = (0,) * len(shape)
    return pl.BlockSpec(shape, lambda s, _z=zeros: _z)


# ---------------- fused kernel (one sample per grid step) ----------------
def fused_forward_kernel(x_ref, adjb_ref, pool_ref, clin_ref,
                         wpre_ref, bpre_ref,
                         wl_ref, vatt_ref, uatt_ref,
                         gbias_ref, gamma_ref, beta_ref, prelu_ref,
                         wpost_ref, bpost_ref, wrc_ref, wrp_ref,
                         risk_ref, feat_scr, g_scr):
    # ----- preprocess -----
    # TODO(synk): exact `preprocess(Argument)` module body is not given;
    # modelled as Linear(F_IN -> F) + ReLU on node features (edge-attr branch
    # unused because with_distance == 'N').
    x_in = x_ref[0]                                                  # (N, F_IN) bf16
    h0 = jnp.dot(x_in, wpre_ref[...], preferred_element_type=jnp.float32)
    x = jnp.maximum(h0 + bpre_ref[...], 0.0)                         # (N, F) f32

    adj_bias = adjb_ref[0]                                           # (N, N) f32 (0 / -1e30)

    # deferred global_mean_pool: stash preprocessed x in the feature slab
    feat_scr[:, 0:F] = x

    # ----- GAT layers (statically unrolled) -----
    for l in range(LAYERS):
        xb = x.astype(jnp.bfloat16)
        # source projection only (att_dst folded into W_r at pack time)
        hlb = jnp.dot(xb, wl_ref[l],
                      preferred_element_type=jnp.float32).astype(jnp.bfloat16)  # (N, F)
        # source-side logits, all heads: al[h, j] = x[j] . v_h      -> (HEADS, N)
        al_all = jax.lax.dot_general(vatt_ref[l], xb,
                                     (((1,), (1,)), ((), ())),
                                     preferred_element_type=jnp.float32)
        # target-side logits, all heads: ar[i, h] = x[i] . u_h      -> (N, HEADS)
        ar_all = jnp.dot(xb, uatt_ref[l], preferred_element_type=jnp.float32)

        for hd in range(HEADS):
            sl = slice(hd * DIM, (hd + 1) * DIM)
            e = ar_all[:, hd:hd + 1] + al_all[hd:hd + 1, :]          # (N, N): e[i, j]
            e = jnp.where(e > 0, e, LEAKY * e)                        # LeakyReLU(0.2)
            e = e + adj_bias                                          # mask non-edges
            m = jnp.max(e, axis=-1, keepdims=True)
            # NOTE: self-loops guaranteed in adj, so masked entries underflow
            # to exactly 0 in exp(e - m); no second mask needed.
            p = jnp.exp(e - m)
            ssum = jnp.sum(p, axis=-1, keepdims=True)
            alpha = (p / ssum).astype(jnp.bfloat16)                   # exact softmax
            # out[i] = sum_j alpha[i, j] * hl[j]   (bf16 operands, f32 accumulate)
            g_scr[:, sl] = jnp.dot(alpha, hlb[:, sl],
                                   preferred_element_type=jnp.float32)

        g = g_scr[...] + gbias_ref[l]                                 # heads concat + bias
        # per-node LayerNorm (norm_type == 'layer'; per-graph loop in the
        # reference is equivalent because LayerNorm acts row-wise).  Kept in f32.
        mu = jnp.mean(g, axis=-1, keepdims=True)
        var = jnp.mean((g - mu) ** 2, axis=-1, keepdims=True)
        gn = (g - mu) * jax.lax.rsqrt(var + LN_EPS)
        gn = gn * gamma_ref[l] + beta_ref[l]
        act = jnp.where(gn > 0, gn, prelu_ref[l] * gn)                # PReLU
        # deferred global_mean_pool: stash pre-residual activation
        feat_scr[:, (l + 1) * F:(l + 2) * F] = act
        # residual_connection == 'Y'
        x = act + x

    # ----- one pooling matmul for [x0 | act1 | act2] -----
    pool_b = pool_ref[0].astype(jnp.bfloat16)                         # (B, N)
    xc = jnp.dot(pool_b, feat_scr[...].astype(jnp.bfloat16),
                 preferred_element_type=jnp.float32).astype(jnp.bfloat16)  # (B, CAT)

    # ----- postprocess + risk head -----
    # TODO(synk): `postprocess` internals are not given; modelled as a single
    # Linear((LAYERS+1)*F -> F) + ReLU MLP (MLP_layernum == 2).
    hp = jnp.dot(xc, wpost_ref[...], preferred_element_type=jnp.float32)
    hp = jnp.maximum(hp + bpost_ref[...], 0.0)                        # (B, F)
    # risk = Linear(clinical_num + post_dim -> 1, bias=False) on the concat
    clin = clin_ref[0]                                                # (B, CLIN)
    risk = (jnp.sum(clin * wrc_ref[...], axis=-1, keepdims=True) +
            jnp.sum(hp * wrp_ref[...], axis=-1, keepdims=True))       # (B, 1)
    risk_ref[0] = risk
    # TODO(synk): sparse attention-weight COO export (return_attention_weights)
    # is only used in Interpretation_mode; not exported from the kernel.


# ---------------- pallas_call wrapper ----------------
@jax.jit
def crc_gat_surv_forward(node_x, adj_bias, pool, clinical, packed):
    num_samples = node_x.shape[0]
    return pl.pallas_call(
        fused_forward_kernel,
        out_shape=jax.ShapeDtypeStruct((num_samples, B, 1), jnp.float32),
        grid=(num_samples,),
        in_specs=[
            _sample_spec((N, F_IN)),             # node features (bf16)
            _sample_spec((N, N)),                # adjacency additive bias (f32)
            _sample_spec((B, N)),                # mean-pool matrix
            _sample_spec((B, CLIN)),             # clinical features
            _const_spec((F_IN, F)),              # preprocess weight (bf16)
            _const_spec((1, F)),                 # preprocess bias
            _const_spec((LAYERS, F, F)),         # W_l per layer (bf16)  [W_r folded away]
            _const_spec((LAYERS, HEADS, F)),     # folded source-att rows (bf16)
            _const_spec((LAYERS, F, HEADS)),     # folded target-att cols (bf16)
            _const_spec((LAYERS, 1, F)),         # GATConv bias
            _const_spec((LAYERS, 1, F)),         # LayerNorm gamma
            _const_spec((LAYERS, 1, F)),         # LayerNorm beta
            _const_spec((LAYERS, 1, F)),         # PReLU weight
            _const_spec((CAT, F)),               # postprocess weight (bf16)
            _const_spec((1, F)),                 # postprocess bias
            _const_spec((1, CLIN)),              # risk weight (clinical part)
            _const_spec((1, F)),                 # risk weight (post part)
        ],
        out_specs=pl.BlockSpec((1, B, 1), lambda s: (s, 0, 0)),
        scratch_shapes=[pltpu.VMEM((N, CAT), jnp.float32),   # pooled-feature slab
                        pltpu.VMEM((N, F), jnp.float32)],    # per-layer head outputs
        compiler_params=pltpu.CompilerParams(
            dimension_semantics=("parallel",),     # independent samples -> both TCs on v7x
            vmem_limit_bytes=32 * 1024 * 1024),
    )(node_x.astype(jnp.bfloat16), adj_bias, pool, clinical,
      packed['pre_w'], packed['pre_b'],
      packed['w_l'], packed['v_att'], packed['u_att'],
      packed['g_bias'], packed['ln_gamma'], packed['ln_beta'], packed['prelu'],
      packed['post_w'], packed['post_b'],
      packed['risk_w_clin'], packed['risk_w_post'])


# ---------------- deterministic parameter init + host-side packing ----------------
def init_params(key):
    keys = iter(jax.random.split(key, 32))

    def nrm(shape, scale=0.1):
        return (scale * jax.random.normal(next(keys), shape)).astype(jnp.float32)

    params = {
        'pre_w': nrm((F_IN, F)),
        'pre_b': jnp.zeros((1, F), jnp.float32),
        'gat': [],
        'post_w': nrm((CAT, F)),
        'post_b': jnp.zeros((1, F), jnp.float32),
        'risk_w_clin': nrm((1, CLIN)),
        'risk_w_post': nrm((1, F)),
    }
    for _ in range(LAYERS):
        params['gat'].append((
            nrm((F, F)),                                 # GATConv lin_l (source)
            nrm((F, F)),                                 # GATConv lin_r (target)
            nrm((1, F)),                                 # att_src  (head-major flat)
            nrm((1, F)),                                 # att_dst  (head-major flat)
            jnp.zeros((1, F), jnp.float32),              # GATConv bias
            jnp.ones((1, F), jnp.float32),               # LayerNorm gamma
            jnp.zeros((1, F), jnp.float32),              # LayerNorm beta
            jnp.full((1, F), 0.25, jnp.float32),         # PReLU weight
        ))
    return params


def pack_params(params):
    """Fuse per-layer GAT weights for the single-kernel forward (host-side).

    att_src is folded into W_l (v_att rows), att_dst is folded into W_r
    (u_att columns) -- W_r itself is never needed in the kernel anymore.
    """
    w_l, v_att, u_att = [], [], []
    g_bias, ln_g, ln_b, prelu = [], [], [], []
    for (wl, wr, attl, attr, bias, gamma, beta, pr) in params['gat']:
        w_l.append(wl)                                               # (F, F)
        rows, cols = [], []
        for hd in range(HEADS):
            sl = slice(hd * DIM, (hd + 1) * DIM)
            rows.append(attl[:, sl] @ wl[:, sl].T)                   # (1, F): att_src . W_l
            cols.append(wr[:, sl] @ attr[:, sl].T)                   # (F, 1): W_r . att_dst
        v_att.append(jnp.concatenate(rows, axis=0))                  # (HEADS, F)
        u_att.append(jnp.concatenate(cols, axis=1))                  # (F, HEADS)
        g_bias.append(bias)
        ln_g.append(gamma)
        ln_b.append(beta)
        prelu.append(pr)
    return {
        'pre_w': params['pre_w'].astype(jnp.bfloat16),
        'pre_b': params['pre_b'],
        'w_l': jnp.stack(w_l).astype(jnp.bfloat16),                  # (LAYERS, F, F)
        'v_att': jnp.stack(v_att).astype(jnp.bfloat16),              # (LAYERS, HEADS, F)
        'u_att': jnp.stack(u_att).astype(jnp.bfloat16),              # (LAYERS, F, HEADS)
        'g_bias': jnp.stack(g_bias),
        'ln_gamma': jnp.stack(ln_g),
        'ln_beta': jnp.stack(ln_b),
        'prelu': jnp.stack(prelu),
        'post_w': params['post_w'].astype(jnp.bfloat16),
        'post_b': params['post_b'],
        'risk_w_clin': params['risk_w_clin'],
        'risk_w_post': params['risk_w_post'],
    }


if __name__ == "__main__":
    key = jax.random.PRNGKey(0)
    k_x, k_adj, k_clin, k_param = jax.random.split(key, 4)

    # node features: S samples, N nodes each
    node_x = jax.random.normal(k_x, (S, N, F_IN), dtype=jnp.float32)

    # per-sample block-diagonal random graph (B graphs of N//B nodes) + self loops
    graph_id = jnp.arange(N) // (N // B)
    same_graph = (graph_id[:, None] == graph_id[None, :]).astype(jnp.float32)

    def make_adj_bias(k):
        rand_edges = (jax.random.uniform(k, (N, N)) < 0.15).astype(jnp.float32)
        adj = jnp.clip(rand_edges * same_graph + jnp.eye(N, dtype=jnp.float32), 0.0, 1.0)
        # additive attention mask bias (0 on edges, -1e30 elsewhere); self-loops present.
        return jnp.where(adj > 0, 0.0, NEG_INF).astype(jnp.float32)

    adj_bias = jnp.stack([make_adj_bias(k) for k in jax.random.split(k_adj, S)])

    # global_mean_pool matrix: pool[b, n] = 1/|graph b| if node n in graph b
    onehot = (graph_id[None, :] == jnp.arange(B)[:, None]).astype(jnp.float32)
    pool_one = onehot / jnp.sum(onehot, axis=1, keepdims=True)
    pool = jnp.tile(pool_one[None], (S, 1, 1))                       # (S, B, N)

    # clinical features: age, gender, stage, cancer_type (one scalar each, per graph)
    clinical = jax.random.normal(k_clin, (S, B, CLIN), dtype=jnp.float32)

    params = init_params(k_param)
    packed = pack_params(params)

    risk = crc_gat_surv_forward(node_x, adj_bias, pool, clinical, packed)
    jax.block_until_ready(risk)
    assert risk.shape == (S, B, 1) and risk.dtype == jnp.float32
    assert bool(jnp.all(jnp.isfinite(risk)))
    print("KERNEL_OK")
</pallas_src>

<mosaic_0001>
module attributes {stable_mosaic.version = 11 : i64} {
  func.func @fused_forward_kernel(%arg0: i32, %arg1: memref<1x64x128xbf16, #tpu.memory_space<vmem>>, %arg2: memref<1x64x64xf32, #tpu.memory_space<vmem>>, %arg3: memref<1x2x64xf32, #tpu.memory_space<vmem>>, %arg4: memref<1x2x4xf32, #tpu.memory_space<vmem>>, %arg5: memref<128x256xbf16, #tpu.memory_space<vmem>>, %arg6: memref<1x256xf32, #tpu.memory_space<vmem>>, %arg7: memref<2x256x256xbf16, #tpu.memory_space<vmem>>, %arg8: memref<2x2x256xbf16, #tpu.memory_space<vmem>>, %arg9: memref<2x256x2xbf16, #tpu.memory_space<vmem>>, %arg10: memref<2x1x256xf32, #tpu.memory_space<vmem>>, %arg11: memref<2x1x256xf32, #tpu.memory_space<vmem>>, %arg12: memref<2x1x256xf32, #tpu.memory_space<vmem>>, %arg13: memref<2x1x256xf32, #tpu.memory_space<vmem>>, %arg14: memref<768x256xbf16, #tpu.memory_space<vmem>>, %arg15: memref<1x256xf32, #tpu.memory_space<vmem>>, %arg16: memref<1x4xf32, #tpu.memory_space<vmem>>, %arg17: memref<1x256xf32, #tpu.memory_space<vmem>>, %arg18: memref<1x2x1xf32, #tpu.memory_space<vmem>>, %arg19: memref<64x768xf32, #tpu.memory_space<vmem>>, %arg20: memref<64x256xf32, #tpu.memory_space<vmem>>) attributes {dimension_semantics = [#tpu.dimension_semantics<parallel>], iteration_bounds = array<i64: 2>, scalar_prefetch = 0 : i64, scratch_operands = 2 : i64, tpu.core_type = #tpu.core_type<tc>, window_params = [{transform_indices = @transform_0, window_bounds = array<i64: 1, 64, 128>}, {transform_indices = @transform_1, window_bounds = array<i64: 1, 64, 64>}, {transform_indices = @transform_2, window_bounds = array<i64: 1, 2, 64>}, {transform_indices = @transform_3, window_bounds = array<i64: 1, 2, 4>}, {pipeline_mode = #tpu.pipeline_mode<synchronous>, transform_indices = @transform_4, window_bounds = array<i64: 128, 256>}, {pipeline_mode = #tpu.pipeline_mode<synchronous>, transform_indices = @transform_5, window_bounds = array<i64: 1, 256>}, {pipeline_mode = #tpu.pipeline_mode<synchronous>, transform_indices = @transform_6, window_bounds = array<i64: 2, 256, 256>}, {pipeline_mode = #tpu.pipeline_mode<synchronous>, transform_indices = @transform_7, window_bounds = array<i64: 2, 2, 256>}, {pipeline_mode = #tpu.pipeline_mode<synchronous>, transform_indices = @transform_8, window_bounds = array<i64: 2, 256, 2>}, {pipeline_mode = #tpu.pipeline_mode<synchronous>, transform_indices = @transform_9, window_bounds = array<i64: 2, 1, 256>}, {pipeline_mode = #tpu.pipeline_mode<synchronous>, transform_indices = @transform_10, window_bounds = array<i64: 2, 1, 256>}, {pipeline_mode = #tpu.pipeline_mode<synchronous>, transform_indices = @transform_11, window_bounds = array<i64: 2, 1, 256>}, {pipeline_mode = #tpu.pipeline_mode<synchronous>, transform_indices = @transform_12, window_bounds = array<i64: 2, 1, 256>}, {pipeline_mode = #tpu.pipeline_mode<synchronous>, transform_indices = @transform_13, window_bounds = array<i64: 768, 256>}, {pipeline_mode = #tpu.pipeline_mode<synchronous>, transform_indices = @transform_14, window_bounds = array<i64: 1, 256>}, {pipeline_mode = #tpu.pipeline_mode<synchronous>, transform_indices = @transform_15, window_bounds = array<i64: 1, 4>}, {pipeline_mode = #tpu.pipeline_mode<synchronous>, transform_indices = @transform_16, window_bounds = array<i64: 1, 256>}, {transform_indices = @transform_17, window_bounds = array<i64: 1, 2, 1>}]} {
    %c0 = arith.constant 0 : index
    %c0_0 = arith.constant 0 : index
    %c0_1 = arith.constant 0 : index
    %0 = vector.load %arg1[%c0, %c0_0, %c0_1] : memref<1x64x128xbf16, #tpu.memory_space<vmem>>, vector<1x64x128xbf16>
    %1 = vector.shape_cast %0 : vector<1x64x128xbf16> to vector<64x128xbf16>
    %c0_2 = arith.constant 0 : index
    %c0_3 = arith.constant 0 : index
    %2 = vector.load %arg5[%c0_2, %c0_3] : memref<128x256xbf16, #tpu.memory_space<vmem>>, vector<128x256xbf16>
    %cst = arith.constant dense<0.000000e+00> : vector<64x256xf32>
    %3 = tpu.matmul %1, %2, %cst {dimension_numbers = #tpu.dot_dimension_numbers<[1], [0], [0], [1], [0, 0, 1, 1], [], []>} : vector<64x128xbf16>, vector<128x256xbf16>, vector<64x256xf32> -> vector<64x256xf32>
    %c0_4 = arith.constant 0 : index
    %c0_5 = arith.constant 0 : index
    %4 = vector.load %arg6[%c0_4, %c0_5] : memref<1x256xf32, #tpu.memory_space<vmem>>, vector<1x256xf32>
    %5 = vector.broadcast %4 : vector<1x256xf32> to vector<64x256xf32>
    %6 = arith.addf %3, %5 : vector<64x256xf32>
    %cst_6 = arith.constant 0.000000e+00 : f32
    %7 = vector.broadcast %cst_6 : f32 to vector<64x256xf32>
    %8 = arith.maximumf %6, %7 : vector<64x256xf32>
    %c0_7 = arith.constant 0 : index
    %c0_8 = arith.constant 0 : index
    %c0_9 = arith.constant 0 : index
    %9 = vector.load %arg2[%c0_7, %c0_8, %c0_9] : memref<1x64x64xf32, #tpu.memory_space<vmem>>, vector<1x64x64xf32>
    %10 = vector.shape_cast %9 : vector<1x64x64xf32> to vector<64x64xf32>
    %c0_10 = arith.constant 0 : index
    %c0_11 = arith.constant 0 : index
    %11 = vector.load %arg19[%c0_10, %c0_11] : memref<64x768xf32, #tpu.memory_space<vmem>>, vector<64x256xf32>
    tpu.vector_store %arg19[%c0_10, %c0_11], %8 {strides = array<i32>} : memref<64x768xf32, #tpu.memory_space<vmem>>, vector<64x256xf32>,
    %12 = arith.truncf %8 : vector<64x256xf32> to vector<64x256xbf16>
    %c0_12 = arith.constant 0 : index
    %c0_13 = arith.constant 0 : index
    %c0_14 = arith.constant 0 : index
    %13 = vector.load %arg7[%c0_12, %c0_13, %c0_14] : memref<2x256x256xbf16, #tpu.memory_space<vmem>>, vector<1x256x256xbf16>
    %14 = vector.shape_cast %13 : vector<1x256x256xbf16> to vector<256x256xbf16>
    %cst_15 = arith.constant dense<0.000000e+00> : vector<64x256xf32>
    %15 = tpu.matmul %12, %14, %cst_15 {dimension_numbers = #tpu.dot_dimension_numbers<[1], [0], [0], [1], [0, 0, 1, 1], [], []>} : vector<64x256xbf16>, vector<256x256xbf16>, vector<64x256xf32> -> vector<64x256xf32>
    %16 = arith.truncf %15 : vector<64x256xf32> to vector<64x256xbf16>
    %c0_16 = arith.constant 0 : index
    %c0_17 = arith.constant 0 : index
    %c0_18 = arith.constant 0 : index
    %17 = vector.load %arg8[%c0_16, %c0_17, %c0_18] : memref<2x2x256xbf16, #tpu.memory_space<vmem>>, vector<1x2x256xbf16>
    %18 = vector.shape_cast %17 : vector<1x2x256xbf16> to vector<2x256xbf16>
    %cst_19 = arith.constant dense<0.000000e+00> : vector<2x64xf32>
    %19 = tpu.matmul %18, %12, %cst_19 {dimension_numbers = #tpu.dot_dimension_numbers<[1], [1], [0], [0], [0, 0, 1, 0], [], []>} : vector<2x256xbf16>, vector<64x256xbf16>, vector<2x64xf32> -> vector<2x64xf32>
    %c0_20 = arith.constant 0 : index
    %c0_21 = arith.constant 0 : index
    %c0_22 = arith.constant 0 : index
    %20 = vector.load %arg9[%c0_20, %c0_21, %c0_22] : memref<2x256x2xbf16, #tpu.memory_space<vmem>>, vector<1x256x2xbf16>
    %21 = vector.shape_cast %20 : vector<1x256x2xbf16> to vector<256x2xbf16>
    %cst_23 = arith.constant dense<0.000000e+00> : vector<64x2xf32>
    %22 = tpu.matmul %12, %21, %cst_23 {dimension_numbers = #tpu.dot_dimension_numbers<[1], [0], [0], [1], [0, 0, 1, 1], [], []>} : vector<64x256xbf16>, vector<256x2xbf16>, vector<64x2xf32> -> vector<64x2xf32>
    %23 = vector.extract_strided_slice %22 {offsets = [0, 0], sizes = [64, 1], strides = [1, 1]} : vector<64x2xf32> to vector<64x1xf32>
    %24 = vector.extract_strided_slice %19 {offsets = [0, 0], sizes = [1, 64], strides = [1, 1]} : vector<2x64xf32> to vector<1x64xf32>
    %25 = vector.broadcast %23 : vector<64x1xf32> to vector<64x64xf32>
    %26 = vector.broadcast %24 : vector<1x64xf32> to vector<64x64xf32>
    %27 = arith.addf %25, %26 : vector<64x64xf32>
    %cst_24 = arith.constant 0.000000e+00 : f32
    %28 = vector.broadcast %cst_24 : f32 to vector<64x64xf32>
    %29 = arith.cmpf ogt, %27, %28 : vector<64x64xf32>
    %cst_25 = arith.constant 2.000000e-01 : f32
    %30 = vector.broadcast %cst_25 : f32 to vector<64x64xf32>
    %31 = arith.mulf %30, %27 : vector<64x64xf32>
    %32 = arith.select %29, %27, %31 : vector<64x64xi1>, vector<64x64xf32>
    %33 = arith.addf %32, %10 : vector<64x64xf32>
    %cst_26 = arith.constant dense<0xFF800000> : vector<64xf32>
    %34 = vector.multi_reduction <maximumf>, %33, %cst_26 [1] : vector<64x64xf32> to vector<64xf32>
    %35 = vector.shape_cast %34 : vector<64xf32> to vector<64x1xf32>
    %36 = vector.broadcast %35 : vector<64x1xf32> to vector<64x64xf32>
    %37 = arith.subf %33, %36 : vector<64x64xf32>
    %38 = math.exp %37 : vector<64x64xf32>
    %cst_27 = arith.constant dense<0.000000e+00> : vector<64xf32>
    %39 = vector.multi_reduction <add>, %38, %cst_27 [1] : vector<64x64xf32> to vector<64xf32>
    %40 = vector.shape_cast %39 : vector<64xf32> to vector<64x1xf32>
    %41 = vector.broadcast %40 : vector<64x1xf32> to vector<64x64xf32>
    %42 = arith.divf %38, %41 : vector<64x64xf32>
    %43 = arith.truncf %42 : vector<64x64xf32> to vector<64x64xbf16>
    %44 = vector.extract_strided_slice %16 {offsets = [0, 0], sizes = [64, 128], strides = [1, 1]} : vector<64x256xbf16> to vector<64x128xbf16>
    %cst_28 = arith.constant dense<0.000000e+00> : vector<64x128xf32>
    %45 = tpu.matmul %43, %44, %cst_28 {dimension_numbers = #tpu.dot_dimension_numbers<[1], [0], [0], [1], [0, 0, 1, 1], [], []>} : vector<64x64xbf16>, vector<64x128xbf16>, vector<64x128xf32> -> vector<64x128xf32>
    %c0_29 = arith.constant 0 : index
    %c0_30 = arith.constant 0 : index
    %46 = vector.load %arg20[%c0_29, %c0_30] : memref<64x256xf32, #tpu.memory_space<vmem>>, vector<64x128xf32>
    tpu.vector_store %arg20[%c0_29, %c0_30], %45 {strides = array<i32>} : memref<64x256xf32, #tpu.memory_space<vmem>>, vector<64x128xf32>,
    %47 = vector.extract_strided_slice %22 {offsets = [0, 1], sizes = [64, 1], strides = [1, 1]} : vector<64x2xf32> to vector<64x1xf32>
    %48 = vector.extract_strided_slice %19 {offsets = [1, 0], sizes = [1, 64], strides = [1, 1]} : vector<2x64xf32> to vector<1x64xf32>
    %49 = vector.broadcast %47 : vector<64x1xf32> to vector<64x64xf32>
    %50 = vector.broadcast %48 : vector<1x64xf32> to vector<64x64xf32>
    %51 = arith.addf %49, %50 : vector<64x64xf32>
    %cst_31 = arith.constant 0.000000e+00 : f32
    %52 = vector.broadcast %cst_31 : f32 to vector<64x64xf32>
    %53 = arith.cmpf ogt, %51, %52 : vector<64x64xf32>
    %cst_32 = arith.constant 2.000000e-01 : f32
    %54 = vector.broadcast %cst_32 : f32 to vector<64x64xf32>
    %55 = arith.mulf %54, %51 : vector<64x64xf32>
    %56 = arith.select %53, %51, %55 : vector<64x64xi1>, vector<64x64xf32>
    %57 = arith.addf %56, %10 : vector<64x64xf32>
    %cst_33 = arith.constant dense<0xFF800000> : vector<64xf32>
    %58 = vector.multi_reduction <maximumf>, %57, %cst_33 [1] : vector<64x64xf32> to vector<64xf32>
    %59 = vector.shape_cast %58 : vector<64xf32> to vector<64x1xf32>
    %60 = vector.broadcast %59 : vector<64x1xf32> to vector<64x64xf32>
    %61 = arith.subf %57, %60 : vector<64x64xf32>
    %62 = math.exp %61 : vector<64x64xf32>
    %cst_34 = arith.constant dense<0.000000e+00> : vector<64xf32>
    %63 = vector.multi_reduction <add>, %62, %cst_34 [1] : vector<64x64xf32> to vector<64xf32>
    %64 = vector.shape_cast %63 : vector<64xf32> to vector<64x1xf32>
    %65 = vector.broadcast %64 : vector<64x1xf32> to vector<64x64xf32>
    %66 = arith.divf %62, %65 : vector<64x64xf32>
    %67 = arith.truncf %66 : vector<64x64xf32> to vector<64x64xbf16>
    %68 = vector.extract_strided_slice %16 {offsets = [0, 128], sizes = [64, 128], strides = [1, 1]} : vector<64x256xbf16> to vector<64x128xbf16>
    %cst_35 = arith.constant dense<0.000000e+00> : vector<64x128xf32>
    %69 = tpu.matmul %67, %68, %cst_35 {dimension_numbers = #tpu.dot_dimension_numbers<[1], [0], [0], [1], [0, 0, 1, 1], [], []>} : vector<64x64xbf16>, vector<64x128xbf16>, vector<64x128xf32> -> vector<64x128xf32>
    %c0_36 = arith.constant 0 : index
    %c128 = arith.constant 128 : index
    %70 = vector.load %arg20[%c0_36, %c128] : memref<64x256xf32, #tpu.memory_space<vmem>>, vector<64x128xf32>
    tpu.vector_store %arg20[%c0_36, %c128], %69 {strides = array<i32>} : memref<64x256xf32, #tpu.memory_space<vmem>>, vector<64x128xf32>,
    %c0_37 = arith.constant 0 : index
    %c0_38 = arith.constant 0 : index
    %71 = vector.load %arg20[%c0_37, %c0_38] : memref<64x256xf32, #tpu.memory_space<vmem>>, vector<64x256xf32>
    %c0_39 = arith.constant 0 : index
    %c0_40 = arith.constant 0 : index
    %c0_41 = arith.constant 0 : index
    %72 = vector.load %arg10[%c0_39, %c0_40, %c0_41] : memref<2x1x256xf32, #tpu.memory_space<vmem>>, vector<1x1x256xf32>
    %73 = vector.shape_cast %72 : vector<1x1x256xf32> to vector<1x256xf32>
    %74 = vector.broadcast %73 : vector<1x256xf32> to vector<64x256xf32>
    %75 = arith.addf %71, %74 : vector<64x256xf32>
    %cst_42 = arith.constant dense<0.000000e+00> : vector<64xf32>
    %76 = vector.multi_reduction <add>, %75, %cst_42 [1] : vector<64x256xf32> to vector<64xf32>
    %77 = vector.shape_cast %76 : vector<64xf32> to vector<64x1xf32>
    %cst_43 = arith.constant 2.560000e+02 : f32
    %78 = vector.broadcast %cst_43 : f32 to vector<64x1xf32>
    %79 = arith.divf %77, %78 : vector<64x1xf32>
    %80 = vector.broadcast %79 : vector<64x1xf32> to vector<64x256xf32>
    %81 = arith.subf %75, %80 : vector<64x256xf32>
    %82 = arith.mulf %81, %81 : vector<64x256xf32>
    %cst_44 = arith.constant dense<0.000000e+00> : vector<64xf32>
    %83 = vector.multi_reduction <add>, %82, %cst_44 [1] : vector<64x256xf32> to vector<64xf32>
    %84 = vector.shape_cast %83 : vector<64xf32> to vector<64x1xf32>
    %cst_45 = arith.constant 2.560000e+02 : f32
    %85 = vector.broadcast %cst_45 : f32 to vector<64x1xf32>
    %86 = arith.divf %84, %85 : vector<64x1xf32>
    %87 = vector.broadcast %79 : vector<64x1xf32> to vector<64x256xf32>
    %88 = arith.subf %75, %87 : vector<64x256xf32>
    %cst_46 = arith.constant 9.99999974E-6 : f32
    %89 = vector.broadcast %cst_46 : f32 to vector<64x1xf32>
    %90 = arith.addf %86, %89 : vector<64x1xf32>
    %91 = math.rsqrt %90 : vector<64x1xf32>
    %92 = vector.broadcast %91 : vector<64x1xf32> to vector<64x256xf32>
    %93 = arith.mulf %88, %92 : vector<64x256xf32>
    %c0_47 = arith.constant 0 : index
    %c0_48 = arith.constant 0 : index
    %c0_49 = arith.constant 0 : index
    %94 = vector.load %arg11[%c0_47, %c0_48, %c0_49] : memref<2x1x256xf32, #tpu.memory_space<vmem>>, vector<1x1x256xf32>
    %95 = vector.shape_cast %94 : vector<1x1x256xf32> to vector<1x256xf32>
    %96 = vector.broadcast %95 : vector<1x256xf32> to vector<64x256xf32>
    %97 = arith.mulf %93, %96 : vector<64x256xf32>
    %c0_50 = arith.constant 0 : index
    %c0_51 = arith.constant 0 : index
    %c0_52 = arith.constant 0 : index
    %98 = vector.load %arg12[%c0_50, %c0_51, %c0_52] : memref<2x1x256xf32, #tpu.memory_space<vmem>>, vector<1x1x256xf32>
    %99 = vector.shape_cast %98 : vector<1x1x256xf32> to vector<1x256xf32>
    %100 = vector.broadcast %99 : vector<1x256xf32> to vector<64x256xf32>
    %101 = arith.addf %97, %100 : vector<64x256xf32>
    %cst_53 = arith.constant 0.000000e+00 : f32
    %102 = vector.broadcast %cst_53 : f32 to vector<64x256xf32>
    %103 = arith.cmpf ogt, %101, %102 : vector<64x256xf32>
    %c0_54 = arith.constant 0 : index
    %c0_55 = arith.constant 0 : index
    %c0_56 = arith.constant 0 : index
    %104 = vector.load %arg13[%c0_54, %c0_55, %c0_56] : memref<2x1x256xf32, #tpu.memory_space<vmem>>, vector<1x1x256xf32>
    %105 = vector.shape_cast %104 : vector<1x1x256xf32> to vector<1x256xf32>
    %106 = vector.broadcast %105 : vector<1x256xf32> to vector<64x256xf32>
    %107 = arith.mulf %106, %101 : vector<64x256xf32>
    %108 = arith.select %103, %101, %107 : vector<64x256xi1>, vector<64x256xf32>
    %c0_57 = arith.constant 0 : index
    %c256 = arith.constant 256 : index
    %109 = vector.load %arg19[%c0_57, %c256] : memref<64x768xf32, #tpu.memory_space<vmem>>, vector<64x256xf32>
    tpu.vector_store %arg19[%c0_57, %c256], %108 {strides = array<i32>} : memref<64x768xf32, #tpu.memory_space<vmem>>, vector<64x256xf32>,
    %110 = arith.addf %108, %8 : vector<64x256xf32>
    %111 = arith.truncf %110 : vector<64x256xf32> to vector<64x256xbf16>
    %c1 = arith.constant 1 : index
    %c0_58 = arith.constant 0 : index
    %c0_59 = arith.constant 0 : index
    %112 = vector.load %arg7[%c1, %c0_58, %c0_59] : memref<2x256x256xbf16, #tpu.memory_space<vmem>>, vector<1x256x256xbf16>
    %113 = vector.shape_cast %112 : vector<1x256x256xbf16> to vector<256x256xbf16>
    %cst_60 = arith.constant dense<0.000000e+00> : vector<64x256xf32>
    %114 = tpu.matmul %111, %113, %cst_60 {dimension_numbers = #tpu.dot_dimension_numbers<[1], [0], [0], [1], [0, 0, 1, 1], [], []>} : vector<64x256xbf16>, vector<256x256xbf16>, vector<64x256xf32> -> vector<64x256xf32>
    %115 = arith.truncf %114 : vector<64x256xf32> to vector<64x256xbf16>
    %c1_61 = arith.constant 1 : index
    %c0_62 = arith.constant 0 : index
    %c0_63 = arith.constant 0 : index
    %116 = vector.load %arg8[%c1_61, %c0_62, %c0_63] : memref<2x2x256xbf16, #tpu.memory_space<vmem>>, vector<1x2x256xbf16>
    %117 = vector.shape_cast %116 : vector<1x2x256xbf16> to vector<2x256xbf16>
    %cst_64 = arith.constant dense<0.000000e+00> : vector<2x64xf32>
    %118 = tpu.matmul %117, %111, %cst_64 {dimension_numbers = #tpu.dot_dimension_numbers<[1], [1], [0], [0], [0, 0, 1, 0], [], []>} : vector<2x256xbf16>, vector<64x256xbf16>, vector<2x64xf32> -> vector<2x64xf32>
    %c1_65 = arith.constant 1 : index
    %c0_66 = arith.constant 0 : index
    %c0_67 = arith.constant 0 : index
    %119 = vector.load %arg9[%c1_65, %c0_66, %c0_67] : memref<2x256x2xbf16, #tpu.memory_space<vmem>>, vector<1x256x2xbf16>
    %120 = vector.shape_cast %119 : vector<1x256x2xbf16> to vector<256x2xbf16>
    %cst_68 = arith.constant dense<0.000000e+00> : vector<64x2xf32>
    %121 = tpu.matmul %111, %120, %cst_68 {dimension_numbers = #tpu.dot_dimension_numbers<[1], [0], [0], [1], [0, 0, 1, 1], [], []>} : vector<64x256xbf16>, vector<256x2xbf16>, vector<64x2xf32> -> vector<64x2xf32>
    %122 = vector.extract_strided_slice %121 {offsets = [0, 0], sizes = [64, 1], strides = [1, 1]} : vector<64x2xf32> to vector<64x1xf32>
    %123 = vector.extract_strided_slice %118 {offsets = [0, 0], sizes = [1, 64], strides = [1, 1]} : vector<2x64xf32> to vector<1x64xf32>
    %124 = vector.broadcast %122 : vector<64x1xf32> to vector<64x64xf32>
    %125 = vector.broadcast %123 : vector<1x64xf32> to vector<64x64xf32>
    %126 = arith.addf %124, %125 : vector<64x64xf32>
    %cst_69 = arith.constant 0.000000e+00 : f32
    %127 = vector.broadcast %cst_69 : f32 to vector<64x64xf32>
    %128 = arith.cmpf ogt, %126, %127 : vector<64x64xf32>
    %cst_70 = arith.constant 2.000000e-01 : f32
    %129 = vector.broadcast %cst_70 : f32 to vector<64x64xf32>
    %130 = arith.mulf %129, %126 : vector<64x64xf32>
    %131 = arith.select %128, %126, %130 : vector<64x64xi1>, vector<64x64xf32>
    %132 = arith.addf %131, %10 : vector<64x64xf32>
    %cst_71 = arith.constant dense<0xFF800000> : vector<64xf32>
    %133 = vector.multi_reduction <maximumf>, %132, %cst_71 [1] : vector<64x64xf32> to vector<64xf32>
    %134 = vector.shape_cast %133 : vector<64xf32> to vector<64x1xf32>
    %135 = vector.broadcast %134 : vector<64x1xf32> to vector<64x64xf32>
    %136 = arith.subf %132, %135 : vector<64x64xf32>
    %137 = math.exp %136 : vector<64x64xf32>
    %cst_72 = arith.constant dense<0.000000e+00> : vector<64xf32>
    %138 = vector.multi_reduction <add>, %137, %cst_72 [1] : vector<64x64xf32> to vector<64xf32>
    %139 = vector.shape_cast %138 : vector<64xf32> to vector<64x1xf32>
    %140 = vector.broadcast %139 : vector<64x1xf32> to vector<64x64xf32>
    %141 = arith.divf %137, %140 : vector<64x64xf32>
    %142 = arith.truncf %141 : vector<64x64xf32> to vector<64x64xbf16>
    %143 = vector.extract_strided_slice %115 {offsets = [0, 0], sizes = [64, 128], strides = [1, 1]} : vector<64x256xbf16> to vector<64x128xbf16>
    %cst_73 = arith.constant dense<0.000000e+00> : vector<64x128xf32>
    %144 = tpu.matmul %142, %143, %cst_73 {dimension_numbers = #tpu.dot_dimension_numbers<[1], [0], [0], [1], [0, 0, 1, 1], [], []>} : vector<64x64xbf16>, vector<64x128xbf16>, vector<64x128xf32> -> vector<64x128xf32>
    %c0_74 = arith.constant 0 : index
    %c0_75 = arith.constant 0 : index
    %145 = vector.load %arg20[%c0_74, %c0_75] : memref<64x256xf32, #tpu.memory_space<vmem>>, vector<64x128xf32>
    tpu.vector_store %arg20[%c0_74, %c0_75], %144 {strides = array<i32>} : memref<64x256xf32, #tpu.memory_space<vmem>>, vector<64x128xf32>,
    %146 = vector.extract_strided_slice %121 {offsets = [0, 1], sizes = [64, 1], strides = [1, 1]} : vector<64x2xf32> to vector<64x1xf32>
    %147 = vector.extract_strided_slice %118 {offsets = [1, 0], sizes = [1, 64], strides = [1, 1]} : vector<2x64xf32> to vector<1x64xf32>
    %148 = vector.broadcast %146 : vector<64x1xf32> to vector<64x64xf32>
    %149 = vector.broadcast %147 : vector<1x64xf32> to vector<64x64xf32>
    %150 = arith.addf %148, %149 : vector<64x64xf32>
    %cst_76 = arith.constant 0.000000e+00 : f32
    %151 = vector.broadcast %cst_76 : f32 to vector<64x64xf32>
    %152 = arith.cmpf ogt, %150, %151 : vector<64x64xf32>
    %cst_77 = arith.constant 2.000000e-01 : f32
    %153 = vector.broadcast %cst_77 : f32 to vector<64x64xf32>
    %154 = arith.mulf %153, %150 : vector<64x64xf32>
    %155 = arith.select %152, %150, %154 : vector<64x64xi1>, vector<64x64xf32>
    %156 = arith.addf %155, %10 : vector<64x64xf32>
    %cst_78 = arith.constant dense<0xFF800000> : vector<64xf32>
    %157 = vector.multi_reduction <maximumf>, %156, %cst_78 [1] : vector<64x64xf32> to vector<64xf32>
    %158 = vector.shape_cast %157 : vector<64xf32> to vector<64x1xf32>
    %159 = vector.broadcast %158 : vector<64x1xf32> to vector<64x64xf32>
    %160 = arith.subf %156, %159 : vector<64x64xf32>
    %161 = math.exp %160 : vector<64x64xf32>
    %cst_79 = arith.constant dense<0.000000e+00> : vector<64xf32>
    %162 = vector.multi_reduction <add>, %161, %cst_79 [1] : vector<64x64xf32> to vector<64xf32>
    %163 = vector.shape_cast %162 : vector<64xf32> to vector<64x1xf32>
    %164 = vector.broadcast %163 : vector<64x1xf32> to vector<64x64xf32>
    %165 = arith.divf %161, %164 : vector<64x64xf32>
    %166 = arith.truncf %165 : vector<64x64xf32> to vector<64x64xbf16>
    %167 = vector.extract_strided_slice %115 {offsets = [0, 128], sizes = [64, 128], strides = [1, 1]} : vector<64x256xbf16> to vector<64x128xbf16>
    %cst_80 = arith.constant dense<0.000000e+00> : vector<64x128xf32>
    %168 = tpu.matmul %166, %167, %cst_80 {dimension_numbers = #tpu.dot_dimension_numbers<[1], [0], [0], [1], [0, 0, 1, 1], [], []>} : vector<64x64xbf16>, vector<64x128xbf16>, vector<64x128xf32> -> vector<64x128xf32>
    %c0_81 = arith.constant 0 : index
    %c128_82 = arith.constant 128 : index
    %169 = vector.load %arg20[%c0_81, %c128_82] : memref<64x256xf32, #tpu.memory_space<vmem>>, vector<64x128xf32>
    tpu.vector_store %arg20[%c0_81, %c128_82], %168 {strides = array<i32>} : memref<64x256xf32, #tpu.memory_space<vmem>>, vector<64x128xf32>,
    %c0_83 = arith.constant 0 : index
    %c0_84 = arith.constant 0 : index
    %170 = vector.load %arg20[%c0_83, %c0_84] : memref<64x256xf32, #tpu.memory_space<vmem>>, vector<64x256xf32>
    %c1_85 = arith.constant 1 : index
    %c0_86 = arith.constant 0 : index
    %c0_87 = arith.constant 0 : index
    %171 = vector.load %arg10[%c1_85, %c0_86, %c0_87] : memref<2x1x256xf32, #tpu.memory_space<vmem>>, vector<1x1x256xf32>
    %172 = vector.shape_cast %171 : vector<1x1x256xf32> to vector<1x256xf32>
    %173 = vector.broadcast %172 : vector<1x256xf32> to vector<64x256xf32>
    %174 = arith.addf %170, %173 : vector<64x256xf32>
    %cst_88 = arith.constant dense<0.000000e+00> : vector<64xf32>
    %175 = vector.multi_reduction <add>, %174, %cst_88 [1] : vector<64x256xf32> to vector<64xf32>
    %176 = vector.shape_cast %175 : vector<64xf32> to vector<64x1xf32>
    %cst_89 = arith.constant 2.560000e+02 : f32
    %177 = vector.broadcast %cst_89 : f32 to vector<64x1xf32>
    %178 = arith.divf %176, %177 : vector<64x1xf32>
    %179 = vector.broadcast %178 : vector<64x1xf32> to vector<64x256xf32>
    %180 = arith.subf %174, %179 : vector<64x256xf32>
    %181 = arith.mulf %180, %180 : vector<64x256xf32>
    %cst_90 = arith.constant dense<0.000000e+00> : vector<64xf32>
    %182 = vector.multi_reduction <add>, %181, %cst_90 [1] : vector<64x256xf32> to vector<64xf32>
    %183 = vector.shape_cast %182 : vector<64xf32> to vector<64x1xf32>
    %cst_91 = arith.constant 2.560000e+02 : f32
    %184 = vector.broadcast %cst_91 : f32 to vector<64x1xf32>
    %185 = arith.divf %183, %184 : vector<64x1xf32>
    %186 = vector.broadcast %178 : vector<64x1xf32> to vector<64x256xf32>
    %187 = arith.subf %174, %186 : vector<64x256xf32>
    %cst_92 = arith.constant 9.99999974E-6 : f32
    %188 = vector.broadcast %cst_92 : f32 to vector<64x1xf32>
    %189 = arith.addf %185, %188 : vector<64x1xf32>
    %190 = math.rsqrt %189 : vector<64x1xf32>
    %191 = vector.broadcast %190 : vector<64x1xf32> to vector<64x256xf32>
    %192 = arith.mulf %187, %191 : vector<64x256xf32>
    %c1_93 = arith.constant 1 : index
    %c0_94 = arith.constant 0 : index
    %c0_95 = arith.constant 0 : index
    %193 = vector.load %arg11[%c1_93, %c0_94, %c0_95] : memref<2x1x256xf32, #tpu.memory_space<vmem>>, vector<1x1x256xf32>
    %194 = vector.shape_cast %193 : vector<1x1x256xf32> to vector<1x256xf32>
    %195 = vector.broadcast %194 : vector<1x256xf32> to vector<64x256xf32>
    %196 = arith.mulf %192, %195 : vector<64x256xf32>
    %c1_96 = arith.constant 1 : index
    %c0_97 = arith.constant 0 : index
    %c0_98 = arith.constant 0 : index
    %197 = vector.load %arg12[%c1_96, %c0_97, %c0_98] : memref<2x1x256xf32, #tpu.memory_space<vmem>>, vector<1x1x256xf32>
    %198 = vector.shape_cast %197 : vector<1x1x256xf32> to vector<1x256xf32>
    %199 = vector.broadcast %198 : vector<1x256xf32> to vector<64x256xf32>
    %200 = arith.addf %196, %199 : vector<64x256xf32>
    %cst_99 = arith.constant 0.000000e+00 : f32
    %201 = vector.broadcast %cst_99 : f32 to vector<64x256xf32>
    %202 = arith.cmpf ogt, %200, %201 : vector<64x256xf32>
    %c1_100 = arith.constant 1 : index
    %c0_101 = arith.constant 0 : index
    %c0_102 = arith.constant 0 : index
    %203 = vector.load %arg13[%c1_100, %c0_101, %c0_102] : memref<2x1x256xf32, #tpu.memory_space<vmem>>, vector<1x1x256xf32>
    %204 = vector.shape_cast %203 : vector<1x1x256xf32> to vector<1x256xf32>
    %205 = vector.broadcast %204 : vector<1x256xf32> to vector<64x256xf32>
    %206 = arith.mulf %205, %200 : vector<64x256xf32>
    %207 = arith.select %202, %200, %206 : vector<64x256xi1>, vector<64x256xf32>
    %c0_103 = arith.constant 0 : index
    %c512 = arith.constant 512 : index
    %208 = vector.load %arg19[%c0_103, %c512] : memref<64x768xf32, #tpu.memory_space<vmem>>, vector<64x256xf32>
    tpu.vector_store %arg19[%c0_103, %c512], %207 {strides = array<i32>} : memref<64x768xf32, #tpu.memory_space<vmem>>, vector<64x256xf32>,
    %c0_104 = arith.constant 0 : index
    %c0_105 = arith.constant 0 : index
    %c0_106 = arith.constant 0 : index
    %209 = vector.load %arg3[%c0_104, %c0_105, %c0_106] : memref<1x2x64xf32, #tpu.memory_space<vmem>>, vector<1x2x64xf32>
    %210 = vector.shape_cast %209 : vector<1x2x64xf32> to vector<2x64xf32>
    %211 = arith.truncf %210 : vector<2x64xf32> to vector<2x64xbf16>
    %c0_107 = arith.constant 0 : index
    %c0_108 = arith.constant 0 : index
    %212 = vector.load %arg19[%c0_107, %c0_108] : memref<64x768xf32, #tpu.memory_space<vmem>>, vector<64x768xf32>
    %213 = arith.truncf %212 : vector<64x768xf32> to vector<64x768xbf16>
    %cst_109 = arith.constant dense<0.000000e+00> : vector<2x768xf32>
    %214 = tpu.matmul %211, %213, %cst_109 {dimension_numbers = #tpu.dot_dimension_numbers<[1], [0], [0], [1], [0, 0, 1, 1], [], []>} : vector<2x64xbf16>, vector<64x768xbf16>, vector<2x768xf32> -> vector<2x768xf32>
    %215 = arith.truncf %214 : vector<2x768xf32> to vector<2x768xbf16>
    %c0_110 = arith.constant 0 : index
    %c0_111 = arith.constant 0 : index
    %216 = vector.load %arg14[%c0_110, %c0_111] : memref<768x256xbf16, #tpu.memory_space<vmem>>, vector<768x256xbf16>
    %cst_112 = arith.constant dense<0.000000e+00> : vector<2x256xf32>
    %217 = tpu.matmul %215, %216, %cst_112 {dimension_numbers = #tpu.dot_dimension_numbers<[1], [0], [0], [1], [0, 0, 1, 1], [], []>} : vector<2x768xbf16>, vector<768x256xbf16>, vector<2x256xf32> -> vector<2x256xf32>
    %c0_113 = arith.constant 0 : index
    %c0_114 = arith.constant 0 : index
    %218 = vector.load %arg15[%c0_113, %c0_114] : memref<1x256xf32, #tpu.memory_space<vmem>>, vector<1x256xf32>
    %219 = vector.broadcast %218 : vector<1x256xf32> to vector<2x256xf32>
    %220 = arith.addf %217, %219 : vector<2x256xf32>
    %cst_115 = arith.constant 0.000000e+00 : f32
    %221 = vector.broadcast %cst_115 : f32 to vector<2x256xf32>
    %222 = arith.maximumf %220, %221 : vector<2x256xf32>
    %c0_116 = arith.constant 0 : index
    %c0_117 = arith.constant 0 : index
    %c0_118 = arith.constant 0 : index
    %223 = vector.load %arg4[%c0_116, %c0_117, %c0_118] : memref<1x2x4xf32, #tpu.memory_space<vmem>>, vector<1x2x4xf32>
    %224 = vector.shape_cast %223 : vector<1x2x4xf32> to vector<2x4xf32>
    %c0_119 = arith.constant 0 : index
    %c0_120 = arith.constant 0 : index
    %225 = vector.load %arg16[%c0_119, %c0_120] : memref<1x4xf32, #tpu.memory_space<vmem>>, vector<1x4xf32>
    %226 = vector.broadcast %225 : vector<1x4xf32> to vector<2x4xf32>
    %227 = arith.mulf %224, %226 : vector<2x4xf32>
    %cst_121 = arith.constant dense<0.000000e+00> : vector<2xf32>
    %228 = vector.multi_reduction <add>, %227, %cst_121 [1] : vector<2x4xf32> to vector<2xf32>
    %229 = vector.shape_cast %228 : vector<2xf32> to vector<2x1xf32>
    %c0_122 = arith.constant 0 : index
    %c0_123 = arith.constant 0 : index
    %230 = vector.load %arg17[%c0_122, %c0_123] : memref<1x256xf32, #tpu.memory_space<vmem>>, vector<1x256xf32>
    %231 = vector.broadcast %230 : vector<1x256xf32> to vector<2x256xf32>
    %232 = arith.mulf %222, %231 : vector<2x256xf32>
    %cst_124 = arith.constant dense<0.000000e+00> : vector<2xf32>
    %233 = vector.multi_reduction <add>, %232, %cst_124 [1] : vector<2x256xf32> to vector<2xf32>
    %234 = vector.shape_cast %233 : vector<2xf32> to vector<2x1xf32>
    %235 = arith.addf %229, %234 : vector<2x1xf32>
    %c0_125 = arith.constant 0 : index
    %c0_126 = arith.constant 0 : index
    %c0_127 = arith.constant 0 : index
    %236 = vector.load %arg18[%c0_125, %c0_126, %c0_127] : memref<1x2x1xf32, #tpu.memory_space<vmem>>, vector<1x2x1xf32>
    %237 = vector.shape_cast %236 : vector<1x2x1xf32> to vector<2x1xf32>
    %238 = vector.shape_cast %235 : vector<2x1xf32> to vector<1x2x1xf32>
    tpu.vector_store %arg18[%c0_125, %c0_126, %c0_127], %238 {strides = array<i32>} : memref<1x2x1xf32, #tpu.memory_space<vmem>>, vector<1x2x1xf32>,
    return
  }
  func.func @transform_0(%arg0: i32) -> (i32, i32, i32) {
    %c0_i32 = arith.constant 0 : i32
    %c0_i32_0 = arith.constant 0 : i32
    %c0_i32_1 = arith.constant 0 : i32
    return %arg0, %c0_i32, %c0_i32_0 : i32, i32, i32
  }
  func.func @transform_1(%arg0: i32) -> (i32, i32, i32) {
    %c0_i32 = arith.constant 0 : i32
    %c0_i32_0 = arith.constant 0 : i32
    %c0_i32_1 = arith.constant 0 : i32
    return %arg0, %c0_i32, %c0_i32_0 : i32, i32, i32
  }
  func.func @transform_2(%arg0: i32) -> (i32, i32, i32) {
    %c0_i32 = arith.constant 0 : i32
    %c0_i32_0 = arith.constant 0 : i32
    %c0_i32_1 = arith.constant 0 : i32
    return %arg0, %c0_i32, %c0_i32_0 : i32, i32, i32
  }
  func.func @transform_3(%arg0: i32) -> (i32, i32, i32) {
    %c0_i32 = arith.constant 0 : i32
    %c0_i32_0 = arith.constant 0 : i32
    %c0_i32_1 = arith.constant 0 : i32
    return %arg0, %c0_i32, %c0_i32_0 : i32, i32, i32
  }
  func.func @transform_4(%arg0: i32) -> (i32, i32) {
    %c0_i32 = arith.constant 0 : i32
    %c0_i32_0 = arith.constant 0 : i32
    %c0_i32_1 = arith.constant 0 : i32
    return %c0_i32, %c0_i32_0 : i32, i32
  }
  func.func @transform_5(%arg0: i32) -> (i32, i32) {
    %c0_i32 = arith.constant 0 : i32
    %c0_i32_0 = arith.constant 0 : i32
    %c0_i32_1 = arith.constant 0 : i32
    return %c0_i32, %c0_i32_0 : i32, i32
  }
  func.func @transform_6(%arg0: i32) -> (i32, i32, i32) {
    %c0_i32 = arith.constant 0 : i32
    %c0_i32_0 = arith.constant 0 : i32
    %c0_i32_1 = arith.constant 0 : i32
    %c0_i32_2 = arith.constant 0 : i32
    return %c0_i32, %c0_i32_0, %c0_i32_1 : i32, i32, i32
  }
  func.func @transform_7(%arg0: i32) -> (i32, i32, i32) {
    %c0_i32 = arith.constant 0 : i32
    %c0_i32_0 = arith.constant 0 : i32
    %c0_i32_1 = arith.constant 0 : i32
    %c0_i32_2 = arith.constant 0 : i32
    return %c0_i32, %c0_i32_0, %c0_i32_1 : i32, i32, i32
  }
  func.func @transform_8(%arg0: i32) -> (i32, i32, i32) {
    %c0_i32 = arith.constant 0 : i32
    %c0_i32_0 = arith.constant 0 : i32
    %c0_i32_1 = arith.constant 0 : i32
    %c0_i32_2 = arith.constant 0 : i32
    return %c0_i32, %c0_i32_0, %c0_i32_1 : i32, i32, i32
  }
  func.func @transform_9(%arg0: i32) -> (i32, i32, i32) {
    %c0_i32 = arith.constant 0 : i32
    %c0_i32_0 = arith.constant 0 : i32
    %c0_i32_1 = arith.constant 0 : i32
    %c0_i32_2 = arith.constant 0 : i32
    return %c0_i32, %c0_i32_0, %c0_i32_1 : i32, i32, i32
  }
  func.func @transform_10(%arg0: i32) -> (i32, i32, i32) {
    %c0_i32 = arith.constant 0 : i32
    %c0_i32_0 = arith.constant 0 : i32
    %c0_i32_1 = arith.constant 0 : i32
    %c0_i32_2 = arith.constant 0 : i32
    return %c0_i32, %c0_i32_0, %c0_i32_1 : i32, i32, i32
  }
  func.func @transform_11(%arg0: i32) -> (i32, i32, i32) {
    %c0_i32 = arith.constant 0 : i32
    %c0_i32_0 = arith.constant 0 : i32
    %c0_i32_1 = arith.constant 0 : i32
    %c0_i32_2 = arith.constant 0 : i32
    return %c0_i32, %c0_i32_0, %c0_i32_1 : i32, i32, i32
  }
  func.func @transform_12(%arg0: i32) -> (i32, i32, i32) {
    %c0_i32 = arith.constant 0 : i32
    %c0_i32_0 = arith.constant 0 : i32
    %c0_i32_1 = arith.constant 0 : i32
    %c0_i32_2 = arith.constant 0 : i32
    return %c0_i32, %c0_i32_0, %c0_i32_1 : i32, i32, i32
  }
  func.func @transform_13(%arg0: i32) -> (i32, i32) {
    %c0_i32 = arith.constant 0 : i32
    %c0_i32_0 = arith.constant 0 : i32
    %c0_i32_1 = arith.constant 0 : i32
    return %c0_i32, %c0_i32_0 : i32, i32
  }
  func.func @transform_14(%arg0: i32) -> (i32, i32) {
    %c0_i32 = arith.constant 0 : i32
    %c0_i32_0 = arith.constant 0 : i32
    %c0_i32_1 = arith.constant 0 : i32
    return %c0_i32, %c0_i32_0 : i32, i32
  }
  func.func @transform_15(%arg0: i32) -> (i32, i32) {
    %c0_i32 = arith.constant 0 : i32
    %c0_i32_0 = arith.constant 0 : i32
    %c0_i32_1 = arith.constant 0 : i32
    return %c0_i32, %c0_i32_0 : i32, i32
  }
  func.func @transform_16(%arg0: i32) -> (i32, i32) {
    %c0_i32 = arith.constant 0 : i32
    %c0_i32_0 = arith.constant 0 : i32
    %c0_i32_1 = arith.constant 0 : i32
    return %c0_i32, %c0_i32_0 : i32, i32
  }
  func.func @transform_17(%arg0: i32) -> (i32, i32, i32) {
    %c0_i32 = arith.constant 0 : i32
    %c0_i32_0 = arith.constant 0 : i32
    %c0_i32_1 = arith.constant 0 : i32
    return %arg0, %c0_i32, %c0_i32_0 : i32, i32, i32
  }
}

</mosaic_0001>

<bundles_post_ra>
// kernel: crc_gat_surv_forward.1
= control target key start
LH: loop header
LB: loop body
LE: loop exit
PB: predicated region body
PF: predicated region fallthrough
CT: control target
= control target key end

     0   :  { %s8731_s0 = inlined_call_operand.vmem [shape: bf16[2,64,128], index: 0, kind: input, shape index: {}]   ;;  %s8732_s1 = inlined_call_operand.hbm [shape: f32[2,64,64], index: 1, kind: input, shape index: {}]   ;;  %s8733_s2 = inlined_call_operand.hbm [shape: f32[2,2,64], index: 2, kind: input, shape index: {}]   ;;  %s8734_s3 = inlined_call_operand.hbm [shape: f32[2,2,4], index: 3, kind: input, shape index: {}]   ;;  %s8735_s4 = inlined_call_operand.hbm [shape: bf16[128,256], index: 4, kind: input, shape index: {}]   ;;  %s8736_s5 = inlined_call_operand.hbm [shape: f32[1,256], index: 5, kind: input, shape index: {}]   ;;  %s8737_s6 = inlined_call_operand.vmem [shape: bf16[2,256,256], index: 6, kind: input, shape index: {}]   ;;  %s8738_s7 = inlined_call_operand.hbm [shape: bf16[2,2,256], index: 7, kind: input, shape index: {}]   ;;  %s8739_s8 = inlined_call_operand.vmem [shape: bf16[2,256,2], index: 8, kind: input, shape index: {}]   ;;  %s8740_s9 = inlined_call_operand.hbm [shape: f32[2,1,256], index: 9, kind: input, shape index: {}]   ;;  %s8741_s10 = inlined_call_operand.hbm [shape: f32[2,1,256], index: 10, kind: input, shape index: {}]   ;;  %s8742_s11 = inlined_call_operand.hbm [shape: f32[2,1,256], index: 11, kind: input, shape index: {}]   ;;  %s8743_s12 = inlined_call_operand.hbm [shape: f32[2,1,256], index: 12, kind: input, shape index: {}]   ;;  %s8744_s13 = inlined_call_operand.hbm [shape: bf16[768,256], index: 13, kind: input, shape index: {}]   ;;  %s8745_s14 = inlined_call_operand.hbm [shape: f32[1,256], index: 14, kind: input, shape index: {}]   ;;  %s8746_s15 = inlined_call_operand.hbm [shape: f32[1,4], index: 15, kind: input, shape index: {}]   ;;  %s8747_s16 = inlined_call_operand.hbm [shape: f32[1,256], index: 16, kind: input, shape index: {}]   ;;  %s8748_s17 = inlined_call_operand.vmem [shape: f32[2,2,1], index: 17, kind: output, shape index: {}]  }
   0x1   :  { %8799 = sst [smem:[#allocation37_spill]] %s8731_s0 }
   0x2   :  { %8800 = sst [smem:[#allocation38_spill]] %s8732_s1 }
   0x3   :  { %8801 = sst [smem:[#allocation39_spill]] %s8733_s2 }
   0x4   :  { %8802 = sst [smem:[#allocation40_spill]] %s8735_s4 }
   0x5   :  { %8803 = sst [smem:[#allocation41_spill]] %s8736_s5 }
   0x6   :  { %8804 = sst [smem:[#allocation42_spill]] %s8737_s6 }
   0x7   :  { %8805 = sst [smem:[#allocation43_spill]] %s8738_s7 }
   0x8   :  { %8806 = sst [smem:[#allocation44_spill]] %s8739_s8 }
   0x9   :  { %8807 = sst [smem:[#allocation45_spill]] %s8740_s9 }
   0xa   :  { %8808 = sst [smem:[#allocation46_spill]] %s8741_s10 }
   0xb   :  { %8809 = sst [smem:[#allocation47_spill]] %s8742_s11 }
   0xc   :  { %8810 = sst [smem:[#allocation48_spill]] %s8743_s12 }
   0xd   :  { %8811 = sst [smem:[#allocation49_spill]] %s8744_s13 }
   0xe   :  { %8812 = sst [smem:[#allocation50_spill]] %s8745_s14 }
   0xf   :  { %8813 = sst [smem:[#allocation51_spill]] %s8746_s15 }
  0x10   :  { %8814 = sst [smem:[#allocation52_spill]] %s8747_s16 }
  0x11   :  { %8815 = sst [smem:[#allocation53_spill]] %s8748_s17 }
  0x12   :  { %22 = vsyncpa [#allocation5], 0 }
  0x13   :  { %24 = vsyncpa [#allocation5 + $0x1], 0 }
  0x14   :  { %25 = vsyncpa [#allocation7], 0 }
  0x15   :  { %27 = vsyncpa [#allocation7 + $0x1], 0 }
  0x16   :  { %28 = vsyncpa [#allocation10], 0 }
  0x17   :  { %29 = vsyncpa [#allocation13], 0 }
  0x18   :  { %30 = vsyncpa [#allocation16], 0 }
  0x19   :  { %31 = vsyncpa [#allocation19], 0 }
  0x1a   :  { %32 = vsyncpa [#allocation22], 0 }
  0x1b   :  { %33 = vsyncpa [#allocation25], 0  ;;  %s6730_s24 = smov 0   ;;  %s6732_s25 = smov 0  }
  0x1c   :  { %s6734_s26 = smov 0   ;;  %s6736_s27 = smov 0  }
  0x1d LB: > { %s6619_s28 = smov [#allocation9]   ;;  %s6751_s0 = sadd.s32 4294967295, %s6617_s27   ;;  %s6617_s27 = sphi %s6736_s27, %s8895_s27   ;;  %s6613_s26 = sphi %s6734_s26, %s8894_s26   ;;  %s6609_s25 = sphi %s6732_s25, %s8893_s25   ;;  %s6605_s24 = sphi %s6730_s24, %s8892_s24  }
  0x1e   : > { %s459_s29 = sshll.u32 %s6619_s28, 4  ;;  %p4986_p0 = scmp.ge.s32.totalorder %s6617_s27, 1  ;;  %s6756_s29 = int_to_ptr.vmem [resolvable:$true] %s459_s29 }
  0x1f   : > { %p8758_p1 = scmp.eq.s32.totalorder %s6751_s0, 0  ;;  %p447_p2 = scmp.lt.s32.totalorder %s6617_s27, 3 }
  0x20   : > { %s6620_s18 = smov [#allocation12]   ;;  %s6621_s20 = smov [#allocation15]  }
  0x21   : > { %p6758_p3 = pnand %p4986_p0, %p447_p2  ;;  %s486_s19 = sshll.u32 %s6620_s18, 4  ;;  %s6770_s19 = int_to_ptr.vmem [resolvable:$true] %s486_s19 }
  0x22   : > { %s6772_s21 = sshll.u32 %s6621_s20, 4  ;;  %s8819_s4 = sld [smem:[#allocation40_spill]]  ;;  %s516_s21 = int_to_ptr.vmem [resolvable:$true] %s6772_s21 }
  0x23   : > { %s8816_s30 = scalar_select %p6758_p3, 1, 0 }
  0x24   : > { %p5562_p4 = pneg %p6758_p3 }
  0x25   : > { %8817 = sst [smem:[#allocation34_spill]] %s8816_s30 }
  0x26   : > { %p6766_p5 = pnand %p5562_p4, %p8758_p1 }
  0x28   : > { %s8818_s1 = scalar_select %p6766_p5, 1, 0 }
  0x29   : > { %s6157_s28 = scalar_lea.hbm %s8819_s4, 2048  ;;  %p6782_p7 = pneg %p6766_p5 }
  0x2a   : > { %p6158_p6 = scmp.ne.s32.totalorder %s8819_s4, %s6157_s28  ;;  %p6164_p10 = scmp.lt.u32.totalorder %s6157_s28, %s8819_s4 }
  0x2b   : > { %s8820_s18 = scalar_select %p6782_p7, 1, 0 }
  0x2c   : > { %p6160_p8 = pnand %p6782_p7, %p6158_p6 }
  0x2e   : > { %p6161_p9 = pneg %p6160_p8 }
  0x30   : > { %p6166_p11 = pnand %p6164_p10, %p6161_p9 }
  0x32   : > { %6169 = shalt.err (!%p6166_p11)
}
  0x33   : > { %s6170_s8 = scalar_lea.vmem %s6756_s29, 2048  ;;  %p6178_p2 = scmp.lt.s32.totalorder %s6756_s29, %s6756_s29 }
  0x34   : > { %p6171_p12 = scmp.ne.s32.totalorder %s6756_s29, %s6170_s8  ;;  %p6179_p4 = scmp.lt.s32.totalorder %s6170_s8, %s6170_s8 }
  0x36   : > { %p6173_p13 = pnand %p6171_p12, %p6782_p7  ;;  %p6180_p6 = por %p6179_p4, %p6178_p2 }
  0x38   : > { %p6174_p0 = pneg %p6173_p13 }
  0x3a   : > { %p6181_p8 = pnand %p6180_p6, %p6174_p0 }
  0x3c   : > { %6184 = shalt.err (!%p6181_p8)
}
  0x3d   : > { %s8756_s17 = smov 128   ;;  %s8760_s6 = smov 8  }
  0x3e   : > { %5565 = dma.hbm_to_vmem [thread:$0]  (!%p6766_p5), %s8819_s4, 2048, %s6756_s29, [#allocation10], %s8756_s17, %s8756_s17, %s8760_s6  }
  0x3f   : > { %s8821_s7 = sld [smem:[#allocation43_spill]] }
  0x45   : > { %s6185_s8 = scalar_lea.hbm %s8821_s7, 64 }
  0x46   : > { %p6186_p9 = scmp.ne.s32.totalorder %s8821_s7, %s6185_s8  ;;  %p6192_p12 = scmp.lt.u32.totalorder %s6185_s8, %s8821_s7 }
  0x48   : > { %p6188_p10 = pnand %p6186_p9, %p6782_p7 }
  0x4a   : > { %p6189_p11 = pneg %p6188_p10 }
  0x4c   : > { %p6194_p13 = pnand %p6192_p12, %p6189_p11 }
  0x4e   : > { %6197 = shalt.err (!%p6194_p13)
}
  0x4f   : > { %s6198_s29 = scalar_lea.vmem %s6770_s19, 64  ;;  %p6206_p6 = scmp.lt.s32.totalorder %s6770_s19, %s6770_s19 }
  0x50   : > { %p6199_p0 = scmp.ne.s32.totalorder %s6770_s19, %s6198_s29  ;;  %p6207_p8 = scmp.lt.s32.totalorder %s6198_s29, %s6198_s29 }
  0x52   : > { %p6201_p2 = pnand %p6199_p0, %p6782_p7  ;;  %p6208_p9 = por %p6207_p8, %p6206_p6 }
  0x54   : > { %p6202_p4 = pneg %p6201_p2 }
  0x56   : > { %p6209_p10 = pnand %p6208_p9, %p6202_p4 }
  0x58   : > { %6212 = shalt.err (!%p6209_p10)
}
  0x59   : > { %s8762_s16 = smov 32   ;;  %s8764_s13 = smov 2  }
  0x5a   : > { %5571 = dma.hbm_to_vmem [thread:$0]  (!%p6766_p5), %s8821_s7, 64, %s6770_s19, [#allocation13], %s8762_s16, %s8762_s16, %s8764_s13  }
  0x5b   : > { %s8822_s10 = sld [smem:[#allocation46_spill]] }
  0x61   : > { %s6213_s28 = scalar_lea.hbm %s8822_s10, 64 }
  0x62   : > { %p6214_p11 = scmp.ne.s32.totalorder %s8822_s10, %s6213_s28  ;;  %p6220_p0 = scmp.lt.u32.totalorder %s6213_s28, %s8822_s10 }
  0x64   : > { %p6216_p12 = pnand %p6214_p11, %p6782_p7 }
  0x66   : > { %p6217_p13 = pneg %p6216_p12 }
  0x68   : > { %p6222_p2 = pnand %p6220_p0, %p6217_p13 }
  0x6a   : > { %6225 = shalt.err (!%p6222_p2)
}
  0x6b   : > { %s6226_s15 = scalar_lea.vmem %s516_s21, 64  ;;  %p6234_p9 = scmp.lt.s32.totalorder %s516_s21, %s516_s21 }
  0x6c   : > { %p6227_p4 = scmp.ne.s32.totalorder %s516_s21, %s6226_s15  ;;  %p6235_p10 = scmp.lt.s32.totalorder %s6226_s15, %s6226_s15 }
  0x6e   : > { %p6229_p6 = pnand %p6227_p4, %p6782_p7  ;;  %p6236_p1 = por %p6235_p10, %p6234_p9 }
  0x70   : > { %p6230_p8 = pneg %p6229_p6 }
  0x72   : > { %p6237_p3 = pnand %p6236_p1, %p6230_p8 }
  0x74   : > { %6240 = shalt.err (!%p6237_p3)
}
  0x75   : > { %5577 = dma.hbm_to_vmem [thread:$0]  (!%p6766_p5), %s8822_s10, 64, %s516_s21, [#allocation16], %s8762_s16, %s8762_s16, %s8764_s13  }
  0x76   : > { %s6626_s30 = smov [#allocation18]   ;;  %s6627_s23 = smov [#allocation21]  }
  0x77   : > { %s541_s22 = sshll.u32 %s6626_s30, 4  ;;  %s568_s28 = sshll.u32 %s6627_s23, 4  ;;  %s542_s22 = int_to_ptr.vmem [resolvable:$true] %s541_s22  ;;  %s569_s28 = int_to_ptr.vmem [resolvable:$true] %s568_s28 }
  0x78   : > { %s8823_s12 = sld [smem:[#allocation48_spill]] }
  0x7e   : > { %s6241_s29 = scalar_lea.hbm %s8823_s12, 64 }
  0x7f   : > { %p6242_p1 = scmp.ne.s32.totalorder %s8823_s12, %s6241_s29  ;;  %p6248_p12 = scmp.lt.u32.totalorder %s6241_s29, %s8823_s12 }
  0x81   : > { %p6244_p3 = pnand %p6242_p1, %p6782_p7 }
  0x83   : > { %p6245_p11 = pneg %p6244_p3 }
  0x85   : > { %p6250_p13 = pnand %p6248_p12, %p6245_p11 }
  0x87   : > { %6253 = shalt.err (!%p6250_p13)
}
  0x88   : > { %s6254_s21 = scalar_lea.vmem %s542_s22, 64  ;;  %p6262_p6 = scmp.lt.s32.totalorder %s542_s22, %s542_s22 }
  0x89   : > { %p6255_p0 = scmp.ne.s32.totalorder %s542_s22, %s6254_s21  ;;  %p6263_p8 = scmp.lt.s32.totalorder %s6254_s21, %s6254_s21 }
  0x8b   : > { %p6257_p2 = pnand %p6255_p0, %p6782_p7  ;;  %p6264_p9 = por %p6263_p8, %p6262_p6 }
  0x8d   : > { %p6258_p4 = pneg %p6257_p2 }
  0x8f   : > { %p6265_p10 = pnand %p6264_p9, %p6258_p4 }
  0x91   : > { %6268 = shalt.err (!%p6265_p10)
}
  0x92   : > { %5583 = dma.hbm_to_vmem [thread:$0]  (!%p6766_p5), %s8823_s12, 64, %s542_s22, [#allocation19], %s8762_s16, %s8762_s16, %s8764_s13  }
  0x93   : > { %s8824_s14 = sld [smem:[#allocation50_spill]] }
  0x99   : > { %s6269_s23 = scalar_lea.hbm %s8824_s14, 32 }
  0x9a   : > { %p6270_p1 = scmp.ne.s32.totalorder %s8824_s14, %s6269_s23  ;;  %p6276_p12 = scmp.lt.u32.totalorder %s6269_s23, %s8824_s14 }
  0x9c   : > { %p6272_p3 = pnand %p6270_p1, %p6782_p7 }
  0x9e   : > { %p6273_p11 = pneg %p6272_p3 }
  0xa0   : > { %p6278_p13 = pnand %p6276_p12, %p6273_p11 }
  0xa2   : > { %6281 = shalt.err (!%p6278_p13)
}
  0xa3   : > { %s6282_s19 = scalar_lea.vmem %s569_s28, 32  ;;  %p6290_p6 = scmp.lt.s32.totalorder %s569_s28, %s569_s28 }
  0xa4   : > { %p6283_p0 = scmp.ne.s32.totalorder %s569_s28, %s6282_s19  ;;  %p6291_p8 = scmp.lt.s32.totalorder %s6282_s19, %s6282_s19 }
  0xa6   : > { %p6285_p2 = pnand %p6283_p0, %p6782_p7  ;;  %p6292_p9 = por %p6291_p8, %p6290_p6 }
  0xa8   : > { %p6286_p4 = pneg %p6285_p2 }
  0xaa   : > { %p6293_p10 = pnand %p6292_p9, %p6286_p4 }
  0xac   : > { %6296 = shalt.err (!%p6293_p10)
}
  0xad   : > { %5589 = dma.hbm_to_vmem [thread:$0]  (!%p6766_p5), %s8824_s14, 32, %s569_s28, [#allocation22]  }
  0xae   : > { %s6894_s4 = sadd.s32 1, %s6617_s27   ;;  %s72_s17 = sadd.s32 1, %s6613_s26 }
  0xaf   : > { %s69_s6 = ssub.s32 %s6617_s27, %s6894_s4  ;;  %p79_p3 = scmp.ne.s32.totalorder %s6613_s26, %s6609_s25 }
  0xb0   : > { %p70_p1 = scmp.eq.s32.totalorder %s69_s6, 0  ;;  %p80_p11 = scmp.eq.s32.totalorder %s6617_s27, 0 }
  0xb1   : > { %p85_p12 = scmp.ne.s32.totalorder %s6609_s25, %s6605_s24  ;;  %p8825_p0 = scmp.eq.s32.totalorder %s6751_s0, 0 }
  0xb2   : > { %s6905_s30 = scalar_select %p70_p1, %s6613_s26, %s72_s17  }
  0xb3   : > { %p81_p13 = por %p80_p11, %p79_p3  ;;  %p6909_p2 = por %p8825_p0, %p85_p12 }
  0xb4   : > { %p5617_p4 = scmp.lt.s32.totalorder %s6617_s27, 2  ;;  %s6915_s28 = sand.u32 1, %s6613_s26  }
  0xb5   : > { %s8826_s23 = scalar_select %p6909_p2, 1, 0 }
  0xb6   : > { %s630_s20 = sand.u32 1, %s6617_s27   ;;  %s8766_s8 = sshll.u32 %s6915_s28, 1 }
  0xb7   : > { %p6919_p6 = pnand %p5617_p4, %p81_p13  ;;  %s5003_s24 = sshll.u32 %s6617_s27, 5 }
  0xb8   : > { %s8828_s2 = sld [smem:[#allocation39_spill]]  ;;  %s634_s21 = scalar_lea.vmem [#allocation6], %s8766_s8 }
  0xb9   : > { %s8827_s29 = scalar_select %p6919_p6, 1, 0 }
  0xba   : > { %s641_s6 = sshll.u32 %s634_s21, 4  ;;  %s6936_s13 = scalar_lea.hbm %s8734_s3, %s5003_s24  ;;  %s6931_s6 = int_to_ptr.vmem [resolvable:$true] %s641_s6 }
  0xbb   : > { %s6938_s7 = scalar_lea.sflag [#allocation7], %s630_s20  ;;  %p6944_p9 = pneg %p6919_p6 }
  0xbd   : > { %s8829_s15 = scalar_select %p6944_p9, 1, 0 }
  0xbe   : > { %s6927_s22 = scalar_lea.hbm %s8828_s2, %s5003_s24  ;;  %s6302_s8 = scalar_lea.hbm %s8828_s2, 64 }
  0xbf   : > { %s6297_s10 = scalar_lea.hbm %s6927_s22, 32  ;;  %p6303_p3 = scmp.lt.u32.totalorder %s6927_s22, %s8828_s2 }
  0xc0   : > { %p6298_p8 = scmp.ne.s32.totalorder %s6927_s22, %s6297_s10  ;;  %p6304_p11 = scmp.lt.u32.totalorder %s6302_s8, %s6297_s10 }
  0xc1   : > { %p6306_p13 = scmp.lt.u32.totalorder %s6297_s10, %s6927_s22 }
  0xc2   : > { %p6300_p10 = pnand %p6944_p9, %p6298_p8  ;;  %p6305_p12 = por %p6304_p11, %p6303_p3 }
  0xc4   : > { %p6301_p1 = pneg %p6300_p10  ;;  %p6307_p0 = por %p6306_p13, %p6305_p12 }
  0xc6   : > { %p6308_p4 = pnand %p6307_p0, %p6301_p1 }
  0xc8   : > { %6311 = shalt.err (!%p6308_p4)
}
  0xc9   : > { %s6312_s20 = scalar_lea.vmem %s6931_s6, 32  ;;  %s6628_s17 = smov [#allocation6]  }
  0xca   : > { %p6313_p8 = scmp.ne.s32.totalorder %s6931_s6, %s6312_s20  ;;  %s6317_s19 = sshll.u32 %s6628_s17, 4  ;;  %s6318_s19 = int_to_ptr.vmem [resolvable:$false] %s6317_s19 }
  0xcb   : > { %s6319_s21 = scalar_lea.vmem %s6318_s19, 64  ;;  %p6320_p5 = scmp.lt.s32.totalorder %s6931_s6, %s6318_s19 }
  0xcc   : > { %p6315_p10 = pnand %p6313_p8, %p6944_p9  ;;  %p6321_p7 = scmp.lt.s32.totalorder %s6319_s21, %s6312_s20 }
  0xce   : > { %p6316_p2 = pneg %p6315_p10  ;;  %p6322_p3 = por %p6321_p7, %p6320_p5 }
  0xd0   : > { %p6323_p11 = pnand %p6322_p3, %p6316_p2 }
  0xd2   : > { %6326 = shalt.err (!%p6323_p11)
}
  0xd3   : > { %5602 = dma.hbm_to_vmem [thread:$0]  (!%p6919_p6), %s6927_s22, 32, %s6931_s6, %s6938_s7  }
  0xd4   : > { %s6629_s10 = smov [#allocation11]   ;;  %s6630_s16 = smov [#allocation14]  }
  0xd5   : > { %s473_s8 = sshll.u32 %s6629_s10, 4  ;;  %s502_s24 = sshll.u32 %s6630_s16, 4  ;;  %s474_s8 = int_to_ptr.vmem [resolvable:$true] %s473_s8  ;;  %s6968_s24 = int_to_ptr.vmem [resolvable:$true] %s502_s24 }
  0xd6   : > { %s8830_s5 = sld [smem:[#allocation41_spill]]  ;;  %p8831_p7 = scmp.ne.s32.totalorder %s8820_s18, 0 }
  0xdc   : > { %s6327_s20 = scalar_lea.hbm %s8830_s5, 32 }
  0xdd   : > { %p6328_p5 = scmp.ne.s32.totalorder %s8830_s5, %s6327_s20  ;;  %p6334_p12 = scmp.lt.u32.totalorder %s6327_s20, %s8830_s5 }
  0xdf   : > { %p6330_p2 = pnand %p6328_p5, %p8831_p7 }
  0xe1   : > { %p6331_p1 = pneg %p6330_p2 }
  0xe3   : > { %p6336_p13 = pnand %p6334_p12, %p6331_p1 }
  0xe5   : > { %6339 = shalt.err (!%p6336_p13)
}
  0xe6   : > { %s6340_s6 = scalar_lea.vmem %s474_s8, 32  ;;  %p6348_p10 = scmp.lt.s32.totalorder %s474_s8, %s474_s8 }
  0xe7   : > { %p6341_p0 = scmp.ne.s32.totalorder %s474_s8, %s6340_s6  ;;  %p6349_p3 = scmp.lt.s32.totalorder %s6340_s6, %s6340_s6 }
  0xe9   : > { %p6343_p4 = pnand %p6341_p0, %p8831_p7  ;;  %p6350_p11 = por %p6349_p3, %p6348_p10 }
  0xeb   : > { %p6344_p8 = pneg %p6343_p4 }
  0xed   : > { %p6351_p6 = pnand %p6350_p11, %p6344_p8 }
  0xef   : > { %6354 = shalt.err (!%p6351_p6)
}
  0xf0   : > { %p8832_p5 = scmp.ne.s32.totalorder %s8818_s1, 0  ;;  %s8833_s9 = sld [smem:[#allocation45_spill]] }
  0xf2   : > { %5568 = dma.hbm_to_vmem [thread:$0]  (!%p8832_p5), %s8830_s5, 32, %s474_s8, [#allocation10]  }
  0xf6   : > { %s6355_s17 = scalar_lea.hbm %s8833_s9, 64 }
  0xf7   : > { %p6356_p2 = scmp.ne.s32.totalorder %s8833_s9, %s6355_s17  ;;  %p6362_p6 = scmp.lt.u32.totalorder %s6355_s17, %s8833_s9 }
  0xf9   : > { %p6358_p1 = pnand %p6356_p2, %p8831_p7 }
  0xfb   : > { %p6359_p12 = pneg %p6358_p1 }
  0xfd   : > { %p6364_p13 = pnand %p6362_p6, %p6359_p12 }
  0xff   : > { %6367 = shalt.err (!%p6364_p13)
}
 0x100   : > { %s6368_s8 = scalar_lea.vmem %s6968_s24, 64  ;;  %p6376_p10 = scmp.lt.s32.totalorder %s6968_s24, %s6968_s24 }
 0x101   : > { %p6369_p0 = scmp.ne.s32.totalorder %s6968_s24, %s6368_s8  ;;  %p6377_p3 = scmp.lt.s32.totalorder %s6368_s8, %s6368_s8 }
 0x103   : > { %p6371_p4 = pnand %p6369_p0, %p8831_p7  ;;  %p6378_p11 = por %p6377_p3, %p6376_p10 }
 0x105   : > { %p6372_p8 = pneg %p6371_p4 }
 0x107   : > { %p6379_p2 = pnand %p6378_p11, %p6372_p8 }
 0x109   : > { %6382 = shalt.err (!%p6379_p2)
}
 0x10a   : > { %s8834_s6 = smov 2   ;;  %s8835_s2 = smov 32  }
 0x10b   : > { %5574 = dma.hbm_to_vmem [thread:$0]  (!%p8832_p5), %s8833_s9, 64, %s6968_s24, [#allocation13], %s8835_s2, %s8835_s2, %s8834_s6  }
 0x10c   : > { %s6631_s16 = smov [#allocation17]   ;;  %s6632_s19 = smov [#allocation20]  }
 0x10d   : > { %s528_s17 = sshll.u32 %s6631_s16, 4  ;;  %s554_s20 = sshll.u32 %s6632_s19, 4  ;;  %s529_s17 = int_to_ptr.vmem [resolvable:$true] %s528_s17  ;;  %s7014_s20 = int_to_ptr.vmem [resolvable:$true] %s554_s20 }
 0x10e   : > { %s8836_s11 = sld [smem:[#allocation47_spill]] }
 0x114   : > { %s6383_s8 = scalar_lea.hbm %s8836_s11, 64 }
 0x115   : > { %p6384_p1 = scmp.ne.s32.totalorder %s8836_s11, %s6383_s8  ;;  %p6390_p13 = scmp.lt.u32.totalorder %s6383_s8, %s8836_s11 }
 0x117   : > { %p6386_p12 = pnand %p6384_p1, %p8831_p7 }
 0x119   : > { %p6387_p6 = pneg %p6386_p12 }
 0x11b   : > { %p6392_p0 = pnand %p6390_p13, %p6387_p6 }
 0x11d   : > { %6395 = shalt.err (!%p6392_p0)
}
 0x11e   : > { %s6396_s12 = scalar_lea.vmem %s529_s17, 64  ;;  %p6404_p3 = scmp.lt.s32.totalorder %s529_s17, %s529_s17 }
 0x11f   : > { %p6397_p4 = scmp.ne.s32.totalorder %s529_s17, %s6396_s12  ;;  %p6405_p11 = scmp.lt.s32.totalorder %s6396_s12, %s6396_s12 }
 0x121   : > { %p6399_p8 = pnand %p6397_p4, %p8831_p7  ;;  %p6406_p2 = por %p6405_p11, %p6404_p3 }
 0x123   : > { %p6400_p10 = pneg %p6399_p8 }
 0x125   : > { %p6407_p9 = pnand %p6406_p2, %p6400_p10 }
 0x127   : > { %6410 = shalt.err (!%p6407_p9)
}
 0x128   : > { %5580 = dma.hbm_to_vmem [thread:$0]  (!%p8832_p5), %s8836_s11, 64, %s529_s17, [#allocation16], %s8835_s2, %s8835_s2, %s8834_s6  }
 0x129   : > { %s8837_s21 = sld [smem:[#allocation49_spill]] }
 0x12f   : > { %s6411_s22 = scalar_lea.hbm %s8837_s21, 12288 }
 0x130   : > { %p6412_p1 = scmp.ne.s32.totalorder %s8837_s21, %s6411_s22  ;;  %p6418_p6 = scmp.lt.u32.totalorder %s6411_s22, %s8837_s21 }
 0x132   : > { %p6414_p9 = pnand %p6412_p1, %p8831_p7 }
 0x134   : > { %p6415_p12 = pneg %p6414_p9 }
 0x136   : > { %p6420_p13 = pnand %p6418_p6, %p6415_p12 }
 0x138   : > { %6423 = shalt.err (!%p6420_p13)
}
 0x139   : > { %s6424_s6 = scalar_lea.vmem %s7014_s20, 12288  ;;  %p6432_p10 = scmp.lt.s32.totalorder %s7014_s20, %s7014_s20 }
 0x13a   : > { %p6425_p0 = scmp.ne.s32.totalorder %s7014_s20, %s6424_s6  ;;  %p6433_p3 = scmp.lt.s32.totalorder %s6424_s6, %s6424_s6 }
 0x13c   : > { %p6427_p4 = pnand %p6425_p0, %p8831_p7  ;;  %p6434_p11 = por %p6433_p3, %p6432_p10 }
 0x13e   : > { %p6428_p8 = pneg %p6427_p4 }
 0x140   : > { %p6435_p2 = pnand %p6434_p11, %p6428_p8 }
 0x142   : > { %6438 = shalt.err (!%p6435_p2)
}
 0x143   : > { %s8838_s2 = smov 8   ;;  %s8839_s17 = smov 128  }
 0x144   : > { %5586 = dma.hbm_to_vmem [thread:$0]  (!%p8832_p5), %s8837_s21, 12288, %s7014_s20, [#allocation19], %s8839_s17, %s8839_s17, %s8838_s2  }
 0x145   : > { %s6633_s16 = smov [#allocation23]   ;;  %s6634_s22 = smov [#allocation24]  }
 0x146   : > { %s579_s19 = sshll.u32 %s6633_s16, 4  ;;  %s590_s8 = sshll.u32 %s6634_s22, 4  ;;  %s580_s19 = int_to_ptr.vmem [resolvable:$true] %s579_s19  ;;  %s7063_s8 = int_to_ptr.vmem [resolvable:$true] %s590_s8 }
 0x147   : > { %s8840_s12 = sld [smem:[#allocation51_spill]] }
 0x14d   : > { %s6439_s6 = scalar_lea.hbm %s8840_s12, 16 }
 0x14e   : > { %p6440_p1 = scmp.ne.s32.totalorder %s8840_s12, %s6439_s6  ;;  %p6446_p6 = scmp.lt.u32.totalorder %s6439_s6, %s8840_s12 }
 0x150   : > { %p6442_p9 = pnand %p6440_p1, %p8831_p7 }
 0x152   : > { %p6443_p12 = pneg %p6442_p9 }
 0x154   : > { %p6448_p13 = pnand %p6446_p6, %p6443_p12 }
 0x156   : > { %6451 = shalt.err (!%p6448_p13)
}
 0x157   : > { %s6452_s14 = scalar_lea.vmem %s580_s19, 16  ;;  %s6459_s16 = scalar_lea.vmem %s580_s19, 32 }
 0x158   : > { %p6453_p0 = scmp.ne.s32.totalorder %s580_s19, %s6452_s14  ;;  %p6460_p10 = scmp.lt.s32.totalorder %s580_s19, %s580_s19 }
 0x159   : > { %p6461_p3 = scmp.lt.s32.totalorder %s6459_s16, %s6452_s14 }
 0x15a   : > { %p6455_p4 = pnand %p6453_p0, %p8831_p7 }
 0x15b   : > { %p6462_p11 = por %p6461_p3, %p6460_p10 }
 0x15c   : > { %p6456_p8 = pneg %p6455_p4 }
 0x15e   : > { %p6463_p2 = pnand %p6462_p11, %p6456_p8 }
 0x160   : > { %6466 = shalt.err (!%p6463_p2)
}
 0x161   : > { %5592 = dma.hbm_to_vmem [thread:$0]  (!%p8832_p5), %s8840_s12, 16, %s580_s19, [#allocation22]  }
 0x162   : > { %s8841_s24 = sld [smem:[#allocation52_spill]] }
 0x168   : > { %s8842_s6 = smov %s8841_s24  ;;  %s6467_s5 = scalar_lea.hbm %s8841_s24, 32 }
 0x169   : > { %p6468_p1 = scmp.ne.s32.totalorder %s8842_s6, %s6467_s5  ;;  %p6474_p6 = scmp.lt.u32.totalorder %s6467_s5, %s8842_s6 }
 0x16b   : > { %p6470_p9 = pnand %p6468_p1, %p8831_p7 }
 0x16d   : > { %p6471_p12 = pneg %p6470_p9 }
 0x16f   : > { %p6476_p13 = pnand %p6474_p6, %p6471_p12 }
 0x171   : > { %6479 = shalt.err (!%p6476_p13)
}
 0x172   : > { %s6480_s19 = scalar_lea.vmem %s7063_s8, 32  ;;  %p6488_p10 = scmp.lt.s32.totalorder %s7063_s8, %s7063_s8 }
 0x173   : > { %p6481_p0 = scmp.ne.s32.totalorder %s7063_s8, %s6480_s19  ;;  %p6489_p3 = scmp.lt.s32.totalorder %s6480_s19, %s6480_s19 }
 0x175   : > { %p6483_p4 = pnand %p6481_p0, %p8831_p7  ;;  %p6490_p11 = por %p6489_p3, %p6488_p10 }
 0x177   : > { %p6484_p8 = pneg %p6483_p4 }
 0x179   : > { %p6491_p2 = pnand %p6490_p11, %p6484_p8 }
 0x17b   : > { %6494 = shalt.err (!%p6491_p2)
}
 0x17c   : > { %5595 = dma.hbm_to_vmem [thread:$0]  (!%p8832_p5), %s8842_s6, 32, %s7063_s8, [#allocation25]  }
 0x17d   : > { %s4999_s18 = sshll.u32 %s6915_s28, 6  ;;  %s5324_s11 = sshll.u32 %s6617_s27, 10 }
 0x17e   : > { %s8843_s24 = sld [smem:[#allocation38_spill]]  ;;  %s613_s1 = scalar_lea.vmem [#allocation4], %s4999_s18 }
 0x17f   : > { %s620_s14 = sshll.u32 %s613_s1, 4  ;;  %s8845_s16 = sshll.u32 %s6915_s28, 1  ;;  %s7113_s14 = int_to_ptr.vmem [resolvable:$true] %s620_s14 }
 0x180   : > { %s7117_s19 = scalar_lea.vmem [#allocation8], %s8845_s16  ;;  %s610_s21 = scalar_lea.sflag [#allocation5], %s6915_s28 }
 0x181   : > { %s659_s8 = sshll.u32 %s7117_s19, 4  ;;  %p8846_p5 = scmp.ne.s32.totalorder %s8829_s15, 0  ;;  %s660_s8 = int_to_ptr.vmem [resolvable:$true] %s659_s8 }
 0x184   : > { %s8844_s5 = smov %s8843_s24  ;;  %s7111_s20 = scalar_lea.hbm %s8843_s24, %s5324_s11 }
 0x185   : > { %s6495_s27 = scalar_lea.hbm %s7111_s20, 1024  ;;  %s6500_s22 = scalar_lea.hbm %s8844_s5, 2048 }
 0x186   : > { %p6496_p7 = scmp.ne.s32.totalorder %s7111_s20, %s6495_s27  ;;  %p6501_p12 = scmp.lt.u32.totalorder %s7111_s20, %s8844_s5 }
 0x187   : > { %p6502_p6 = scmp.lt.u32.totalorder %s6500_s22, %s6495_s27  ;;  %p6504_p0 = scmp.lt.u32.totalorder %s6495_s27, %s7111_s20 }
 0x188   : > { %p6498_p1 = pnand %p6496_p7, %p8846_p5 }
 0x189   : > { %p6503_p13 = por %p6502_p6, %p6501_p12 }
 0x18a   : > { %p6499_p9 = pneg %p6498_p1 }
 0x18b   : > { %p6505_p4 = por %p6504_p0, %p6503_p13 }
 0x18d   : > { %p6506_p8 = pnand %p6505_p4, %p6499_p9 }
 0x18f   : > { %6509 = shalt.err (!%p6506_p8)
}
 0x190   : > { %s6510_s24 = scalar_lea.vmem %s7113_s14, 1024  ;;  %s6635_s1 = smov [#allocation4]  }
 0x191   : > { %p6511_p10 = scmp.ne.s32.totalorder %s7113_s14, %s6510_s24  ;;  %s6515_s16 = sshll.u32 %s6635_s1, 4  ;;  %s6516_s16 = int_to_ptr.vmem [resolvable:$false] %s6515_s16 }
 0x192   : > { %s6517_s9 = scalar_lea.vmem %s6516_s16, 2048  ;;  %p6518_p2 = scmp.lt.s32.totalorder %s7113_s14, %s6516_s16 }
 0x193   : > { %p6513_p3 = pnand %p6511_p10, %p8846_p5  ;;  %p6519_p7 = scmp.lt.s32.totalorder %s6517_s9, %s6510_s24 }
 0x195   : > { %p6514_p11 = pneg %p6513_p3  ;;  %p6520_p1 = por %p6519_p7, %p6518_p2 }
 0x197   : > { %p6521_p12 = pnand %p6520_p1, %p6514_p11 }
 0x199   : > { %6524 = shalt.err (!%p6521_p12)
}
 0x19a   : > { %p8847_p9 = scmp.ne.s32.totalorder %s8827_s29, 0  ;;  %s6525_s27 = scalar_lea.hbm %s6936_s13, 32 }
 0x19b   : > { %p6526_p6 = scmp.ne.s32.totalorder %s6936_s13, %s6525_s27  ;;  %s6530_s28 = scalar_lea.hbm %s8734_s3, 64 }
 0x19c   : > { %5599 = dma.hbm_to_vmem [thread:$0]  (!%p8847_p9), %s7111_s20, 1024, %s7113_s14, %s610_s21, %s8839_s17, %s8839_s17, %s8838_s2  }
 0x19d   : > { %p6528_p13 = pnand %p6526_p6, %p8846_p5  ;;  %p6531_p4 = scmp.lt.u32.totalorder %s6936_s13, %s8734_s3 }
 0x19e   : > { %p6532_p8 = scmp.lt.u32.totalorder %s6530_s28, %s6525_s27  ;;  %p6534_p3 = scmp.lt.u32.totalorder %s6525_s27, %s6936_s13 }
 0x19f   : > { %p6529_p0 = pneg %p6528_p13 }
 0x1a0   : > { %p6533_p10 = por %p6532_p8, %p6531_p4 }
 0x1a2   : > { %p6535_p11 = por %p6534_p3, %p6533_p10 }
 0x1a4   : > { %p6536_p2 = pnand %p6535_p11, %p6529_p0 }
 0x1a6   : > { %6539 = shalt.err (!%p6536_p2)
}
 0x1a7   : > { %s6540_s2 = scalar_lea.vmem %s660_s8, 32  ;;  %s6636_s17 = smov [#allocation8]  }
 0x1a8   : > { %p6541_p7 = scmp.ne.s32.totalorder %s660_s8, %s6540_s2  ;;  %s6545_s20 = sshll.u32 %s6636_s17, 4  ;;  %s6546_s20 = int_to_ptr.vmem [resolvable:$false] %s6545_s20 }
 0x1a9   : > { %s6547_s14 = scalar_lea.vmem %s6546_s20, 64  ;;  %p6548_p6 = scmp.lt.s32.totalorder %s660_s8, %s6546_s20 }
 0x1aa   : > { %p6543_p1 = pnand %p6541_p7, %p8846_p5  ;;  %p6549_p13 = scmp.lt.s32.totalorder %s6547_s14, %s6540_s2 }
 0x1ac   : > { %p6544_p12 = pneg %p6543_p1  ;;  %p6550_p9 = por %p6549_p13, %p6548_p6 }
 0x1ae   : > { %p6551_p4 = pnand %p6550_p9, %p6544_p12 }
 0x1b0   : > { %6554 = shalt.err (!%p6551_p4)
}
 0x1b1   : > { %p8848_p8 = scmp.ne.s32.totalorder %s8827_s29, 0  ;;  %s8849_s19 = sld [smem:[#allocation34_spill]] }
 0x1b3   : > { %5605 = dma.hbm_to_vmem [thread:$0]  (!%p8848_p8), %s6936_s13, 32, %s660_s8, %s6938_s7  }
 0x1b7   : > { %p8850_p0 = scmp.ne.s32.totalorder %s8849_s19, 0 }
 0x1b9   : > { %668 = sbr.rel (%p8850_p0) target bundleno = 3952 (0xf70), region = 88 }
 0x1c0   : > { %s670_s15 = sand.u32 1, %s6609_s25   ;;  %p8851_p5 = scmp.ne.s32.totalorder %s8826_s23, 0 }
 0x1c1   : > { %s5007_s21 = sshll.u32 %s670_s15, 6  ;;  %s671_s24 = scalar_lea.sflag [#allocation5], %s670_s15 }
 0x1c2   : > { %s7170_s1 = scalar_lea.vmem [#allocation4], %s5007_s21 }
 0x1c3   : > { %6572 = dma.done.wait (%p8851_p5), %s671_s24, 1024  }
 0x1c4   : > { %6574 = vsyncadd (%p8851_p5), %s671_s24, 4294966272  ;;  %s679_s29 = sand.u32 1, %s6751_s0   ;;  %s5008_s16 = sshll.u32 %s670_s15, 1 }
 0x1c5   : > { %s680_s7 = scalar_lea.sflag [#allocation7], %s679_s29  ;;  %s7177_s13 = scalar_lea.vmem [#allocation6], %s5008_s16 }
 0x1c6   : > { %6576 = dma.done.wait (%p8851_p5), %s680_s7, 64  }
 0x1c7   : > { %6578 = vsyncadd (%p8851_p5), %s680_s7, 4294967232  ;;  %s7183_s8 = scalar_lea.vmem [#allocation8], %s5008_s16  ;;  %p8852_p9 = scmp.eq.s32.totalorder %s6751_s0, 0 }
 0x1c9   : > { %6580 = dma.done.wait (%p8852_p9), [#allocation10], 2080   ;;  %p8853_p10 = pmov %p8852_p9 }
 0x1ca   : > { %p8854_p3 = pmov %p8852_p9 }
 0x1cb   : > { %6582 = vsyncadd (%p8853_p10), [#allocation10], 4294965216 }
 0x1cc   : > { %6584 = dma.done.wait (%p8854_p3), [#allocation13], 128   ;;  %p8855_p11 = pmov %p8854_p3 }
 0x1cd   : > { %p8856_p2 = pmov %p8854_p3 }
 0x1ce   : > { %6586 = vsyncadd (%p8855_p11), [#allocation13], 4294967168 }
 0x1cf   : > { %6588 = dma.done.wait (%p8856_p2), [#allocation16], 128   ;;  %p8857_p7 = pmov %p8856_p2 }
 0x1d0   : > { %p8858_p1 = pmov %p8856_p2 }
 0x1d1   : > { %6590 = vsyncadd (%p8857_p7), [#allocation16], 4294967168 }
 0x1d2   : > { %6592 = dma.done.wait (%p8858_p1), [#allocation19], 12352   ;;  %p8859_p12 = pmov %p8858_p1 }
 0x1d3   : > { %p8860_p6 = pmov %p8858_p1 }
 0x1d4   : > { %6594 = vsyncadd (%p8859_p12), [#allocation19], 4294954944 }
 0x1d5   : > { %6596 = dma.done.wait (%p8860_p6), [#allocation22], 48   ;;  %p8861_p13 = pmov %p8858_p1 }
 0x1d6   : > { %p8862_p4 = pmov %p8858_p1 }
 0x1d7   : > { %6598 = vsyncadd (%p8861_p13), [#allocation22], 4294967248 }
 0x1d8   : > { %6600 = dma.done.wait (%p8862_p4), [#allocation25], 32   ;;  %p8863_p8 = pmov %p8858_p1 }
 0x1d9   : > { %v8781_v0 = vmov 0   ;;  %p801_p0 = scmp.lt.s32.totalorder %s6751_s0, 1  ;;  %v5689_v1 = vld [vmem:[#allocation9 + $0x4] ss:$8 sps:$4 sm:$0xff]   ;;  %v5691_v2 = vld [vmem:[#allocation9] ss:$8 sps:$4 sm:$0xff]   ;;  %v837_v53 = vlaneseq }
 0x1da   : > { %6602 = vsyncadd (%p8863_p8), [#allocation25], 4294967264  ;;  %983 = vmatprep.mubr.bf16.mxu1 %v8781_v0  ;;  %5679 = vset.pattern.permute.xlu0 %v8781_v0  ;;  %v5692_v3 = vld [vmem:[#allocation9 + $0x14] ss:$8 sps:$4 sm:$0xff]   ;;  %v5694_v4 = vld [vmem:[#allocation9 + $0x10] ss:$8 sps:$4 sm:$0xff]  }
 0x1db   : > { %5681 = vset.pattern.permute.xlu1 %v8781_v0  ;;  %951 = vmatprep.subr.bf16.mxu1 %v5689_v1  ;;  %s8897_s0 = smov (!%p801_p0, %s6751_s0), 1  ;;  %v5695_v5 = vld [vmem:[#allocation9 + $0x24] ss:$8 sps:$4 sm:$0xff]   ;;  %v5697_v6 = vld [vmem:[#allocation9 + $0x20] ss:$8 sps:$4 sm:$0xff]   ;;  %s8864_s11 = sld [smem:[#allocation37_spill]] }
 0x1dc   : > { %952 = vmatpush1.bf16.msra.mxu1 %v5691_v2  ;;  %s5325_s23 = sshll.u32 %s8897_s0, 5  ;;  %v5698_v7 = vld [vmem:[#allocation9 + $0x34] ss:$8 sps:$4 sm:$0xff]   ;;  %v5700_v8 = vld [vmem:[#allocation9 + $0x30] ss:$8 sps:$4 sm:$0xff]   ;;  %s8865_s18 = sld [smem:[#allocation42_spill]] }
 0x1dd   : > { %953 = vmatprep.subr.bf16.mxu1 %v5692_v3  ;;  %v5701_v9 = vld [vmem:[#allocation9 + $0x44] ss:$8 sps:$4 sm:$0xff]   ;;  %v5703_v10 = vld [vmem:[#allocation9 + $0x40] ss:$8 sps:$4 sm:$0xff]   ;;  %v5704_v11 = vld [vmem:[#allocation9 + $0x54] ss:$8 sps:$4 sm:$0xff]  }
 0x1de   : > { %v5706_v12 = vld [vmem:[#allocation9 + $0x50] ss:$8 sps:$4 sm:$0xff]   ;;  %v5707_v13 = vld [vmem:[#allocation9 + $0x64] ss:$8 sps:$4 sm:$0xff]   ;;  %v5709_v14 = vld [vmem:[#allocation9 + $0x60] ss:$8 sps:$4 sm:$0xff]  }
 0x1df   : > { %v5710_v15 = vld [vmem:[#allocation9 + $0x74] ss:$8 sps:$4 sm:$0xff]   ;;  %v5712_v16 = vld [vmem:[#allocation9 + $0x70] ss:$8 sps:$4 sm:$0xff]   ;;  %v6638_v54 = vmov 1966171168  }
 0x1e0   : > { %954 = vmatpush1.bf16.msra.mxu1 %v5694_v4  ;;  %v1356_v55 = vunpack.c.l.s4 %v6638_v54  ;;  %v838_v56 = vshrl.u32 %v837_v53, 7  ;;  %v7325_v57 = vld.sshfl [vmem:[#allocation12] sm:$0x11 pattern:$0x75316420]  ;;  %vm1688_vm1 = vcmask 523264  }
 0x1e1   : > { %955 = vmatprep.subr.bf16.mxu1 %v5695_v5  ;;  %s7220_s22 = scalar_lea.vmem %s8864_s11, %s5325_s23  ;;  %v1354_v59 = vcombine.high %v7325_v57, %v7325_v57  ;;  %v835_v63 = vld [vmem:[#allocation11] sm:$0x3]  ;;  %s8867_s23 = sld [smem:[#allocation44_spill]] }
 0x1e2   : > { %v5719_v17 = vld [vmem:[%s8865_s18 + $0x4] ss:$8 sps:$4 sm:$0xff]   ;;  %v5717_v19 = vld [vmem:[%s8865_s18] ss:$8 sps:$4 sm:$0xff]   ;;  %v5722_v20 = vld [vmem:[%s8865_s18 + $0x14] ss:$8 sps:$4 sm:$0xff]   ;;  %v1357_v58 = vunpack.c.0.s8 %v1356_v55 }
 0x1e3   : > { %v5713_v18 = vld [vmem:[%s7220_s22] sm:$0xff]   ;;  %v5720_v21 = vld [vmem:[%s8865_s18 + $0x10] ss:$8 sps:$4 sm:$0xff]   ;;  %v5714_v23 = vld [vmem:[%s7220_s22 + $0x8] sm:$0xff]   ;;  %v7332_v62 = vsub.s32 1, %v838_v56  ;;  %v7334_v1 = vsub.s32 0, %v838_v56 }
 0x1e4   : > { %956 = vmatpush1.bf16.msra.mxu1 %v5697_v6  ;;  %v5725_v22 = vld [vmem:[%s8865_s18 + $0x24] ss:$8 sps:$4 sm:$0xff]   ;;  %v5723_v24 = vld [vmem:[%s8865_s18 + $0x20] ss:$8 sps:$4 sm:$0xff]   ;;  %v5728_v25 = vld [vmem:[%s8865_s18 + $0x34] ss:$8 sps:$4 sm:$0xff]   ;;  %v7329_v60 = vsub.s32 %v1357_v58, %v838_v56 }
 0x1e5   : > { %957 = vmatprep.subr.bf16.mxu1 %v5698_v7  ;;  %v5726_v26 = vld [vmem:[%s8865_s18 + $0x30] ss:$8 sps:$4 sm:$0xff]   ;;  %v5731_v27 = vld [vmem:[%s8865_s18 + $0x44] ss:$8 sps:$4 sm:$0xff]   ;;  %v5729_v29 = vld [vmem:[%s8865_s18 + $0x40] ss:$8 sps:$4 sm:$0xff]   ;;  %v7337_v2 = vrot.slane %v835_v63, %v7332_v62  ;;  %v840_v3 = vrot.slane %v835_v63, %v7334_v1 }
 0x1e6   : > { %v5715_v28 = vld [vmem:[%s7220_s22 + $0x10] sm:$0xff]   ;;  %v5737_v32 = vld [vmem:[%s8865_s18 + $0x64] ss:$8 sps:$4 sm:$0xff]   ;;  %v5716_v33 = vld [vmem:[%s7220_s22 + $0x18] sm:$0xff]   ;;  %v1368_v61 = vrot.slane %v1354_v59, %v7329_v60  ;;  %s8891_s17 = sld [smem:[#allocation53_spill]] }
 0x1e7   : > { %v5734_v30 = vld [vmem:[%s8865_s18 + $0x54] ss:$8 sps:$4 sm:$0xff]   ;;  %v5732_v31 = vld [vmem:[%s8865_s18 + $0x50] ss:$8 sps:$4 sm:$0xff]   ;;  %v5735_v34 = vld [vmem:[%s8865_s18 + $0x60] ss:$8 sps:$4 sm:$0xff]  }
 0x1e8   : > { %958 = vmatpush1.bf16.msra.mxu1 %v5700_v8  ;;  %v5740_v35 = vld [vmem:[%s8865_s18 + $0x74] ss:$8 sps:$4 sm:$0xff]   ;;  %v5738_v36 = vld [vmem:[%s8865_s18 + $0x70] ss:$8 sps:$4 sm:$0xff]   ;;  %v5743_v37 = vld [vmem:[%s8865_s18 + $0x84] ss:$8 sps:$4 sm:$0xff]   ;;  %1403 = vmatprep.mubr.bf16.mxu0 %v1368_v61 }
 0x1e9   : > { %959 = vmatprep.subr.bf16.mxu1 %v5701_v9  ;;  %v5741_v38 = vld [vmem:[%s8865_s18 + $0x80] ss:$8 sps:$4 sm:$0xff]   ;;  %v5746_v39 = vld [vmem:[%s8865_s18 + $0x94] ss:$8 sps:$4 sm:$0xff]   ;;  %v5744_v40 = vld [vmem:[%s8865_s18 + $0x90] ss:$8 sps:$4 sm:$0xff]  }
 0x1ea   : > { %v5749_v41 = vld [vmem:[%s8865_s18 + $0xa4] ss:$8 sps:$4 sm:$0xff]   ;;  %v5747_v42 = vld [vmem:[%s8865_s18 + $0xa0] ss:$8 sps:$4 sm:$0xff]   ;;  %v5752_v43 = vld [vmem:[%s8865_s18 + $0xb4] ss:$8 sps:$4 sm:$0xff]  }
 0x1eb   : > { %v5750_v44 = vld [vmem:[%s8865_s18 + $0xb0] ss:$8 sps:$4 sm:$0xff]   ;;  %v5755_v45 = vld [vmem:[%s8865_s18 + $0xc4] ss:$8 sps:$4 sm:$0xff]   ;;  %v5753_v46 = vld [vmem:[%s8865_s18 + $0xc0] ss:$8 sps:$4 sm:$0xff]  }
 0x1ec   : > { %960 = vmatpush1.bf16.msra.mxu1 %v5703_v10  ;;  %v5758_v47 = vld [vmem:[%s8865_s18 + $0xd4] ss:$8 sps:$4 sm:$0xff]   ;;  %v5756_v48 = vld [vmem:[%s8865_s18 + $0xd0] ss:$8 sps:$4 sm:$0xff]   ;;  %v5761_v49 = vld [vmem:[%s8865_s18 + $0xe4] ss:$8 sps:$4 sm:$0xff]  }
 0x1ed   : > { %961 = vmatprep.subr.bf16.mxu1 %v5704_v11  ;;  %v5759_v50 = vld [vmem:[%s8865_s18 + $0xe0] ss:$8 sps:$4 sm:$0xff]   ;;  %v5764_v51 = vld [vmem:[%s8865_s18 + $0xf4] ss:$8 sps:$4 sm:$0xff]   ;;  %v5762_v52 = vld [vmem:[%s8865_s18 + $0xf0] ss:$8 sps:$4 sm:$0xff]  }
 0x1ee   : > { %v5765_v61 = vld [vmem:[%s8867_s23 + $0x40] sm:$0xff]  }
 0x1f0   : > { %962 = vmatpush1.bf16.msra.mxu1 %v5706_v12 }
 0x1f1   : > { %963 = vmatprep.subr.bf16.mxu1 %v5707_v13 }
 0x1f4   : > { %964 = vmatpush1.bf16.msra.mxu1 %v5709_v14 }
 0x1f5   : > { %965 = vmatprep.subr.bf16.mxu1 %v5710_v15 }
 0x1f8   : > { %966 = vmatpush1.bf16.msra.mxu1 %v5712_v16 }
 0x1f9   : > { %1264 = vmatprep.subr.bf16.mxu1 %v5719_v17 }
 0x1fb   : > { %984 = vmatmul.mubr.bf16.vlgmr.msra.gmra.mrb[0].mxu1 %v5713_v18 }
 0x1fc   : > { %993 = vmatprep.mubr.bf16.mxu1 %v8781_v0  ;;  %1265 = vmatpush1.bf16.msra.mxu1 %v5717_v19 }
 0x1fd   : > { %1266 = vmatprep.subr.bf16.mxu1 %v5722_v20 }
 0x200   : > { %1267 = vmatpush1.bf16.msra.mxu1 %v5720_v21 }
 0x201   : > { %1268 = vmatprep.subr.bf16.mxu1 %v5725_v22 }
 0x203   : > { %994 = vmatmul.mubr.bf16.gmra.mrb[4].mxu1 %v5714_v23 }
 0x204   : > { %1003 = vmatprep.mubr.bf16.mxu1 %v8781_v0  ;;  %1269 = vmatpush1.bf16.msra.mxu1 %v5723_v24 }
 0x205   : > { %1270 = vmatprep.subr.bf16.mxu1 %v5728_v25 }
 0x208   : > { %1271 = vmatpush1.bf16.msra.mxu1 %v5726_v26 }
 0x209   : > { %1272 = vmatprep.subr.bf16.mxu1 %v5731_v27 }
 0x20b   : > { %1004 = vmatmul.mubr.bf16.gmra.mrb[8].mxu1 %v5715_v28 }
 0x20c   : > { %1013 = vmatprep.mubr.bf16.mxu1 %v8781_v0  ;;  %1273 = vmatpush1.bf16.msra.mxu1 %v5729_v29 }
 0x20d   : > { %1274 = vmatprep.subr.bf16.mxu1 %v5734_v30 }
 0x210   : > { %1275 = vmatpush1.bf16.msra.mxu1 %v5732_v31 }
 0x211   : > { %1276 = vmatprep.subr.bf16.mxu1 %v5737_v32 }
 0x213   : > { %1014 = vmatmul.mubr.bf16.gmra.mrb[12].mxu1 %v5716_v33 }
 0x214   : > { %1277 = vmatpush1.bf16.msra.mxu1 %v5735_v34 }
 0x215   : > { %1278 = vmatprep.subr.bf16.mxu1 %v5740_v35 }
 0x218   : > { %1279 = vmatpush1.bf16.msra.mxu1 %v5738_v36 }
 0x219   : > { %1280 = vmatprep.subr.bf16.mxu1 %v5743_v37 }
 0x21c   : > { %1281 = vmatpush1.bf16.msra.mxu1 %v5741_v38 }
 0x21d   : > { %1282 = vmatprep.subr.bf16.mxu1 %v5746_v39 }
 0x220   : > { %1283 = vmatpush1.bf16.msra.mxu1 %v5744_v40 }
 0x221   : > { %1284 = vmatprep.subr.bf16.mxu1 %v5749_v41 }
 0x224   : > { %1285 = vmatpush1.bf16.msra.mxu1 %v5747_v42 }
 0x225   : > { %1286 = vmatprep.subr.bf16.mxu1 %v5752_v43 }
 0x228   : > { %1287 = vmatpush1.bf16.msra.mxu1 %v5750_v44 }
 0x229   : > { %1288 = vmatprep.subr.bf16.mxu1 %v5755_v45 }
 0x22c   : > { %1289 = vmatpush1.bf16.msra.mxu1 %v5753_v46 }
 0x22d   : > { %1290 = vmatprep.subr.bf16.mxu1 %v5758_v47 }
 0x230   : > { %1291 = vmatpush1.bf16.msra.mxu1 %v5756_v48 }
 0x231   : > { %1292 = vmatprep.subr.bf16.mxu1 %v5761_v49 }
 0x234   : > { %1293 = vmatpush1.bf16.msra.mxu1 %v5759_v50 }
 0x235   : > { %1294 = vmatprep.subr.bf16.mxu1 %v5764_v51 }
 0x238   : > { %1295 = vmatpush1.bf16.msra.mxu1 %v5762_v52 }
 0x2ce   : > { %v985_v4 = vpop.f32.mrb[0].mxu1 }
 0x2cf   : > { %v987_v5 = vpop.f32.mrb[1].mxu1  ;;  %v7343_v8 = vadd.f32 %v985_v4, %v840_v3  ;;  %v5767_v4 = vld [vmem:[%s8867_s23 + $0x48] sm:$0xff]  }
 0x2d0   : > { %v7341_v6 = vadd.f32 %v987_v5, %v7337_v2  ;;  %v989_v7 = vpop.f32.mrb[2].mxu1  ;;  %v5768_v5 = vld [vmem:[%s8867_s23 + $0x8] sm:$0xff]  }
 0x2d1   : > { %v7345_v9 = vadd.f32 %v989_v7, %v840_v3  ;;  %v991_v10 = vpop.f32.mrb[3].mxu1  ;;  %v8795_v15 = vmax.f32 %v7343_v8, 0.0  ;;  %v5770_v7 = vld [vmem:[%s8867_s23 + $0x10] sm:$0xff]  }
 0x2d2   : > { %v7348_v11 = vadd.f32 %v991_v10, %v7337_v2  ;;  %v8796_v13 = vmax.f32 %v7341_v6, 0.0  ;;  %v5771_v10 = vld [vmem:[%s8867_s23 + $0x58] sm:$0xff]  }
 0x2d3   : > { %v8794_v12 = vmax.f32 %v7345_v9, 0.0 }
 0x2d4   : > { %v8793_v14 = vmax.f32 %v7348_v11, 0.0 }
 0x2d5   : > { %v7364_v18 = vpack.c.bf16 %v8794_v12, %v8795_v15 }
 0x2d6   : > { %v7358_v16 = vpack.c.bf16 %v8793_v14, %v8796_v13  ;;  %v995_v17 = vpop.f32.mrb[4].mxu1 }
 0x2d7   : > { %v997_v19 = vpop.f32.mrb[5].mxu1  ;;  %v7371_v22 = vadd.f32 %v995_v17, %v840_v3  ;;  %v5772_v17 = vld [vmem:[%s8867_s23 + $0x18] sm:$0xff]  }
 0x2d8   : > { %v7367_v20 = vadd.f32 %v997_v19, %v7337_v2  ;;  %v999_v21 = vpop.f32.mrb[6].mxu1  ;;  %1296 = vmatprep.mubr.bf16.mxu1 %v7358_v16  ;;  %1371 = vmatprep.subr.bf16.mxu0 %v7358_v16  ;;  %v5773_v19 = vld [vmem:[%s8867_s23 + $0x60] sm:$0xff]  }
 0x2d9   : > { %v7373_v23 = vadd.f32 %v999_v21, %v840_v3  ;;  %v1001_v24 = vpop.f32.mrb[7].mxu1  ;;  %1297 = vmatmul.mubr.bf16.vlgmr.msra.gmra.mrb[16].mxu1 %v7364_v18  ;;  %1372 = vmatpush1.bf16.xpose.msra.mxu0 %v7364_v18  ;;  %v8790_v29 = vmax.f32 %v7371_v22, 0.0  ;;  %v5774_v21 = vld [vmem:[%s8867_s23 + $0x20] sm:$0xff]  }
 0x2da   : > { %v7378_v25 = vadd.f32 %v1001_v24, %v7337_v2  ;;  %v8792_v27 = vmax.f32 %v7367_v20, 0.0  ;;  %v5775_v24 = vld [vmem:[%s8867_s23 + $0x68] sm:$0xff]  }
 0x2db   : > { %v8789_v26 = vmax.f32 %v7373_v23, 0.0 }
 0x2dc   : > { %v8791_v28 = vmax.f32 %v7378_v25, 0.0 }
 0x2dd   : > { %v7394_v32 = vpack.c.bf16 %v8789_v26, %v8790_v29 }
 0x2de   : > { %v7388_v30 = vpack.c.bf16 %v8791_v28, %v8792_v27  ;;  %v1005_v31 = vpop.f32.mrb[8].mxu1  ;;  %v1047_v27 = vld [vmem:[%s7170_s1 + $0x38] sm:$0xff] }
 0x2df   : > { %v1007_v33 = vpop.f32.mrb[9].mxu1  ;;  %v7401_v36 = vadd.f32 %v1005_v31, %v840_v3  ;;  %v5776_v31 = vld [vmem:[%s8867_s23 + $0x28] sm:$0xff]  }
 0x2e0   : > { %v7397_v34 = vadd.f32 %v1007_v33, %v7337_v2  ;;  %v1009_v35 = vpop.f32.mrb[10].mxu1  ;;  %1306 = vmatprep.mubr.bf16.mxu1 %v7388_v30  ;;  %1373 = vmatprep.subr.bf16.mxu0 %v7388_v30  ;;  %v5777_v33 = vld [vmem:[%s8867_s23 + $0x70] sm:$0xff]  }
 0x2e1   : > { %v7403_v37 = vadd.f32 %v1009_v35, %v840_v3  ;;  %v1011_v38 = vpop.f32.mrb[11].mxu1  ;;  %1307 = vmatmul.mubr.bf16.gmra.mrb[20].mxu1 %v7394_v32  ;;  %1374 = vmatpush1.bf16.xpose.msra.mxu0 %v7394_v32  ;;  %v8786_v43 = vmax.f32 %v7401_v36, 0.0  ;;  %v5778_v35 = vld [vmem:[%s8867_s23 + $0x30] sm:$0xff]  }
 0x2e2   : > { %v7408_v39 = vadd.f32 %v1011_v38, %v7337_v2  ;;  %v8788_v41 = vmax.f32 %v7397_v34, 0.0  ;;  %v5779_v38 = vld [vmem:[%s8867_s23 + $0x78] sm:$0xff]  }
 0x2e3   : > { %v8785_v40 = vmax.f32 %v7403_v37, 0.0 }
 0x2e4   : > { %v8787_v42 = vmax.f32 %v7408_v39, 0.0 }
 0x2e5   : > { %v7424_v46 = vpack.c.bf16 %v8785_v40, %v8786_v43  ;;  %v7579_v40 = vld [vmem:[%s7170_s1 + $0x20] sm:$0xff] }
 0x2e6   : > { %v7418_v44 = vpack.c.bf16 %v8787_v42, %v8788_v41  ;;  %v1015_v45 = vpop.f32.mrb[12].mxu1 }
 0x2e7   : > { %v1017_v47 = vpop.f32.mrb[13].mxu1  ;;  %v7431_v50 = vadd.f32 %v1015_v45, %v840_v3  ;;  %v5780_v45 = vld [vmem:[%s8867_s23 + $0x38] sm:$0xff]  }
 0x2e8   : > { %v7427_v48 = vadd.f32 %v1017_v47, %v7337_v2  ;;  %v1019_v49 = vpop.f32.mrb[14].mxu1  ;;  %1316 = vmatprep.mubr.bf16.mxu1 %v7418_v44  ;;  %1375 = vmatprep.subr.bf16.mxu0 %v7418_v44 }
 0x2e9   : > { %v7433_v51 = vadd.f32 %v1019_v49, %v840_v3  ;;  %v1021_v52 = vpop.f32.mrb[15].mxu1  ;;  %1317 = vmatmul.mubr.bf16.gmra.mrb[24].mxu1 %v7424_v46  ;;  %1376 = vmatpush1.bf16.xpose.msra.mxu0 %v7424_v46  ;;  %v8777_v58 = vmax.f32 %v7431_v50, 0.0  ;;  %v5766_v3 = vld [vmem:[%s8867_s23] sm:$0xff]  }
 0x2ea   : > { %v7438_v53 = vadd.f32 %v1021_v52, %v7337_v2  ;;  %v8784_v55 = vmax.f32 %v7427_v48, 0.0  ;;  %v1361_v2 = vrot.slane %v7325_v57, %v7329_v60  ;;  %v5769_v57 = vld [vmem:[%s8867_s23 + $0x50] sm:$0xff]  }
 0x2eb   : > { %v8778_v54 = vmax.f32 %v7433_v51, 0.0 }
 0x2ec   : > { %v8783_v56 = vmax.f32 %v7438_v53, 0.0 }
 0x2ed   : > { %v7457_v63 = vpack.c.bf16 %v8778_v54, %v8777_v58  ;;  %v8779_v58 = vmov 1  }
 0x2ee   : > { %v7448_v59 = vpack.c.bf16 %v8783_v56, %v8784_v55 }
 0x2ef   : > { %8868 = vst [vmem:[#allocation36_spill] sm:$0xff] %v7457_v63 }
 0x2f0   : > { %8866 = vst [vmem:[#allocation35_spill] sm:$0xff] %v7448_v59  ;;  %1326 = vmatprep.mubr.bf16.mxu1 %v7448_v59  ;;  %1377 = vmatprep.subr.bf16.mxu0 %v7448_v59 }
 0x2f1   : > { %1327 = vmatmul.mubr.bf16.gmra.mrb[28].mxu1 %v7457_v63  ;;  %1378 = vmatpush1.bf16.xpose.msra.mxu0 %v7457_v63 }
 0x2f2   : > { %5326 = vmatprep.subr.bf16.mxu0 %v5765_v61 }
 0x2f8   : > { %1404 = vmatmul.mubr.bf16.vlgmr.msra.gmra.mrb[0].mxu0 %v1361_v2 }
 0x2f9   : > { %5327 = vmatpush3.bf16.msra.mxu0 %v5766_v3  ;;  %1571 = vmatprep.mubr.bf16.mxu0 %v7358_v16 }
 0x2fa   : > { %5328 = vmatprep.subr.bf16.mxu0 %v5767_v4 }
 0x2fd   : > { %5329 = vmatpush3.bf16.msra.mxu0 %v5768_v5 }
 0x2fe   : > { %5330 = vmatprep.subr.bf16.mxu0 %v5769_v57 }
 0x301   : > { %5331 = vmatpush3.bf16.msra.mxu0 %v5770_v7 }
 0x302   : > { %5332 = vmatprep.subr.bf16.mxu0 %v5771_v10 }
 0x305   : > { %5333 = vmatpush3.bf16.msra.mxu0 %v5772_v17 }
 0x306   : > { %5334 = vmatprep.subr.bf16.mxu0 %v5773_v19 }
 0x309   : > { %5335 = vmatpush3.bf16.msra.mxu0 %v5774_v21 }
 0x30a   : > { %5336 = vmatprep.subr.bf16.mxu0 %v5775_v24 }
 0x30d   : > { %5337 = vmatpush3.bf16.msra.mxu0 %v5776_v31 }
 0x30e   : > { %5338 = vmatprep.subr.bf16.mxu0 %v5777_v33 }
 0x311   : > { %5339 = vmatpush3.bf16.msra.mxu0 %v5778_v35 }
 0x312   : > { %5340 = vmatprep.subr.bf16.mxu0 %v5779_v38 }
 0x315   : > { %5341 = vmatpush3.bf16.msra.mxu0 %v5780_v45 }
 0x318   : > { %1572 = vmatmul.mubr.bf16.vlgmr.msra.gmra.mrb[4].mxu0 %v7364_v18 }
 0x319   : > { %1579 = vmatprep.mubr.bf16.mxu0 %v7388_v30 }
 0x320   : > { %1580 = vmatmul.mubr.bf16.gmra.mrb[8].mxu0 %v7394_v32 }
 0x321   : > { %1587 = vmatprep.mubr.bf16.mxu0 %v7418_v44 }
 0x328   : > { %1588 = vmatmul.mubr.bf16.gmra.mrb[12].mxu0 %v7424_v46 }
 0x329   : > { %1595 = vmatprep.mubr.bf16.mxu0 %v7448_v59 }
 0x330   : > { %1596 = vmatmul.mubr.bf16.gmra.mrb[16].mxu0 %v7457_v63 }
 0x3ac   : > { %v1298_v47 = vpop.f32.mrb[16].mxu1 }
 0x3ad   : > { %v1300_v49 = vpop.f32.mrb[17].mxu1 }
 0x3ae   : > { %v1302_v52 = vpop.f32.mrb[18].mxu1 }
 0x3af   : > { %v1337_v61 = vpack.c.bf16 %v1302_v52, %v1298_v47  ;;  %v1304_v2 = vpop.f32.mrb[19].mxu1 }
 0x3b0   : > { %v7518_v3 = vpack.c.bf16 %v1304_v2, %v1300_v49 }
 0x3b1   : > { %5438 = vmatprep.subr.bf16.mxu1 %v1337_v61 }
 0x3b2   : > { %5439 = vmatpush3.bf16.msra.mxu1 %v1337_v61 }
 0x3b4   : > { %v1308_v4 = vpop.f32.mrb[20].mxu1 }
 0x3b5   : > { %v1310_v5 = vpop.f32.mrb[21].mxu1 }
 0x3b6   : > { %v1312_v57 = vpop.f32.mrb[22].mxu1 }
 0x3b7   : > { %v1339_v7 = vpack.c.bf16 %v1312_v57, %v1308_v4  ;;  %v1314_v10 = vpop.f32.mrb[23].mxu1 }
 0x3b8   : > { %v7520_v17 = vpack.c.bf16 %v1314_v10, %v1310_v5 }
 0x3b9   : > { %5440 = vmatprep.subr.bf16.mxu1 %v1339_v7 }
 0x3ba   : > { %5441 = vmatpush3.bf16.msra.mxu1 %v1339_v7 }
 0x3bc   : > { %v1318_v19 = vpop.f32.mrb[24].mxu1 }
 0x3bd   : > { %v1320_v21 = vpop.f32.mrb[25].mxu1 }
 0x3be   : > { %v1322_v24 = vpop.f32.mrb[26].mxu1 }
 0x3bf   : > { %v1341_v31 = vpack.c.bf16 %v1322_v24, %v1318_v19  ;;  %v1324_v33 = vpop.f32.mrb[27].mxu1 }
 0x3c0   : > { %v7522_v35 = vpack.c.bf16 %v1324_v33, %v1320_v21 }
 0x3c1   : > { %5442 = vmatprep.subr.bf16.mxu1 %v1341_v31 }
 0x3c2   : > { %5443 = vmatpush3.bf16.msra.mxu1 %v1341_v31 }
 0x3c4   : > { %v1328_v38 = vpop.f32.mrb[28].mxu1 }
 0x3c5   : > { %v1330_v45 = vpop.f32.mrb[29].mxu1 }
 0x3c6   : > { %v1332_v47 = vpop.f32.mrb[30].mxu1 }
 0x3c7   : > { %v1343_v49 = vpack.c.bf16 %v1332_v47, %v1328_v38  ;;  %v1334_v52 = vpop.f32.mrb[31].mxu1 }
 0x3c8   : > { %v7524_v61 = vpack.c.bf16 %v1334_v52, %v1330_v45 }
 0x3c9   : > { %5444 = vmatprep.subr.bf16.mxu1 %v1343_v49 }
 0x3ca   : > { %5445 = vmatpush3.bf16.msra.mxu1 %v1343_v49 }
 0x3cb   : > { %v7526_v2 = vpop.f32.mrb[0].mxu0  ;;  %5454 = vmatprep.subr.bf16.mxu1 %v7518_v3 }
 0x3cc   : > { %v1407_v4 = vpop.f32.mrb[1].mxu0 }
 0x3cd   : > { %v1408_v5 = vpop.f32.mrb[2].mxu0 }
 0x3ce   : > { %v1409_v57 = vpop.f32.mrb[3].mxu0 }
 0x3eb   : > { %v5342_v7 = vpop.f32.mrb[4].mxu0 }
 0x3ec   : > { %v5343_v10 = vpop.f32.mrb[5].mxu0 }
 0x3ed   : > { %v5344_v19 = vadd.f32 %v5343_v10, %v5342_v7  ;;  %v5345_v21 = vpop.f32.mrb[6].mxu0 }
 0x3ee   : > { %v5346_v24 = vpop.f32.mrb[7].mxu0 }
 0x3ef   : > { %v5347_v31 = vadd.f32 %v5346_v24, %v5345_v21  ;;  %1606 = vperm.xlu0 %5679, %v5344_v19  }
 0x3f3   : > { %v5348_v33 = vpop.f32.mrb[8].mxu0  ;;  %1611 = vperm.xlu0 %5679, %v5347_v31  }
 0x3f4   : > { %v5349_v38 = vpop.f32.mrb[9].mxu0 }
 0x3f5   : > { %v5350_v45 = vadd.f32 %v5349_v38, %v5348_v33  ;;  %v5351_v47 = vpop.f32.mrb[10].mxu0 }
 0x3f6   : > { %v5352_v49 = vpop.f32.mrb[11].mxu0 }
 0x3f7   : > { %v5353_v52 = vadd.f32 %v5352_v49, %v5351_v47  ;;  %1616 = vperm.xlu1 %5681, %v5350_v45   ;;  %5680 = vset.pattern.permute.xlu0 %v8779_v58 }
 0x3f8   : > { %1867 = vperm.xlu0 %5680, %v5344_v19   ;;  %v7536_v19 = vrot.slane %v7526_v2, %v7334_v1 }
 0x3fb   : > { %v5354_v4 = vpop.f32.mrb[12].mxu0  ;;  %1621 = vperm.xlu1 %5681, %v5353_v52  }
 0x3fc   : > { %v5355_v5 = vpop.f32.mrb[13].mxu0  ;;  %5682 = vset.pattern.permute.xlu0 %v8781_v0 }
 0x3fd   : > { %v5356_v57 = vadd.f32 %v5355_v5, %v5354_v4  ;;  %v5357_v7 = vpop.f32.mrb[14].mxu0 }
 0x3fe   : > { %v5358_v10 = vpop.f32.mrb[15].mxu0 }
 0x3ff   : > { %v5359_v21 = vadd.f32 %v5358_v10, %v5357_v7  ;;  %1626 = vperm.xlu0 %5682, %v5356_v57  }
 0x401   : > { %1631 = vperm.xlu1 %5681, %v5359_v21  }
 0x403   : > { %v5360_v24 = vpop.f32.mrb[16].mxu0 }
 0x404   : > { %v5361_v33 = vpop.f32.mrb[17].mxu0 }
 0x405   : > { %v5362_v38 = vadd.f32 %v5361_v33, %v5360_v24  ;;  %v5363_v47 = vpop.f32.mrb[18].mxu0 }
 0x406   : > { %v5364_v49 = vpop.f32.mrb[19].mxu0 }
 0x407   : > { %v5365_v54 = vadd.f32 %v5364_v49, %v5363_v47  ;;  %1636 = vperm.xlu0 %5682, %v5362_v38  }
 0x409   : > { %1641 = vperm.xlu1 %5681, %v5365_v54  }
 0x40b   : > { %5684 = vset.pattern.permute.xlu0 %v8779_v58 }
 0x40c   : > { %1879 = vperm.xlu0 %5684, %v5353_v52   ;;  %v7540_v52 = vld [vmem:[%s7170_s1] sm:$0xff] }
 0x40d   : > { %5683 = vset.pattern.permute.xlu1 %v8779_v58 }
 0x40e   : > { %1871 = vperm.xlu1 %5683, %v5347_v31  }
 0x410   : > { %1887 = vperm.xlu0 %5684, %v5359_v21   ;;  %v7547_v21 = vld [vmem:[%s7170_s1 + $0x8] sm:$0xff] }
 0x412   : > { %1875 = vperm.xlu1 %5683, %v5350_v45  }
 0x414   : > { %1895 = vperm.xlu0 %5684, %v5365_v54  }
 0x416   : > { %1883 = vperm.xlu1 %5683, %v5356_v57  }
 0x418   : > { %5685 = vset.pattern.permute.xlu0 %v8781_v0 }
 0x41a   : > { %1891 = vperm.xlu1 %5683, %v5362_v38  }
 0x46e   : > { %v1607_v4 = vpop.permute.xlu0 %1606 }
 0x46f   : > { %v1648_v5 = vadd.f32 %v7536_v19, %v1607_v4 }
 0x471   : > { %v1664_v7 = vmul.f32 0.2, %v1648_v5  ;;  %vm1656_vm0 = vcmp.gt.f32.partialorder %v1648_v5, 0.0 }
 0x472   : > { %v1612_v31 = vpop.permute.xlu0 %1611 }
 0x473   : > { %v1649_v54 = vadd.f32 %v7536_v19, %v1612_v31  ;;  %v1672_v45 = vsel %vm1656_vm0, %v1648_v5, %v1664_v7  ;;  %v7556_v5 = vld [vmem:[%s7170_s1 + $0x10] sm:$0xff] }
 0x474   : > { %v7544_v57 = vadd.f32 %v1672_v45, %v7540_v52 }
 0x475   : > { %v1665_v10 = vmul.f32 0.2, %v1649_v54  ;;  %vm1657_vm2 = vcmp.gt.f32.partialorder %v1649_v54, 0.0 }
 0x476   : > { %v1617_v24 = vpop.permute.xlu1 %1616  ;;  %v1689_v33 = vsel %vm1688_vm1, %v7544_v57, -inf }
 0x477   : > { %v1650_v38 = vadd.f32 %v7536_v19, %v1617_v24  ;;  %1690 = vmax.xlane.f32.xlu1 %v1689_v33  ;;  %v1673_v47 = vsel %vm1657_vm2, %v1649_v54, %v1665_v10  ;;  %v1868_v7 = vpop.permute.xlu0 %1867  ;;  %v7565_v10 = vld [vmem:[%s7170_s1 + $0x18] sm:$0xff] }
 0x478   : > { %v7553_v49 = vadd.f32 %v1673_v47, %v7547_v21 }
 0x479   : > { %v1666_v4 = vmul.f32 0.2, %v1650_v38  ;;  %vm1658_vm3 = vcmp.gt.f32.partialorder %v1650_v38, 0.0 }
 0x47a   : > { %v1622_v31 = vpop.permute.xlu1 %1621  ;;  %v1692_v45 = vsel %vm1688_vm1, %v7553_v49, -inf }
 0x47b   : > { %v1651_v58 = vadd.f32 %v7536_v19, %v1622_v31  ;;  %1693 = vmax.xlane.f32.xlu0 %v1692_v45  ;;  %v1674_v0 = vsel %vm1658_vm3, %v1650_v38, %v1666_v4  ;;  %v7572_v31 = vrot.slane %v7526_v2, %v7332_v62  ;;  %v7585_v2 = vld [vmem:[%s7170_s1 + $0x28] sm:$0xff] }
 0x47c   : > { %v7562_v24 = vadd.f32 %v1674_v0, %v7556_v5 }
 0x47d   : > { %v1667_v54 = vmul.f32 0.2, %v1651_v58  ;;  %vm1659_vm4 = vcmp.gt.f32.partialorder %v1651_v58, 0.0  ;;  %v1902_v43 = vadd.f32 %v7572_v31, %v1868_v7 }
 0x47e   : > { %v1627_v33 = vpop.permute.xlu0 %1626  ;;  %v1695_v47 = vsel %vm1688_vm1, %v7562_v24, -inf }
 0x47f   : > { %v1652_v56 = vadd.f32 %v7536_v19, %v1627_v33  ;;  %1696 = vmax.xlane.f32.xlu0 %v1695_v47  ;;  %v1675_v55 = vsel %vm1659_vm4, %v1651_v58, %v1667_v54  ;;  %vm1910_vm7 = vcmp.gt.f32.partialorder %v1902_v43, 0.0 }
 0x480   : > { %v1632_v38 = vpop.permute.xlu1 %1631  ;;  %v7575_v0 = vadd.f32 %v1675_v55, %v7565_v10 }
 0x481   : > { %v1668_v4 = vmul.f32 0.2, %v1652_v56  ;;  %v1653_v45 = vadd.f32 %v7536_v19, %v1632_v38  ;;  %vm1660_vm5 = vcmp.gt.f32.partialorder %v1652_v56, 0.0  ;;  %v1918_v38 = vmul.f32 0.2, %v1902_v43 }
 0x482   : > { %v1698_v33 = vsel %vm1688_vm1, %v7575_v0, -inf }
 0x483   : > { %v1669_v58 = vmul.f32 0.2, %v1653_v45  ;;  %1699 = vmax.xlane.f32.xlu1 %v1698_v33  ;;  %v1676_v54 = vsel %vm1660_vm5, %v1652_v56, %v1668_v4  ;;  %vm1661_vm6 = vcmp.gt.f32.partialorder %v1653_v45, 0.0  ;;  %v1926_v26 = vsel %vm1910_vm7, %v1902_v43, %v1918_v38 }
 0x484   : > { %v7588_v55 = vadd.f32 %v1676_v54, %v7579_v40  ;;  %v7608_v15 = vadd.f32 %v1926_v26, %v7540_v52 }
 0x485   : > { %v1677_v47 = vsel %vm1661_vm6, %v1653_v45, %v1669_v58  ;;  %v7600_v58 = vld [vmem:[%s7170_s1 + $0x30] sm:$0xff] }
 0x486   : > { %v1637_v42 = vpop.permute.xlu0 %1636  ;;  %v1701_v41 = vsel %vm1688_vm1, %v7588_v55, -inf  ;;  %v7593_v7 = vadd.f32 %v1677_v47, %v7585_v2 }
 0x487   : > { %v1654_v33 = vadd.f32 %v7536_v19, %v1637_v42  ;;  %1702 = vmax.xlane.f32.xlu0 %v1701_v41 }
 0x488   : > { %v1642_v56 = vpop.permute.xlu1 %1641  ;;  %v1704_v4 = vsel %vm1688_vm1, %v7593_v7, -inf }
 0x489   : > { %v1670_v54 = vmul.f32 0.2, %v1654_v33  ;;  %v1655_v45 = vadd.f32 %v7536_v19, %v1642_v56  ;;  %1705 = vmax.xlane.f32.xlu1 %v1704_v4  ;;  %vm1662_vm8 = vcmp.gt.f32.partialorder %v1654_v33, 0.0 }
 0x48b   : > { %v1671_v29 = vmul.f32 0.2, %v1655_v45  ;;  %v1880_v28 = vpop.permute.xlu0 %1879  ;;  %v1678_v47 = vsel %vm1662_vm8, %v1654_v33, %v1670_v54  ;;  %vm1663_vm9 = vcmp.gt.f32.partialorder %v1655_v45, 0.0 }
 0x48c   : > { %v1905_v41 = vadd.f32 %v7572_v31, %v1880_v28  ;;  %v7605_v42 = vadd.f32 %v1678_v47, %v7600_v58 }
 0x48d   : > { %v1872_v14 = vpop.permute.xlu1 %1871  ;;  %v1679_v12 = vsel %vm1663_vm9, %v1655_v45, %v1671_v29 }
 0x48e   : > { %v1921_v19 = vmul.f32 0.2, %v1905_v41  ;;  %v1903_v56 = vadd.f32 %v7572_v31, %v1872_v14  ;;  %v1707_v43 = vsel %vm1688_vm1, %v7605_v42, -inf  ;;  %v7613_v38 = vadd.f32 %v1679_v12, %v1047_v27 }
 0x48f   : > { %1708 = vmax.xlane.f32.xlu0 %v1707_v43  ;;  %v1888_v33 = vpop.permute.xlu0 %1887  ;;  %vm1913_vm10 = vcmp.gt.f32.partialorder %v1905_v41, 0.0  ;;  %v1942_v14 = vsel %vm1688_vm1, %v7608_v15, -inf }
 0x490   : > { %v1919_v28 = vmul.f32 0.2, %v1903_v56  ;;  %v1907_v4 = vadd.f32 %v7572_v31, %v1888_v33  ;;  %v1710_v29 = vsel %vm1688_vm1, %v7613_v38, -inf  ;;  %vm1911_vm11 = vcmp.gt.f32.partialorder %v1903_v56, 0.0 }
 0x491   : > { %v1876_v26 = vpop.permute.xlu1 %1875  ;;  %1711 = vmax.xlane.f32.xlu1 %v1710_v29  ;;  %v1929_v45 = vsel %vm1913_vm10, %v1905_v41, %v1921_v19 }
 0x492   : > { %v1923_v52 = vmul.f32 0.2, %v1907_v4  ;;  %v1904_v54 = vadd.f32 %v7572_v31, %v1876_v26  ;;  %v1927_v12 = vsel %vm1911_vm11, %v1903_v56, %v1919_v28  ;;  %vm1915_vm12 = vcmp.gt.f32.partialorder %v1907_v4, 0.0 }
 0x493   : > { %1943 = vmax.xlane.f32.xlu0 %v1942_v14  ;;  %v1896_v47 = vpop.permute.xlu0 %1895  ;;  %v7622_v43 = vadd.f32 %v1927_v12, %v7547_v21  ;;  %v7628_v59 = vadd.f32 %v1929_v45, %v7565_v10 }
 0x494   : > { %v1920_v33 = vmul.f32 0.2, %v1904_v54  ;;  %v1909_v13 = vadd.f32 %v7572_v31, %v1896_v47  ;;  %vm1912_vm13 = vcmp.gt.f32.partialorder %v1904_v54, 0.0  ;;  %v1931_v56 = vsel %vm1915_vm12, %v1907_v4, %v1923_v52 }
 0x495   : > { %v1884_v63 = vpop.permute.xlu1 %1883  ;;  %v1945_v29 = vsel %vm1688_vm1, %v7622_v43, -inf  ;;  %v1951_v10 = vsel %vm1688_vm1, %v7628_v59, -inf  ;;  %v7639_v45 = vadd.f32 %v1931_v56, %v7585_v2 }
 0x496   : > { %v1925_v26 = vmul.f32 0.2, %v1909_v13  ;;  %v1906_v41 = vadd.f32 %v7572_v31, %v1884_v63  ;;  %1946 = vmax.xlane.f32.xlu1 %v1945_v29  ;;  %v1928_v19 = vsel %vm1912_vm13, %v1904_v54, %v1920_v33  ;;  %vm1917_vm14 = vcmp.gt.f32.partialorder %v1909_v13, 0.0 }
 0x497   : > { %v7632_v21 = vadd.f32 %v1928_v19, %v7556_v5  ;;  %v1957_v33 = vsel %vm1688_vm1, %v7639_v45, -inf }
 0x498   : > { %v1922_v28 = vmul.f32 0.2, %v1906_v41  ;;  %vm1914_vm15 = vcmp.gt.f32.partialorder %v1906_v41, 0.0  ;;  %v1933_v5 = vsel %vm1917_vm14, %v1909_v13, %v1925_v26 }
 0x499   : > { %v1892_v14 = vpop.permute.xlu1 %1891  ;;  %v1948_v12 = vsel %vm1688_vm1, %v7632_v21, -inf  ;;  %v7649_v29 = vadd.f32 %v1933_v5, %v1047_v27 }
 0x49a   : > { %v1908_v63 = vadd.f32 %v7572_v31, %v1892_v14  ;;  %1949 = vmax.xlane.f32.xlu0 %v1948_v12  ;;  %1952 = vmax.xlane.f32.xlu1 %v1951_v10  ;;  %v1930_v4 = vsel %vm1914_vm15, %v1906_v41, %v1922_v28 }
 0x49b   : > { %v7643_v52 = vadd.f32 %v1930_v4, %v7579_v40  ;;  %v1963_v40 = vsel %vm1688_vm1, %v7649_v29, -inf }
 0x49c   : > { %v1924_v54 = vmul.f32 0.2, %v1908_v63  ;;  %vm1916_vm0 = vcmp.gt.f32.partialorder %v1908_v63, 0.0 }
 0x49d   : > { %v1954_v47 = vsel %vm1688_vm1, %v7643_v52, -inf }
 0x49e   : > { %1955 = vmax.xlane.f32.xlu0 %v1954_v47  ;;  %1958 = vmax.xlane.f32.xlu1 %v1957_v33  ;;  %v1932_v31 = vsel %vm1916_vm0, %v1908_v63, %v1924_v54 }
 0x49f   : > { %v7652_v2 = vadd.f32 %v1932_v31, %v7600_v58 }
 0x4a1   : > { %v1960_v13 = vsel %vm1688_vm1, %v7652_v2, -inf }
 0x4a2   : > { %1961 = vmax.xlane.f32.xlu0 %v1960_v13  ;;  %1964 = vmax.xlane.f32.xlu1 %v1963_v40 }
 0x504   : > { %v1691_v26 = vpop.xlane.xlu1 %1690 }
 0x505   : > { %v1713_v41 = vsub.f32 %v7544_v57, %v1691_v26 }
 0x507   : > { %v1721_v19 = vmul.f32 1.442695, %v1713_v41 }
 0x508   : > { %v1694_v27 = vpop.xlane.xlu0 %1693 }
 0x509   : > { %5989 = vpow2.f32 %v1721_v19  ;;  %v1714_v56 = vsub.f32 %v7553_v49, %v1694_v27 }
 0x50b   : > { %v1723_v28 = vmul.f32 1.442695, %v1714_v56 }
 0x50c   : > { %v1697_v14 = vpop.xlane.xlu0 %1696 }
 0x50d   : > { %5991 = vpow2.f32 %v1723_v28  ;;  %v1715_v58 = vsub.f32 %v7562_v24, %v1697_v14 }
 0x50f   : > { %v1725_v12 = vmul.f32 1.442695, %v1715_v58 }
 0x510   : > { %v1700_v10 = vpop.xlane.xlu1 %1699 }
 0x511   : > { %5993 = vpow2.f32 %v1725_v12  ;;  %v1716_v63 = vsub.f32 %v7575_v0, %v1700_v10 }
 0x513   : > { %v7662_v4 = vpop.eup %5989  ;;  %v1727_v5 = vmul.f32 1.442695, %v1716_v63 }
 0x514   : > { %v1703_v54 = vpop.xlane.xlu0 %1702  ;;  %v1737_v57 = vsel %vm1688_vm1, %v7662_v4, 0.0 }
 0x515   : > { %5995 = vpow2.f32 %v1727_v5  ;;  %v1717_v49 = vsub.f32 %v7588_v55, %v1703_v54  ;;  %1738 = vadd.xlane.f32.xlu0 %v1737_v57 }
 0x516   : > { %v1706_v47 = vpop.xlane.xlu1 %1705 }
 0x517   : > { %v7667_v33 = vpop.eup %5991  ;;  %v1729_v24 = vmul.f32 1.442695, %v1717_v49  ;;  %v1718_v31 = vsub.f32 %v7593_v7, %v1706_v47 }
 0x518   : > { %v1740_v0 = vsel %vm1688_vm1, %v7667_v33, 0.0 }
 0x519   : > { %5997 = vpow2.f32 %v1729_v24  ;;  %v1731_v13 = vmul.f32 1.442695, %v1718_v31  ;;  %1741 = vadd.xlane.f32.xlu1 %v1740_v0 }
 0x51b   : > { %v7672_v40 = vpop.eup %5993  ;;  %5999 = vpow2.f32 %v1731_v13 }
 0x51c   : > { %v1709_v26 = vpop.xlane.xlu0 %1708  ;;  %v1743_v55 = vsel %vm1688_vm1, %v7672_v40, 0.0 }
 0x51d   : > { %v1719_v41 = vsub.f32 %v7605_v42, %v1709_v26  ;;  %1744 = vadd.xlane.f32.xlu0 %v1743_v55 }
 0x51e   : > { %v1712_v19 = vpop.xlane.xlu1 %1711 }
 0x51f   : > { %v7677_v27 = vpop.eup %5995  ;;  %v1733_v7 = vmul.f32 1.442695, %v1719_v41  ;;  %v1720_v56 = vsub.f32 %v7613_v38, %v1712_v19 }
 0x520   : > { %v1944_v28 = vpop.xlane.xlu0 %1943  ;;  %v1746_v14 = vsel %vm1688_vm1, %v7677_v27, 0.0 }
 0x521   : > { %6001 = vpow2.f32 %v1733_v7  ;;  %v1735_v58 = vmul.f32 1.442695, %v1720_v56  ;;  %v1966_v12 = vsub.f32 %v7608_v15, %v1944_v28  ;;  %1747 = vadd.xlane.f32.xlu1 %v1746_v14 }
 0x523   : > { %v7683_v10 = vpop.eup %5997  ;;  %6003 = vpow2.f32 %v1735_v58  ;;  %v1974_v42 = vmul.f32 1.442695, %v1966_v12  ;;  %v1947_v63 = vpop.xlane.xlu1 %1946 }
 0x524   : > { %v1967_v5 = vsub.f32 %v7622_v43, %v1947_v63  ;;  %v1749_v54 = vsel %vm1688_vm1, %v7683_v10, 0.0 }
 0x525   : > { %v7688_v38 = vpop.eup %5999  ;;  %6005 = vpow2.f32 %v1974_v42  ;;  %1750 = vadd.xlane.f32.xlu0 %v1749_v54 }
 0x526   : > { %v1976_v57 = vmul.f32 1.442695, %v1967_v5  ;;  %v1752_v49 = vsel %vm1688_vm1, %v7688_v38, 0.0 }
 0x527   : > { %v1953_v15 = vpop.xlane.xlu1 %1952  ;;  %1753 = vadd.xlane.f32.xlu1 %v1752_v49  ;;  %v1950_v47 = vpop.xlane.xlu0 %1949 }
 0x528   : > { %6007 = vpow2.f32 %v1976_v57  ;;  %v1969_v24 = vsub.f32 %v7628_v59, %v1953_v15  ;;  %v1968_v31 = vsub.f32 %v7632_v21, %v1950_v47 }
 0x52a   : > { %v1980_v43 = vmul.f32 1.442695, %v1969_v24  ;;  %v1978_v0 = vmul.f32 1.442695, %v1968_v31 }
 0x52b   : > { %v7694_v13 = vpop.eup %6001  ;;  %v1959_v26 = vpop.xlane.xlu1 %1958 }
 0x52c   : > { %v1956_v55 = vpop.xlane.xlu0 %1955  ;;  %6009 = vpow2.f32 %v1980_v43  ;;  %v1971_v41 = vsub.f32 %v7639_v45, %v1959_v26  ;;  %v1755_v7 = vsel %vm1688_vm1, %v7694_v13, 0.0 }
 0x52d   : > { %v1970_v19 = vsub.f32 %v7643_v52, %v1956_v55  ;;  %v7700_v56 = vpop.eup %6003  ;;  %6011 = vpow2.f32 %v1978_v0  ;;  %1756 = vadd.xlane.f32.xlu0 %v1755_v7 }
 0x52e   : > { %v1984_v59 = vmul.f32 1.442695, %v1971_v41  ;;  %v1758_v28 = vsel %vm1688_vm1, %v7700_v56, 0.0 }
 0x52f   : > { %v1982_v21 = vmul.f32 1.442695, %v1970_v19  ;;  %v7704_v14 = vpop.eup %6005  ;;  %v1965_v58 = vpop.xlane.xlu1 %1964  ;;  %1759 = vadd.xlane.f32.xlu1 %v1758_v28 }
 0x530   : > { %v1962_v12 = vpop.xlane.xlu0 %1961  ;;  %6013 = vpow2.f32 %v1984_v59  ;;  %v1973_v45 = vsub.f32 %v7649_v29, %v1965_v58  ;;  %v1990_v42 = vsel %vm1688_vm1, %v7704_v14, 0.0 }
 0x531   : > { %v1972_v52 = vsub.f32 %v7652_v2, %v1962_v12  ;;  %6015 = vpow2.f32 %v1982_v21  ;;  %1991 = vadd.xlane.f32.xlu0 %v1990_v42 }
 0x532   : > { %v7710_v63 = vpop.eup %6007  ;;  %v1988_v5 = vmul.f32 1.442695, %v1973_v45 }
 0x533   : > { %v1986_v54 = vmul.f32 1.442695, %v1972_v52  ;;  %v1993_v57 = vsel %vm1688_vm1, %v7710_v63, 0.0 }
 0x534   : > { %6017 = vpow2.f32 %v1988_v5  ;;  %1994 = vadd.xlane.f32.xlu1 %v1993_v57 }
 0x535   : > { %6019 = vpow2.f32 %v1986_v54 }
 0x536   : > { %v7714_v49 = vpop.eup %6009 }
 0x537   : > { %v7716_v29 = vpop.eup %6011  ;;  %v1999_v2 = vsel %vm1688_vm1, %v7714_v49, 0.0 }
 0x538   : > { %2000 = vadd.xlane.f32.xlu1 %v1999_v2  ;;  %v1996_v15 = vsel %vm1688_vm1, %v7716_v29, 0.0 }
 0x539   : > { %1997 = vadd.xlane.f32.xlu0 %v1996_v15 }
 0x53a   : > { %v7722_v47 = vpop.eup %6013 }
 0x53b   : > { %v7724_v24 = vpop.eup %6015  ;;  %v2005_v31 = vsel %vm1688_vm1, %v7722_v47, 0.0 }
 0x53c   : > { %2006 = vadd.xlane.f32.xlu1 %v2005_v31  ;;  %v2002_v43 = vsel %vm1688_vm1, %v7724_v24, 0.0 }
 0x53d   : > { %2003 = vadd.xlane.f32.xlu0 %v2002_v43 }
 0x53e   : > { %v7730_v0 = vpop.eup %6017 }
 0x53f   : > { %v7732_v26 = vpop.eup %6019  ;;  %v2011_v55 = vsel %vm1688_vm1, %v7730_v0, 0.0 }
 0x540   : > { %2012 = vadd.xlane.f32.xlu1 %v2011_v55  ;;  %v2008_v41 = vsel %vm1688_vm1, %v7732_v26, 0.0 }
 0x541   : > { %2009 = vadd.xlane.f32.xlu0 %v2008_v41 }
 0x5a2   : > { %v1739_v19 = vpop.xlane.xlu0 %1738 }
 0x5a3   : > { %6021 = vrcp.f32 %v1739_v19 }
 0x5a6   : > { %v1742_v7 = vpop.xlane.xlu1 %1741 }
 0x5a7   : > { %6023 = vrcp.f32 %v1742_v7 }
 0x5aa   : > { %v1745_v59 = vpop.xlane.xlu0 %1744 }
 0x5ab   : > { %6025 = vrcp.f32 %v1745_v59 }
 0x5ad   : > { %v6022_v28 = vpop.eup %6021 }
 0x5ae   : > { %v1748_v21 = vpop.xlane.xlu1 %1747  ;;  %v1762_v45 = vmul.f32 %v6022_v28, %v7662_v4 }
 0x5af   : > { %6027 = vrcp.f32 %v1748_v21 }
 0x5b1   : > { %v6024_v58 = vpop.eup %6023 }
 0x5b2   : > { %v1751_v12 = vpop.xlane.xlu0 %1750  ;;  %v1764_v52 = vmul.f32 %v6024_v58, %v7667_v33 }
 0x5b3   : > { %6029 = vrcp.f32 %v1751_v12 }
 0x5b4   : > { %v1754_v42 = vpop.xlane.xlu1 %1753  ;;  %v1777_v5 = vpack.c.bf16 %v1764_v52, %v1762_v45 }
 0x5b5   : > { %6031 = vrcp.f32 %v1754_v42  ;;  %v6026_v54 = vpop.eup %6025 }
 0x5b6   : > { %5446 = vmatprep.mubr.msk.bf16.mxu1 %vm1688_vm1, %v1777_v5  ;;  %v1766_v2 = vmul.f32 %v6026_v54, %v7672_v40 }
 0x5b9   : > { %v6028_v57 = vpop.eup %6027 }
 0x5ba   : > { %v1768_v15 = vmul.f32 %v6028_v57, %v7677_v27  ;;  %v1757_v31 = vpop.xlane.xlu0 %1756 }
 0x5bb   : > { %6033 = vrcp.f32 %v1757_v31 }
 0x5bc   : > { %v1778_v43 = vpack.c.bf16 %v1768_v15, %v1766_v2  ;;  %v1760_v55 = vpop.xlane.xlu1 %1759 }
 0x5bd   : > { %v6030_v41 = vpop.eup %6029  ;;  %6035 = vrcp.f32 %v1760_v55 }
 0x5be   : > { %v1992_v4 = vpop.xlane.xlu0 %1991  ;;  %5447 = vmatmul.mubr.msk.bf16.vlgmr.msra.gmra.mrb[32].mxu1 %vm1688_vm1, %v1778_v43  ;;  %v1770_v19 = vmul.f32 %v6030_v41, %v7683_v10 }
 0x5bf   : > { %v6032_v33 = vpop.eup %6031  ;;  %5455 = vmatpush3.bf16.msra.mxu1 %v7518_v3  ;;  %6037 = vrcp.f32 %v1992_v4 }
 0x5c0   : > { %5456 = vmatprep.subr.bf16.mxu1 %v7520_v17  ;;  %v1772_v40 = vmul.f32 %v6032_v33, %v7688_v38 }
 0x5c1   : > { %v1995_v27 = vpop.xlane.xlu1 %1994 }
 0x5c2   : > { %6039 = vrcp.f32 %v1995_v27  ;;  %v1779_v7 = vpack.c.bf16 %v1772_v40, %v1770_v19 }
 0x5c3   : > { %5457 = vmatpush3.bf16.msra.mxu1 %v7520_v17 }
 0x5c4   : > { %5458 = vmatprep.subr.bf16.mxu1 %v7522_v35  ;;  %5450 = vmatprep.mubr.msk.bf16.mxu1 %vm1688_vm1, %v1779_v7 }
 0x5c5   : > { %v6034_v59 = vpop.eup %6033  ;;  %v2001_v21 = vpop.xlane.xlu1 %2000 }
 0x5c6   : > { %6041 = vrcp.f32 %v2001_v21  ;;  %v1998_v3 = vpop.xlane.xlu0 %1997  ;;  %v1774_v10 = vmul.f32 %v6034_v59, %v7694_v13 }
 0x5c7   : > { %v6036_v28 = vpop.eup %6035  ;;  %6043 = vrcp.f32 %v1998_v3  ;;  %5459 = vmatpush3.bf16.msra.mxu1 %v7522_v35  ;;  %v2135_v3 = vld [vmem:[#allocation14] sm:$0x3] }
 0x5c8   : > { %5460 = vmatprep.subr.bf16.mxu1 %v7524_v61  ;;  %v1776_v38 = vmul.f32 %v6036_v28, %v7700_v56  ;;  %v2140_v28 = vrot.slane %v2135_v3, %v7334_v1 }
 0x5c9   : > { %v2007_v58 = vpop.xlane.xlu1 %2006  ;;  %v6038_v17 = vpop.eup %6037 }
 0x5ca   : > { %6045 = vrcp.f32 %v2007_v58  ;;  %v2004_v12 = vpop.xlane.xlu0 %2003  ;;  %v1780_v45 = vpack.c.bf16 %v1776_v38, %v1774_v10  ;;  %v2015_v35 = vmul.f32 %v6038_v17, %v7704_v14 }
 0x5cb   : > { %6047 = vrcp.f32 %v2004_v12  ;;  %5461 = vmatpush3.bf16.msra.mxu1 %v7524_v61 }
 0x5cc   : > { %v6040_v52 = vpop.eup %6039  ;;  %5451 = vmatmul.mubr.msk.bf16.gmra.mrb[36].mxu1 %vm1688_vm1, %v1780_v45 }
 0x5cd   : > { %v2013_v42 = vpop.xlane.xlu1 %2012  ;;  %v2017_v5 = vmul.f32 %v6040_v52, %v7710_v63 }
 0x5ce   : > { %6049 = vrcp.f32 %v2013_v42  ;;  %v2010_v13 = vpop.xlane.xlu0 %2009 }
 0x5cf   : > { %6051 = vrcp.f32 %v2010_v13  ;;  %v2030_v56 = vpack.c.bf16 %v2017_v5, %v2015_v35 }
 0x5d0   : > { %v6042_v54 = vpop.eup %6041 }
 0x5d1   : > { %v6044_v57 = vpop.eup %6043  ;;  %v2021_v2 = vmul.f32 %v6042_v54, %v7714_v49  ;;  %5462 = vmatprep.mubr.msk.bf16.mxu1 %vm1688_vm1, %v2030_v56 }
 0x5d2   : > { %v2019_v61 = vmul.f32 %v6044_v57, %v7716_v29 }
 0x5d4   : > { %v6046_v15 = vpop.eup %6045  ;;  %v2031_v31 = vpack.c.bf16 %v2021_v2, %v2019_v61 }
 0x5d5   : > { %v6048_v43 = vpop.eup %6047  ;;  %v2025_v55 = vmul.f32 %v6046_v15, %v7722_v47 }
 0x5d6   : > { %5463 = vmatmul.mubr.msk.bf16.vlgmr.msra.gmra.mrb[40].mxu1 %vm1688_vm1, %v2031_v31  ;;  %v2023_v14 = vmul.f32 %v6048_v43, %v7724_v24 }
 0x5d8   : > { %v6050_v63 = vpop.eup %6049  ;;  %v2032_v41 = vpack.c.bf16 %v2025_v55, %v2023_v14 }
 0x5d9   : > { %v6052_v4 = vpop.eup %6051  ;;  %v2029_v33 = vmul.f32 %v6050_v63, %v7730_v0  ;;  %v2144_v0 = vrot.slane %v2135_v3, %v7332_v62  ;;  %v5789_v3 = vld [vmem:[%s8865_s18 + $0x124] ss:$8 sps:$4 sm:$0xff]  }
 0x5da   : > { %5466 = vmatprep.mubr.msk.bf16.mxu1 %vm1688_vm1, %v2032_v41  ;;  %v2027_v49 = vmul.f32 %v6052_v4, %v7732_v26 }
 0x5dc   : > { %v2033_v19 = vpack.c.bf16 %v2029_v33, %v2027_v49 }
 0x5de   : > { %5467 = vmatmul.mubr.msk.bf16.gmra.mrb[44].mxu1 %vm1688_vm1, %v2033_v19 }
 0x691   : > { %v5448_v29 = vpop.f32.mrb[32].mxu1 }
 0x692   : > { %v1827_v40 = vpop.f32.mrb[33].mxu1  ;;  %v7783_v5 = vadd.f32 %v5448_v29, %v2140_v28 }
 0x693   : > { %v5449_v27 = vpop.f32.mrb[34].mxu1  ;;  %v7771_v58 = vadd.f32 %v2140_v28, %v1827_v40 }
 0x694   : > { %v1830_v47 = vpop.f32.mrb[35].mxu1  ;;  %v7789_v54 = vadd.f32 %v5449_v27, %v2140_v28 }
 0x695   : > { %v7775_v45 = vadd.f32 %v2140_v28, %v1830_v47 }
 0x69f   : > { %v5452_v7 = vpop.f32.mrb[36].mxu1 }
 0x6a0   : > { %v1843_v59 = vpop.f32.mrb[37].mxu1  ;;  %v7807_v49 = vadd.f32 %v5452_v7, %v2140_v28  ;;  %v5781_v7 = vld [vmem:[%s8865_s18 + $0x100] ss:$8 sps:$4 sm:$0xff]  }
 0x6a1   : > { %v5453_v21 = vpop.f32.mrb[38].mxu1  ;;  %v7793_v15 = vadd.f32 %v2140_v28, %v1843_v59  ;;  %v5783_v59 = vld [vmem:[%s8865_s18 + $0x104] ss:$8 sps:$4 sm:$0xff]  }
 0x6a2   : > { %v1846_v24 = vpop.f32.mrb[39].mxu1  ;;  %v7813_v40 = vadd.f32 %v5453_v21, %v2140_v28  ;;  %v5786_v21 = vld [vmem:[%s8865_s18 + $0x114] ss:$8 sps:$4 sm:$0xff]   ;;  %2641 = vmatprep.subr.bf16.mxu1 %v5783_v59 }
 0x6a3   : > { %v7799_v63 = vadd.f32 %v2140_v28, %v1846_v24  ;;  %2642 = vmatpush1.bf16.msra.mxu1 %v5781_v7  ;;  %v5784_v24 = vld [vmem:[%s8865_s18 + $0x110] ss:$8 sps:$4 sm:$0xff]   ;;  %v5787_v28 = vld [vmem:[%s8865_s18 + $0x120] ss:$8 sps:$4 sm:$0xff]  }
 0x6a4   : > { %2643 = vmatprep.subr.bf16.mxu1 %v5786_v21 }
 0x6a7   : > { %2644 = vmatpush1.bf16.msra.mxu1 %v5784_v24 }
 0x6a8   : > { %2645 = vmatprep.subr.bf16.mxu1 %v5789_v3 }
 0x6a9   : > { %v5464_v10 = vpop.f32.mrb[40].mxu1 }
 0x6aa   : > { %v2080_v38 = vpop.f32.mrb[41].mxu1  ;;  %v7777_v52 = vadd.f32 %v5464_v10, %v2144_v0  ;;  %v5790_v10 = vld [vmem:[%s8865_s18 + $0x130] ss:$8 sps:$4 sm:$0xff]  }
 0x6ab   : > { %v7773_v26 = vadd.f32 %v2144_v0, %v2080_v38  ;;  %v5465_v17 = vpop.f32.mrb[42].mxu1  ;;  %2646 = vmatpush1.bf16.msra.mxu1 %v5787_v28  ;;  %v5795_v38 = vld [vmem:[%s8865_s18 + $0x144] ss:$8 sps:$4 sm:$0xff]  }
 0x6ac   : > { %v2083_v12 = vpop.f32.mrb[43].mxu1  ;;  %v7785_v13 = vadd.f32 %v5465_v17, %v2144_v0  ;;  %v2169_v2 = vadd.f32 %v7777_v52, %v7783_v5  ;;  %v5793_v17 = vld [vmem:[%s8865_s18 + $0x140] ss:$8 sps:$4 sm:$0xff]  }
 0x6ad   : > { %v7779_v42 = vadd.f32 %v2144_v0, %v2083_v12  ;;  %v2163_v35 = vadd.f32 %v7773_v26, %v7771_v58  ;;  %v5798_v12 = vld [vmem:[%s8865_s18 + $0x154] ss:$8 sps:$4 sm:$0xff]  }
 0x6ae   : > { %v2172_v55 = vadd.f32 %v7785_v13, %v7789_v54 }
 0x6af   : > { %2164 = vadd.xlane.f32.xlu0 %v2163_v35  ;;  %v2166_v56 = vadd.f32 %v7779_v42, %v7775_v45  ;;  %v5796_v35 = vld [vmem:[%s8865_s18 + $0x150] ss:$8 sps:$4 sm:$0xff]  }
 0x6b1   : > { %2167 = vadd.xlane.f32.xlu1 %v2166_v56  ;;  %v5468_v57 = vpop.f32.mrb[44].mxu1  ;;  %v5801_v56 = vld [vmem:[%s8865_s18 + $0x164] ss:$8 sps:$4 sm:$0xff]  }
 0x6b2   : > { %v2096_v61 = vpop.f32.mrb[45].mxu1  ;;  %v7801_v41 = vadd.f32 %v5468_v57, %v2144_v0  ;;  %v5799_v57 = vld [vmem:[%s8865_s18 + $0x160] ss:$8 sps:$4 sm:$0xff]  }
 0x6b3   : > { %v7795_v31 = vadd.f32 %v2144_v0, %v2096_v61  ;;  %2170 = vadd.xlane.f32.xlu0 %v2169_v2  ;;  %v5469_v43 = vpop.f32.mrb[46].mxu1  ;;  %v5804_v2 = vld [vmem:[%s8865_s18 + $0x174] ss:$8 sps:$4 sm:$0xff]   ;;  %v5802_v61 = vld [vmem:[%s8865_s18 + $0x170] ss:$8 sps:$4 sm:$0xff]  }
 0x6b4   : > { %v2099_v14 = vpop.f32.mrb[47].mxu1  ;;  %v7809_v19 = vadd.f32 %v5469_v43, %v2144_v0  ;;  %v2181_v27 = vadd.f32 %v7801_v41, %v7807_v49  ;;  %v5807_v43 = vld [vmem:[%s8865_s18 + $0x184] ss:$8 sps:$4 sm:$0xff]  }
 0x6b5   : > { %v7803_v4 = vadd.f32 %v2144_v0, %v2099_v14  ;;  %2173 = vadd.xlane.f32.xlu1 %v2172_v55  ;;  %v2175_v33 = vadd.f32 %v7795_v31, %v7793_v15  ;;  %v5792_v0 = vld [vmem:[%s8865_s18 + $0x134] ss:$8 sps:$4 sm:$0xff]   ;;  %v5805_v55 = vld [vmem:[%s8865_s18 + $0x180] ss:$8 sps:$4 sm:$0xff]  }
 0x6b6   : > { %v2184_v47 = vadd.f32 %v7809_v19, %v7813_v40  ;;  %2647 = vmatprep.subr.bf16.mxu1 %v5792_v0  ;;  %v5810_v14 = vld [vmem:[%s8865_s18 + $0x194] ss:$8 sps:$4 sm:$0xff]  }
 0x6b7   : > { %2176 = vadd.xlane.f32.xlu0 %v2175_v33  ;;  %v2178_v29 = vadd.f32 %v7803_v4, %v7799_v63  ;;  %2648 = vmatpush1.bf16.msra.mxu1 %v5790_v10  ;;  %v5808_v33 = vld [vmem:[%s8865_s18 + $0x190] ss:$8 sps:$4 sm:$0xff]  }
 0x6b8   : > { %2649 = vmatprep.subr.bf16.mxu1 %v5795_v38 }
 0x6b9   : > { %2179 = vadd.xlane.f32.xlu1 %v2178_v29 }
 0x6bb   : > { %2182 = vadd.xlane.f32.xlu0 %v2181_v27  ;;  %2650 = vmatpush1.bf16.msra.mxu1 %v5793_v17 }
 0x6bc   : > { %2651 = vmatprep.subr.bf16.mxu1 %v5798_v12 }
 0x6bd   : > { %2185 = vadd.xlane.f32.xlu1 %v2184_v47 }
 0x6bf   : > { %2652 = vmatpush1.bf16.msra.mxu1 %v5796_v35 }
 0x6c0   : > { %2653 = vmatprep.subr.bf16.mxu1 %v5801_v56 }
 0x6c3   : > { %2654 = vmatpush1.bf16.msra.mxu1 %v5799_v57 }
 0x6c4   : > { %2655 = vmatprep.subr.bf16.mxu1 %v5804_v2 }
 0x6c7   : > { %2656 = vmatpush1.bf16.msra.mxu1 %v5802_v61 }
 0x6c8   : > { %2657 = vmatprep.subr.bf16.mxu1 %v5807_v43 }
 0x6cb   : > { %2658 = vmatpush1.bf16.msra.mxu1 %v5805_v55 }
 0x6cc   : > { %2659 = vmatprep.subr.bf16.mxu1 %v5810_v14 }
 0x6cf   : > { %2660 = vmatpush1.bf16.msra.mxu1 %v5808_v33 }
 0x73c   : > { %v2165_v29 = vpop.xlane.xlu0 %2164 }
 0x73d   : > { %v2188_v27 = vmul.f32 0.00390625, %v2165_v29 }
 0x73e   : > { %v2168_v47 = vpop.xlane.xlu1 %2167 }
 0x73f   : > { %v7880_v7 = vsub.f32 %v7771_v58, %v2188_v27  ;;  %v7883_v59 = vsub.f32 %v7773_v26, %v2188_v27  ;;  %v2189_v21 = vmul.f32 0.00390625, %v2168_v47 }
 0x740   : > { %v2171_v24 = vpop.xlane.xlu0 %2170 }
 0x741   : > { %v7886_v3 = vsub.f32 %v7775_v45, %v2189_v21  ;;  %v7889_v28 = vsub.f32 %v7779_v42, %v2189_v21  ;;  %v2190_v0 = vmul.f32 0.00390625, %v2171_v24  ;;  %v2212_v10 = vmul.f32 %v7880_v7, %v7880_v7 }
 0x742   : > { %v2174_v38 = vpop.xlane.xlu1 %2173  ;;  %v2213_v58 = vmul.f32 %v7883_v59, %v7883_v59 }
 0x743   : > { %v7896_v17 = vsub.f32 %v7783_v5, %v2190_v0  ;;  %v7899_v26 = vsub.f32 %v7777_v52, %v2190_v0  ;;  %v2191_v12 = vmul.f32 0.00390625, %v2174_v38  ;;  %v2214_v45 = vmul.f32 %v7886_v3, %v7886_v3 }
 0x744   : > { %v2177_v42 = vpop.xlane.xlu0 %2176  ;;  %v2228_v35 = vadd.f32 %v2213_v58, %v2212_v10  ;;  %v2215_v56 = vmul.f32 %v7889_v28, %v7889_v28 }
 0x745   : > { %v7906_v57 = vsub.f32 %v7789_v54, %v2191_v12  ;;  %v7909_v2 = vsub.f32 %v7785_v13, %v2191_v12  ;;  %v2192_v5 = vmul.f32 0.00390625, %v2177_v42  ;;  %v2216_v52 = vmul.f32 %v7896_v17, %v7896_v17 }
 0x746   : > { %2229 = vadd.xlane.f32.xlu0 %v2228_v35  ;;  %v2180_v61 = vpop.xlane.xlu1 %2179  ;;  %v2231_v43 = vadd.f32 %v2215_v56, %v2214_v45  ;;  %v2217_v55 = vmul.f32 %v7899_v26, %v7899_v26 }
 0x747   : > { %v7916_v14 = vsub.f32 %v7793_v15, %v2192_v5  ;;  %v7919_v33 = vsub.f32 %v7795_v31, %v2192_v5  ;;  %v2193_v54 = vmul.f32 0.00390625, %v2180_v61  ;;  %v2218_v13 = vmul.f32 %v7906_v57, %v7906_v57 }
 0x748   : > { %2232 = vadd.xlane.f32.xlu1 %v2231_v43  ;;  %v2183_v29 = vpop.xlane.xlu0 %2182  ;;  %v2234_v27 = vadd.f32 %v2217_v55, %v2216_v52  ;;  %v2219_v47 = vmul.f32 %v7909_v2, %v7909_v2  ;;  %v5811_v55 = vld [vmem:[%s8865_s18 + $0x1a0] ss:$8 sps:$4 sm:$0xff]  }
 0x749   : > { %v7926_v21 = vsub.f32 %v7799_v63, %v2193_v54  ;;  %v7929_v24 = vsub.f32 %v7803_v4, %v2193_v54  ;;  %v2194_v15 = vmul.f32 0.00390625, %v2183_v29  ;;  %v2220_v31 = vmul.f32 %v7916_v14, %v7916_v14  ;;  %v5816_v54 = vld [vmem:[%s8865_s18 + $0x1b4] ss:$8 sps:$4 sm:$0xff]   ;;  %v5819_v29 = vld [vmem:[%s8865_s18 + $0x1c4] ss:$8 sps:$4 sm:$0xff]  }
 0x74a   : > { %2235 = vadd.xlane.f32.xlu0 %v2234_v27  ;;  %v2186_v0 = vpop.xlane.xlu1 %2185  ;;  %v2237_v10 = vadd.f32 %v2219_v47, %v2218_v13  ;;  %v2221_v38 = vmul.f32 %v7919_v33, %v7919_v33  ;;  %v5814_v13 = vld [vmem:[%s8865_s18 + $0x1b0] ss:$8 sps:$4 sm:$0xff]   ;;  %v5817_v27 = vld [vmem:[%s8865_s18 + $0x1c0] ss:$8 sps:$4 sm:$0xff]   ;;  %v5822_v47 = vld [vmem:[%s8865_s18 + $0x1d4] ss:$8 sps:$4 sm:$0xff]  }
 0x74b   : > { %v7936_v58 = vsub.f32 %v7807_v49, %v2194_v15  ;;  %v7939_v12 = vsub.f32 %v7801_v41, %v2194_v15  ;;  %v2195_v63 = vmul.f32 0.00390625, %v2186_v0  ;;  %v2222_v4 = vmul.f32 %v7926_v21, %v7926_v21  ;;  %v5820_v15 = vld [vmem:[%s8865_s18 + $0x1d0] ss:$8 sps:$4 sm:$0xff]   ;;  %v5823_v0 = vld [vmem:[%s8865_s18 + $0x1e0] ss:$8 sps:$4 sm:$0xff]  }
 0x74c   : > { %2238 = vadd.xlane.f32.xlu1 %v2237_v10  ;;  %v2240_v45 = vadd.f32 %v2221_v38, %v2220_v31  ;;  %v2223_v42 = vmul.f32 %v7929_v24, %v7929_v24  ;;  %v5825_v31 = vld [vmem:[%s8865_s18 + $0x1e4] ss:$8 sps:$4 sm:$0xff]   ;;  %v5828_v10 = vld [vmem:[%s8865_s18 + $0x1f4] ss:$8 sps:$4 sm:$0xff]   ;;  %v5826_v38 = vld [vmem:[%s8865_s18 + $0x1f0] ss:$8 sps:$4 sm:$0xff]  }
 0x74d   : > { %v7946_v35 = vsub.f32 %v7813_v40, %v2195_v63  ;;  %v7949_v56 = vsub.f32 %v7809_v19, %v2195_v63  ;;  %v2224_v49 = vmul.f32 %v7936_v58, %v7936_v58  ;;  %v2225_v41 = vmul.f32 %v7939_v12, %v7939_v12  ;;  %v5813_v19 = vld [vmem:[%s8865_s18 + $0x1a4] ss:$8 sps:$4 sm:$0xff]  }
 0x74e   : > { %2241 = vadd.xlane.f32.xlu0 %v2240_v45  ;;  %v2243_v5 = vadd.f32 %v2223_v42, %v2222_v4  ;;  %2661 = vmatprep.subr.bf16.mxu1 %v5813_v19 }
 0x74f   : > { %v2246_v52 = vadd.f32 %v2225_v41, %v2224_v49  ;;  %v2226_v61 = vmul.f32 %v7946_v35, %v7946_v35  ;;  %v2227_v43 = vmul.f32 %v7949_v56, %v7949_v56  ;;  %2662 = vmatpush1.bf16.msra.mxu1 %v5811_v55 }
 0x750   : > { %2244 = vadd.xlane.f32.xlu1 %v2243_v5  ;;  %2663 = vmatprep.subr.bf16.mxu1 %v5816_v54 }
 0x751   : > { %v2249_v40 = vadd.f32 %v2227_v43, %v2226_v61 }
 0x752   : > { %2247 = vadd.xlane.f32.xlu0 %v2246_v52 }
 0x753   : > { %2664 = vmatpush1.bf16.msra.mxu1 %v5814_v13 }
 0x754   : > { %2250 = vadd.xlane.f32.xlu1 %v2249_v40  ;;  %2665 = vmatprep.subr.bf16.mxu1 %v5819_v29  ;;  %v2292_v29 = vld [vmem:[#allocation15] sm:$0x3] }
 0x757   : > { %2666 = vmatpush1.bf16.msra.mxu1 %v5817_v27 }
 0x758   : > { %2667 = vmatprep.subr.bf16.mxu1 %v5822_v47 }
 0x75b   : > { %2668 = vmatpush1.bf16.msra.mxu1 %v5820_v15 }
 0x75c   : > { %2669 = vmatprep.subr.bf16.mxu1 %v5825_v31  ;;  %v2320_v31 = vld [vmem:[#allocation17] sm:$0x3] }
 0x75f   : > { %2670 = vmatpush1.bf16.msra.mxu1 %v5823_v0 }
 0x760   : > { %2671 = vmatprep.subr.bf16.mxu1 %v5828_v10 }
 0x763   : > { %2672 = vmatpush1.bf16.msra.mxu1 %v5826_v38  ;;  %v7996_v38 = vrot.slane %v2292_v29, %v7334_v1 }
 0x7d3   : > { %v2230_v63 = vpop.xlane.xlu0 %2229 }
 0x7d4   : > { %v2252_v4 = vmul.f32 0.00390625, %v2230_v63 }
 0x7d5   : > { %v2233_v45 = vpop.xlane.xlu1 %2232 }
 0x7d6   : > { %v2260_v42 = vadd.f32 1e-05, %v2252_v4  ;;  %v2253_v49 = vmul.f32 0.00390625, %v2233_v45  ;;  %v7999_v4 = vrot.slane %v2292_v29, %v7332_v62 }
 0x7d7   : > { %v2236_v41 = vpop.xlane.xlu0 %2235 }
 0x7d8   : > { %6053 = vrsqrt.f32 %v2260_v42  ;;  %v2261_v5 = vadd.f32 1e-05, %v2253_v49  ;;  %v2254_v52 = vmul.f32 0.00390625, %v2236_v41  ;;  %v8002_v41 = vrot.slane %v2320_v31, %v7334_v1 }
 0x7d9   : > { %v2239_v61 = vpop.xlane.xlu1 %2238 }
 0x7da   : > { %6055 = vrsqrt.f32 %v2261_v5  ;;  %v2262_v43 = vadd.f32 1e-05, %v2254_v52  ;;  %v2255_v40 = vmul.f32 0.00390625, %v2239_v61  ;;  %v2364_v61 = vld [vmem:[#allocation18] sm:$0x3] }
 0x7db   : > { %v2242_v19 = vpop.xlane.xlu0 %2241 }
 0x7dc   : > { %6057 = vrsqrt.f32 %v2262_v43  ;;  %v2263_v55 = vadd.f32 1e-05, %v2255_v40  ;;  %v2256_v54 = vmul.f32 0.00390625, %v2242_v19  ;;  %v8007_v19 = vrot.slane %v2320_v31, %v7332_v62 }
 0x7dd   : > { %v2245_v13 = vpop.xlane.xlu1 %2244 }
 0x7de   : > { %6059 = vrsqrt.f32 %v2263_v55  ;;  %v2264_v27 = vadd.f32 1e-05, %v2256_v54  ;;  %v2257_v47 = vmul.f32 0.00390625, %v2245_v13 }
 0x7df   : > { %v2248_v15 = vpop.xlane.xlu0 %2247 }
 0x7e0   : > { %6061 = vrsqrt.f32 %v2264_v27  ;;  %v2265_v0 = vadd.f32 1e-05, %v2257_v47  ;;  %v2258_v10 = vmul.f32 0.00390625, %v2248_v15 }
 0x7e1   : > { %v2251_v63 = vpop.xlane.xlu1 %2250 }
 0x7e2   : > { %v6054_v45 = vpop.eup %6053  ;;  %6063 = vrsqrt.f32 %v2265_v0  ;;  %v2266_v42 = vadd.f32 1e-05, %v2258_v10  ;;  %v2259_v49 = vmul.f32 0.00390625, %v2251_v63 }
 0x7e3   : > { %v2276_v5 = vmul.f32 %v6054_v45, %v7880_v7  ;;  %v2277_v52 = vmul.f32 %v6054_v45, %v7883_v59  ;;  %v8014_v7 = vrot.slane %v2364_v61, %v7334_v1  ;;  %v8017_v59 = vrot.slane %v2364_v61, %v7332_v62 }
 0x7e4   : > { %v6056_v43 = vpop.eup %6055  ;;  %6065 = vrsqrt.f32 %v2266_v42  ;;  %v2267_v40 = vadd.f32 1e-05, %v2259_v49 }
 0x7e5   : > { %v2304_v55 = vmul.f32 %v7996_v38, %v2276_v5  ;;  %v2278_v54 = vmul.f32 %v6056_v43, %v7886_v3  ;;  %v2279_v13 = vmul.f32 %v6056_v43, %v7889_v28  ;;  %v2305_v29 = vmul.f32 %v7999_v4, %v2277_v52 }
 0x7e6   : > { %v6058_v27 = vpop.eup %6057  ;;  %6067 = vrsqrt.f32 %v2267_v40 }
 0x7e7   : > { %v2332_v47 = vadd.f32 %v8002_v41, %v2304_v55  ;;  %v2306_v15 = vmul.f32 %v7996_v38, %v2278_v54  ;;  %v2280_v0 = vmul.f32 %v6058_v27, %v7896_v17  ;;  %v2281_v3 = vmul.f32 %v6058_v27, %v7899_v26 }
 0x7e8   : > { %v6060_v31 = vpop.eup %6059  ;;  %v2307_v28 = vmul.f32 %v7999_v4, %v2279_v13  ;;  %v2333_v10 = vadd.f32 %v8007_v19, %v2305_v29  ;;  %v8869_v29 = vmax.f32 %v7341_v6, 0.0 }
 0x7e9   : > { %v2334_v63 = vadd.f32 %v8002_v41, %v2306_v15  ;;  %v2282_v45 = vmul.f32 %v6060_v31, %v7906_v57  ;;  %v2283_v42 = vmul.f32 %v6060_v31, %v7909_v2  ;;  %vm2348_vm2 = vcmp.gt.f32.partialorder %v2332_v47, 0.0 }
 0x7ea   : > { %v6062_v49 = vpop.eup %6061  ;;  %v2335_v5 = vadd.f32 %v8007_v19, %v2307_v28  ;;  %vm2349_vm3 = vcmp.gt.f32.partialorder %v2333_v10, 0.0  ;;  %v2377_v52 = vmul.f32 %v8017_v59, %v2333_v10  ;;  %v2376_v17 = vmul.f32 %v8014_v7, %v2332_v47 }
 0x7eb   : > { %v2284_v26 = vmul.f32 %v6062_v49, %v7916_v14  ;;  %v2285_v61 = vmul.f32 %v6062_v49, %v7919_v33  ;;  %vm2350_vm4 = vcmp.gt.f32.partialorder %v2334_v63, 0.0  ;;  %v2378_v43 = vmul.f32 %v8014_v7, %v2334_v63 }
 0x7ec   : > { %v6064_v40 = vpop.eup %6063  ;;  %vm2351_vm5 = vcmp.gt.f32.partialorder %v2335_v5, 0.0  ;;  %v2379_v57 = vmul.f32 %v8017_v59, %v2335_v5  ;;  %v8035_v2 = vsel %vm2349_vm3, %v2333_v10, %v2377_v52  ;;  %v8037_v55 = vsel %vm2348_vm2, %v2332_v47, %v2376_v17 }
 0x7ed   : > { %v2286_v54 = vmul.f32 %v6064_v40, %v7926_v21  ;;  %v2287_v13 = vmul.f32 %v6064_v40, %v7929_v24  ;;  %v2425_v14 = vadd.f32 %v8035_v2, %v8869_v29  ;;  %v8044_v33 = vsel %vm2350_vm4, %v2334_v63, %v2378_v43 }
 0x7ee   : > { %v6066_v27 = vpop.eup %6065  ;;  %v8046_v15 = vsel %vm2351_vm5, %v2335_v5, %v2379_v57  ;;  %v8870_v31 = vmax.f32 %v7343_v8, 0.0  ;;  %v8871_v47 = vmax.f32 %v7345_v9, 0.0  ;;  %v2309_v21 = vmul.f32 %v7999_v4, %v2281_v3 }
 0x7ef   : > { %v2288_v24 = vmul.f32 %v6066_v27, %v7936_v58  ;;  %v2289_v6 = vmul.f32 %v6066_v27, %v7939_v12  ;;  %v8872_v63 = vmax.f32 %v7348_v11, 0.0  ;;  %v2311_v5 = vmul.f32 %v7999_v4, %v2283_v42 }
 0x7f0   : > { %v2424_v28 = vadd.f32 %v8037_v55, %v8870_v31  ;;  %v2426_v10 = vadd.f32 %v8044_v33, %v8871_v47  ;;  %v6068_v52 = vpop.eup %6067  ;;  %v2337_v17 = vadd.f32 %v8007_v19, %v2309_v21  ;;  %v2308_v9 = vmul.f32 %v7996_v38, %v2280_v0 }
 0x7f1   : > { %v2427_v49 = vadd.f32 %v8046_v15, %v8872_v63  ;;  %v2310_v43 = vmul.f32 %v7996_v38, %v2282_v45  ;;  %v2290_v3 = vmul.f32 %v6068_v52, %v7946_v35  ;;  %v2291_v58 = vmul.f32 %v6068_v52, %v7949_v56 }
 0x7f2   : > { %v8061_v8 = vpack.c.bf16 %v2426_v10, %v2424_v28  ;;  %v2339_v11 = vadd.f32 %v8007_v19, %v2311_v5  ;;  %vm2353_vm6 = vcmp.gt.f32.partialorder %v2337_v17, 0.0  ;;  %v2381_v42 = vmul.f32 %v8017_v59, %v2337_v17 }
 0x7f3   : > { %v8068_v12 = vpack.c.bf16 %v2427_v49, %v2425_v14  ;;  %v2336_v40 = vadd.f32 %v8002_v41, %v2308_v9  ;;  %v2338_v57 = vadd.f32 %v8002_v41, %v2310_v43  ;;  %v2313_v56 = vmul.f32 %v7999_v4, %v2285_v61 }
 0x7f4   : > { %vm2355_vm7 = vcmp.gt.f32.partialorder %v2339_v11, 0.0  ;;  %v2383_v35 = vmul.f32 %v8017_v59, %v2339_v11  ;;  %v2315_v0 = vmul.f32 %v7999_v4, %v2287_v13  ;;  %v8080_v45 = vsel %vm2353_vm6, %v2337_v17, %v2381_v42 }
 0x7f5   : > { %2673 = vmatprep.mubr.bf16.mxu1 %v8068_v12  ;;  %2749 = vmatprep.subr.bf16.mxu1 %v8068_v12  ;;  %vm2352_vm8 = vcmp.gt.f32.partialorder %v2336_v40, 0.0  ;;  %vm2354_vm9 = vcmp.gt.f32.partialorder %v2338_v57, 0.0  ;;  %v2380_v29 = vmul.f32 %v8014_v7, %v2336_v40  ;;  %v8873_v27 = vmax.f32 %v7367_v20, 0.0 }
 0x7f6   : > { %2674 = vmatmul.mubr.bf16.vlgmr.msra.gmra.mrb[48].mxu1 %v8061_v8  ;;  %v8084_v14 = vsel %vm2355_vm7, %v2339_v11, %v2383_v35  ;;  %v2382_v61 = vmul.f32 %v8014_v7, %v2338_v57  ;;  %v2341_v13 = vadd.f32 %v8007_v19, %v2313_v56  ;;  %v8874_v28 = vmax.f32 %v7378_v25, 0.0 }
 0x7f7   : > { %2750 = vmatpush1.bf16.xpose.msra.mxu1 %v8061_v8  ;;  %v2429_v31 = vadd.f32 %v8080_v45, %v8873_v27  ;;  %v8094_v10 = vsel %vm2352_vm8, %v2336_v40, %v2380_v29  ;;  %v2343_v21 = vadd.f32 %v8007_v19, %v2315_v0  ;;  %v2312_v63 = vmul.f32 %v7996_v38, %v2284_v26 }
 0x7f8   : > { %v2431_v47 = vadd.f32 %v8084_v14, %v8874_v28  ;;  %v8098_v49 = vsel %vm2354_vm9, %v2338_v57, %v2382_v61  ;;  %v8875_v20 = vmax.f32 %v7371_v22, 0.0  ;;  %vm2357_vm10 = vcmp.gt.f32.partialorder %v2341_v13, 0.0 }
 0x7f9   : > { %v2385_v52 = vmul.f32 %v8017_v59, %v2341_v13  ;;  %v8876_v25 = vmax.f32 %v7373_v23, 0.0  ;;  %vm2359_vm11 = vcmp.gt.f32.partialorder %v2343_v21, 0.0  ;;  %v2387_v43 = vmul.f32 %v8017_v59, %v2343_v21 }
 0x7fa   : > { %v2428_v5 = vadd.f32 %v8094_v10, %v8875_v20  ;;  %v8104_v17 = vpack.c.bf16 %v2431_v47, %v2429_v31  ;;  %v2314_v26 = vmul.f32 %v7996_v38, %v2286_v54  ;;  %v2340_v22 = vadd.f32 %v8002_v41, %v2312_v63 }
 0x7fb   : > { %v2430_v9 = vadd.f32 %v8098_v49, %v8876_v25  ;;  %v8110_v11 = vsel %vm2357_vm10, %v2341_v13, %v2385_v52  ;;  %v2317_v42 = vmul.f32 %v7999_v4, %v2289_v6  ;;  %v8119_v23 = vsel %vm2359_vm11, %v2343_v21, %v2387_v43 }
 0x7fc   : > { %2683 = vmatprep.mubr.bf16.mxu1 %v8104_v17  ;;  %2751 = vmatprep.subr.bf16.mxu1 %v8104_v17  ;;  %v8877_v57 = vmax.f32 %v7397_v34, 0.0  ;;  %v8878_v56 = vmax.f32 %v7408_v39, 0.0  ;;  %v2342_v0 = vadd.f32 %v8002_v41, %v2314_v26  ;;  %vm2356_vm12 = vcmp.gt.f32.partialorder %v2340_v22, 0.0 }
 0x7fd   : > { %v8117_v40 = vpack.c.bf16 %v2430_v9, %v2428_v5  ;;  %v2384_v6 = vmul.f32 %v8014_v7, %v2340_v22  ;;  %v2319_v29 = vmul.f32 %v7999_v4, %v2291_v58  ;;  %v2345_v27 = vadd.f32 %v8007_v19, %v2317_v42  ;;  %v5165_v5 = vld.sshfl [vmem:[#allocation12 + $0x2] sm:$0x11 pattern:$0x75316420] }
 0x7fe   : > { %v2433_v35 = vadd.f32 %v8110_v11, %v8877_v57  ;;  %v2435_v54 = vadd.f32 %v8119_v23, %v8878_v56  ;;  %v2316_v31 = vmul.f32 %v7996_v38, %v2288_v24  ;;  %v2318_v34 = vmul.f32 %v7996_v38, %v2290_v3 }
 0x7ff   : > { %2684 = vmatmul.mubr.bf16.gmra.mrb[52].mxu1 %v8117_v40  ;;  %vm2358_vm13 = vcmp.gt.f32.partialorder %v2342_v0, 0.0  ;;  %v2386_v61 = vmul.f32 %v8014_v7, %v2342_v0  ;;  %v8138_v13 = vsel %vm2356_vm12, %v2340_v22, %v2384_v6  ;;  %v8879_v28 = vmax.f32 %v7401_v36, 0.0 }
 0x800   : > { %2752 = vmatpush1.bf16.xpose.msra.mxu1 %v8117_v40  ;;  %v8135_v39 = vpack.c.bf16 %v2435_v54, %v2433_v35  ;;  %v2347_v4 = vadd.f32 %v8007_v19, %v2319_v29  ;;  %vm2361_vm14 = vcmp.gt.f32.partialorder %v2345_v27, 0.0  ;;  %v2389_v24 = vmul.f32 %v8017_v59, %v2345_v27 }
 0x801   : > { %v2432_v47 = vadd.f32 %v8138_v13, %v8879_v28  ;;  %v8147_v38 = vsel %vm2358_vm13, %v2342_v0, %v2386_v61  ;;  %v2344_v3 = vadd.f32 %v8002_v41, %v2316_v31  ;;  %v2346_v58 = vadd.f32 %v8002_v41, %v2318_v34 }
 0x802   : > { %2693 = vmatprep.mubr.bf16.mxu1 %v8135_v39  ;;  %2753 = vmatprep.subr.bf16.mxu1 %v8135_v39  ;;  %v8880_v21 = vmax.f32 %v7403_v37, 0.0  ;;  %vm2363_vm15 = vcmp.gt.f32.partialorder %v2347_v4, 0.0  ;;  %v2391_v19 = vmul.f32 %v8017_v59, %v2347_v4  ;;  %v8155_v63 = vsel %vm2361_vm14, %v2345_v27, %v2389_v24  ;;  %v5832_v24 = vld [vmem:[%s8867_s23 + $0x88] sm:$0xff]  }
 0x803   : > { %vm2360_vm0 = vcmp.gt.f32.partialorder %v2344_v3, 0.0  ;;  %vm2362_vm2 = vcmp.gt.f32.partialorder %v2346_v58, 0.0  ;;  %v2388_v20 = vmul.f32 %v8014_v7, %v2344_v3  ;;  %v2390_v41 = vmul.f32 %v8014_v7, %v2346_v58 }
 0x804   : > { %v2434_v36 = vadd.f32 %v8147_v38, %v8880_v21  ;;  %v8160_v25 = vsel %vm2363_vm15, %v2347_v4, %v2391_v19  ;;  %v3858_v37 = vpack.c.bf16 %v8046_v15, %v8035_v2  ;;  %v8881_v9 = vmax.f32 %v7427_v48, 0.0  ;;  %v5830_v4 = vld [vmem:[%s8867_s23 + $0x80] sm:$0xff]   ;;  %v5839_v19 = vld [vmem:[%s8867_s23 + $0xe8] sm:$0xff]  }
 0x805   : > { %v8882_v43 = vmax.f32 %v7438_v53, 0.0  ;;  %v3857_v22 = vpack.c.bf16 %v8044_v33, %v8037_v55  ;;  %v3864_v42 = vpack.c.bf16 %v8084_v14, %v8080_v45  ;;  %v8176_v7 = vsel %vm2362_vm2, %v2346_v58, %v2390_v41  ;;  %v5835_v58 = vld [vmem:[%s8867_s23 + $0xd8] sm:$0xff]   ;;  %v5837_v21 = vld [vmem:[%s8867_s23 + $0xe0] sm:$0xff]   ;;  %v5842_v41 = vld [vmem:[%s8867_s23 + $0xb0] sm:$0xff]  }
 0x806   : > { %v8158_v52 = vpack.c.bf16 %v2434_v36, %v2432_v47  ;;  %v2437_v59 = vadd.f32 %v8155_v63, %v8881_v9  ;;  %v2732_v57 = vcombine.high %v5165_v5, %v5165_v5  ;;  %v3863_v48 = vpack.c.bf16 %v8098_v49, %v8094_v10  ;;  %v5829_v47 = vld [vmem:[%s8867_s23 + $0xc0] sm:$0xff]   ;;  %v5843_v9 = vld [vmem:[%s8867_s23 + $0xf8] sm:$0xff]  }
 0x807   : > { %v2439_v26 = vadd.f32 %v8160_v25, %v8882_v43  ;;  %v3870_v35 = vpack.c.bf16 %v8119_v23, %v8110_v11  ;;  %v8184_v56 = vsel %vm2360_vm0, %v2344_v3, %v2388_v20  ;;  %v3869_v54 = vpack.c.bf16 %v8147_v38, %v8138_v13  ;;  %v5834_v3 = vld [vmem:[%s8867_s23 + $0x90] sm:$0xff]   ;;  %v5838_v36 = vld [vmem:[%s8867_s23 + $0xa0] sm:$0xff]   ;;  %v5840_v20 = vld [vmem:[%s8867_s23 + $0xa8] sm:$0xff]  }
 0x808   : > { %2694 = vmatmul.mubr.bf16.gmra.mrb[56].mxu1 %v8158_v52  ;;  %v8883_v6 = vmax.f32 %v7433_v51, 0.0  ;;  %v8884_v31 = vmax.f32 %v7431_v50, 0.0  ;;  %v2746_v61 = vrot.slane %v2732_v57, %v7329_v60  ;;  %v2739_v51 = vrot.slane %v5165_v5, %v7329_v60  ;;  %v5831_v50 = vld [vmem:[%s8867_s23 + $0xc8] sm:$0xff]   ;;  %v5833_v60 = vld [vmem:[%s8867_s23 + $0xd0] sm:$0xff]  }
 0x809   : > { %2754 = vmatpush1.bf16.xpose.msra.mxu1 %v8158_v52  ;;  %v2447_v53 = vpack.c.bf16 %v2439_v26, %v2437_v59  ;;  %v5841_v5 = vld [vmem:[%s8867_s23 + $0xf0] sm:$0xff]   ;;  %v5844_v59 = vld [vmem:[%s8867_s23 + $0xb8] sm:$0xff]   ;;  %v8885_v43 = vld [vmem:[#allocation35_spill] sm:$0xff]  ;;  %v8889_v33 = vpack.c.bf16 %v8160_v25, %v8155_v63  ;;  %v8890_v45 = vpack.c.bf16 %v8176_v7, %v8184_v56 }
 0x80a   : > { %v2438_v29 = vadd.f32 %v8176_v7, %v8883_v6  ;;  %v2436_v34 = vadd.f32 %v8184_v56, %v8884_v31  ;;  %v3514_v13 = vld [vmem:[#allocation14 + $0x2] sm:$0x3] }
 0x80b   : > { %2703 = vmatprep.mubr.bf16.mxu1 %v2447_v53  ;;  %2755 = vmatprep.subr.bf16.mxu1 %v2447_v53  ;;  %v3519_v38 = vrot.slane %v3514_v13, %v7334_v1 }
 0x80c   : > { %v2446_v28 = vpack.c.bf16 %v2438_v29, %v2436_v34 }
 0x810   : > { %2704 = vmatmul.mubr.bf16.gmra.mrb[60].mxu1 %v2446_v28 }
 0x811   : > { %2756 = vmatpush1.bf16.xpose.msra.mxu1 %v2446_v28  ;;  %2781 = vmatprep.mubr.bf16.mxu1 %v2746_v61 }
 0x812   : > { %5382 = vmatprep.subr.bf16.mxu1 %v5829_v47 }
 0x818   : > { %2782 = vmatmul.mubr.bf16.vlgmr.msra.gmra.mrb[64].mxu1 %v2739_v51 }
 0x819   : > { %5383 = vmatpush3.bf16.msra.mxu1 %v5830_v4  ;;  %2950 = vmatprep.mubr.bf16.mxu1 %v8068_v12  ;;  %v5836_v12 = vld [vmem:[%s8867_s23 + $0x98] sm:$0xff]  }
 0x81a   : > { %5384 = vmatprep.subr.bf16.mxu1 %v5831_v50 }
 0x81d   : > { %5385 = vmatpush3.bf16.msra.mxu1 %v5832_v24 }
 0x81e   : > { %5386 = vmatprep.subr.bf16.mxu1 %v5833_v60 }
 0x821   : > { %5387 = vmatpush3.bf16.msra.mxu1 %v5834_v3 }
 0x822   : > { %5388 = vmatprep.subr.bf16.mxu1 %v5835_v58 }
 0x825   : > { %5389 = vmatpush3.bf16.msra.mxu1 %v5836_v12 }
 0x826   : > { %5390 = vmatprep.subr.bf16.mxu1 %v5837_v21 }
 0x829   : > { %5391 = vmatpush3.bf16.msra.mxu1 %v5838_v36 }
 0x82a   : > { %5392 = vmatprep.subr.bf16.mxu1 %v5839_v19 }
 0x82d   : > { %5393 = vmatpush3.bf16.msra.mxu1 %v5840_v20 }
 0x82e   : > { %5394 = vmatprep.subr.bf16.mxu1 %v5841_v5 }
 0x831   : > { %5395 = vmatpush3.bf16.msra.mxu1 %v5842_v41 }
 0x832   : > { %5396 = vmatprep.subr.bf16.mxu1 %v5843_v9 }
 0x835   : > { %5397 = vmatpush3.bf16.msra.mxu1 %v5844_v59 }
 0x836   : > { %3882 = vmatprep.subr.bf16.mxu1 %v7358_v16  ;;  %v8886_v16 = vld [vmem:[#allocation36_spill] sm:$0xff] }
 0x838   : > { %2951 = vmatmul.mubr.bf16.vlgmr.msra.gmra.mrb[68].mxu1 %v8061_v8 }
 0x839   : > { %2958 = vmatprep.mubr.bf16.mxu1 %v8104_v17  ;;  %3883 = vmatpush1.bf16.msra.mxu1 %v7364_v18  ;;  %v8887_v18 = vmov 0  }
 0x83a   : > { %3884 = vmatprep.subr.bf16.mxu1 %v7388_v30 }
 0x83d   : > { %3885 = vmatpush1.bf16.msra.mxu1 %v7394_v32 }
 0x83e   : > { %3886 = vmatprep.subr.bf16.mxu1 %v7418_v44 }
 0x840   : > { %2959 = vmatmul.mubr.bf16.gmra.mrb[72].mxu1 %v8117_v40 }
 0x841   : > { %2966 = vmatprep.mubr.bf16.mxu1 %v8135_v39  ;;  %3887 = vmatpush1.bf16.msra.mxu1 %v7424_v46 }
 0x842   : > { %3888 = vmatprep.subr.bf16.mxu1 %v8885_v43  ;;  %v8888_v43 = vmov 1  }
 0x845   : > { %3889 = vmatpush1.bf16.msra.mxu1 %v8886_v16 }
 0x848   : > { %2967 = vmatmul.mubr.bf16.gmra.mrb[76].mxu1 %v8158_v52 }
 0x849   : > { %2974 = vmatprep.mubr.bf16.mxu1 %v2447_v53 }
 0x850   : > { %2975 = vmatmul.mubr.bf16.gmra.mrb[80].mxu1 %v2446_v28 }
 0x851   : > { %3914 = vmatprep.mubr.bf16.mxu1 %v8887_v18 }
 0x8c9   : > { %v2675_v30 = vpop.f32.mrb[48].mxu1 }
 0x8ca   : > { %v2677_v32 = vpop.f32.mrb[49].mxu1 }
 0x8cb   : > { %v2679_v8 = vpop.f32.mrb[50].mxu1 }
 0x8cc   : > { %v2714_v44 = vpack.c.bf16 %v2679_v8, %v2675_v30  ;;  %v2681_v17 = vpop.f32.mrb[51].mxu1 }
 0x8cd   : > { %v8263_v40 = vpack.c.bf16 %v2681_v17, %v2677_v32 }
 0x8ce   : > { %5470 = vmatprep.subr.bf16.mxu0 %v2714_v44 }
 0x8cf   : > { %5471 = vmatpush3.bf16.msra.mxu0 %v2714_v44 }
 0x8d2   : > { %v2685_v46 = vpop.f32.mrb[52].mxu1 }
 0x8d3   : > { %v2687_v39 = vpop.f32.mrb[53].mxu1 }
 0x8d4   : > { %v2689_v26 = vpop.f32.mrb[54].mxu1 }
 0x8d5   : > { %v2716_v57 = vpack.c.bf16 %v2689_v26, %v2685_v46  ;;  %v2691_v6 = vpop.f32.mrb[55].mxu1 }
 0x8d6   : > { %v8265_v29 = vpack.c.bf16 %v2691_v6, %v2687_v39 }
 0x8d7   : > { %5472 = vmatprep.subr.bf16.mxu0 %v2716_v57 }
 0x8d8   : > { %5473 = vmatpush3.bf16.msra.mxu0 %v2716_v57 }
 0x8db   : > { %v2695_v52 = vpop.f32.mrb[56].mxu1 }
 0x8dc   : > { %v2697_v53 = vpop.f32.mrb[57].mxu1 }
 0x8dd   : > { %v2699_v31 = vpop.f32.mrb[58].mxu1 }
 0x8de   : > { %v2718_v34 = vpack.c.bf16 %v2699_v31, %v2695_v52  ;;  %v2701_v61 = vpop.f32.mrb[59].mxu1 }
 0x8df   : > { %v8267_v28 = vpack.c.bf16 %v2701_v61, %v2697_v53 }
 0x8e0   : > { %5474 = vmatprep.subr.bf16.mxu0 %v2718_v34 }
 0x8e1   : > { %5475 = vmatpush3.bf16.msra.mxu0 %v2718_v34 }
 0x8e3   : > { %v2705_v47 = vpop.f32.mrb[60].mxu1 }
 0x8e4   : > { %v2707_v51 = vpop.f32.mrb[61].mxu1 }
 0x8e5   : > { %v2709_v4 = vpop.f32.mrb[62].mxu1 }
 0x8e6   : > { %v2720_v50 = vpack.c.bf16 %v2709_v4, %v2705_v47  ;;  %v2711_v24 = vpop.f32.mrb[63].mxu1 }
 0x8e7   : > { %v8269_v60 = vpack.c.bf16 %v2711_v24, %v2707_v51 }
 0x8e8   : > { %5476 = vmatprep.subr.bf16.mxu0 %v2720_v50 }
 0x8e9   : > { %5477 = vmatpush3.bf16.msra.mxu0 %v2720_v50 }
 0x8ea   : > { %5486 = vmatprep.subr.bf16.mxu0 %v8263_v40 }
 0x8eb   : > { %v8272_v3 = vpop.f32.mrb[64].mxu1 }
 0x8ec   : > { %v2785_v58 = vpop.f32.mrb[65].mxu1  ;;  %v8279_v51 = vrot.slane %v8272_v3, %v7334_v1 }
 0x8ed   : > { %v2786_v12 = vpop.f32.mrb[66].mxu1 }
 0x8ee   : > { %v2787_v21 = vpop.f32.mrb[67].mxu1 }
 0x90b   : > { %v5398_v36 = vpop.f32.mrb[68].mxu1 }
 0x90c   : > { %v5399_v19 = vpop.f32.mrb[69].mxu1 }
 0x90d   : > { %v5400_v20 = vadd.f32 %v5399_v19, %v5398_v36  ;;  %v5401_v5 = vpop.f32.mrb[70].mxu1  ;;  %v8284_v19 = vld [vmem:[%s7170_s1] sm:$0xff] }
 0x90e   : > { %v5402_v41 = vpop.f32.mrb[71].mxu1 }
 0x90f   : > { %v5403_v9 = vadd.f32 %v5402_v41, %v5401_v5  ;;  %3245 = vperm.xlu1 %5683, %v5400_v20   ;;  %2985 = vperm.xlu0 %5685, %v5400_v20  }
 0x913   : > { %v5404_v59 = vpop.f32.mrb[72].mxu1  ;;  %5686 = vset.pattern.permute.xlu1 %v8887_v18  ;;  %5687 = vset.pattern.permute.xlu0 %v8888_v43 }
 0x914   : > { %v5405_v16 = vpop.f32.mrb[73].mxu1  ;;  %2990 = vperm.xlu1 %5686, %v5403_v9   ;;  %3249 = vperm.xlu0 %5687, %v5403_v9  }
 0x915   : > { %v5406_v30 = vadd.f32 %v5405_v16, %v5404_v59  ;;  %v5407_v32 = vpop.f32.mrb[74].mxu1  ;;  %v8293_v16 = vld [vmem:[%s7170_s1 + $0x8] sm:$0xff] }
 0x916   : > { %v5408_v8 = vpop.f32.mrb[75].mxu1 }
 0x917   : > { %v5409_v44 = vadd.f32 %v5408_v8, %v5407_v32 }
 0x918   : > { %2995 = vperm.xlu1 %5686, %v5406_v30  }
 0x91b   : > { %v5410_v17 = vpop.f32.mrb[76].mxu1 }
 0x91c   : > { %v5411_v46 = vpop.f32.mrb[77].mxu1  ;;  %3000 = vperm.xlu1 %5686, %v5409_v44  }
 0x91d   : > { %v5412_v39 = vadd.f32 %v5411_v46, %v5410_v17  ;;  %v5413_v26 = vpop.f32.mrb[78].mxu1 }
 0x91e   : > { %v5414_v57 = vpop.f32.mrb[79].mxu1 }
 0x91f   : > { %v5415_v6 = vadd.f32 %v5414_v57, %v5413_v26  ;;  %3261 = vperm.xlu0 %5687, %v5412_v39  }
 0x920   : > { %3005 = vperm.xlu1 %5686, %v5412_v39   ;;  %v8302_v39 = vld [vmem:[%s7170_s1 + $0x10] sm:$0xff] }
 0x923   : > { %v5416_v52 = vpop.f32.mrb[80].mxu1 }
 0x924   : > { %v5417_v53 = vpop.f32.mrb[81].mxu1  ;;  %3010 = vperm.xlu1 %5686, %v5415_v6  }
 0x925   : > { %v5418_v31 = vadd.f32 %v5417_v53, %v5416_v52  ;;  %v5419_v34 = vpop.f32.mrb[82].mxu1 }
 0x926   : > { %v5420_v61 = vpop.f32.mrb[83].mxu1 }
 0x927   : > { %v5421_v47 = vadd.f32 %v5420_v61, %v5419_v34  ;;  %3269 = vperm.xlu0 %5687, %v5418_v31   ;;  %v8312_v34 = vrot.slane %v8272_v3, %v7332_v62  ;;  %v8315_v61 = vld [vmem:[%s7170_s1 + $0x18] sm:$0xff] }
 0x928   : > { %3015 = vperm.xlu1 %5686, %v5418_v31  }
 0x92c   : > { %3020 = vperm.xlu1 %5686, %v5421_v47  }
 0x930   : > { %5688 = vset.pattern.permute.xlu1 %v8888_v43 }
 0x931   : > { %3253 = vperm.xlu1 %5688, %v5406_v30  }
 0x935   : > { %3257 = vperm.xlu1 %5688, %v5409_v44  }
 0x939   : > { %3265 = vperm.xlu1 %5688, %v5415_v6  }
 0x93d   : > { %3273 = vperm.xlu1 %5688, %v5421_v47  }
 0x98e   : > { %v3246_v4 = vpop.permute.xlu1 %3245  ;;  %v2986_v50 = vpop.permute.xlu0 %2985 }
 0x98f   : > { %v3027_v24 = vadd.f32 %v8279_v51, %v2986_v50 }
 0x991   : > { %vm3035_vm3 = vcmp.gt.f32.partialorder %v3027_v24, 0.0  ;;  %v3043_v58 = vmul.f32 0.2, %v3027_v24 }
 0x993   : > { %v2991_v12 = vpop.permute.xlu1 %2990  ;;  %v3051_v21 = vsel %vm3035_vm3, %v3027_v24, %v3043_v58  ;;  %v3280_v24 = vadd.f32 %v8312_v34, %v3246_v4  ;;  %v3250_v3 = vpop.permute.xlu0 %3249 }
 0x994   : > { %v3028_v36 = vadd.f32 %v8279_v51, %v2991_v12  ;;  %v8287_v20 = vadd.f32 %v8284_v19, %v3051_v21 }
 0x995   : > { %vm3288_vm9 = vcmp.gt.f32.partialorder %v3280_v24, 0.0 }
 0x996   : > { %vm3036_vm4 = vcmp.gt.f32.partialorder %v3028_v36, 0.0  ;;  %v3044_v5 = vmul.f32 0.2, %v3028_v36  ;;  %v3067_v9 = vsel %vm1688_vm1, %v8287_v20, -inf }
 0x997   : > { %v2996_v41 = vpop.permute.xlu1 %2995  ;;  %3068 = vmax.xlane.f32.xlu0 %v3067_v9 }
 0x998   : > { %v3029_v59 = vadd.f32 %v8279_v51, %v2996_v41  ;;  %v3052_v43 = vsel %vm3036_vm4, %v3028_v36, %v3044_v5  ;;  %v8325_v5 = vld [vmem:[%s7170_s1 + $0x20] sm:$0xff] }
 0x999   : > { %v8296_v30 = vadd.f32 %v8293_v16, %v3052_v43 }
 0x99a   : > { %vm3037_vm5 = vcmp.gt.f32.partialorder %v3029_v59, 0.0  ;;  %v3045_v32 = vmul.f32 0.2, %v3029_v59 }
 0x99b   : > { %v3001_v8 = vpop.permute.xlu1 %3000  ;;  %v3070_v44 = vsel %vm1688_vm1, %v8296_v30, -inf }
 0x99c   : > { %v3030_v17 = vadd.f32 %v8279_v51, %v3001_v8  ;;  %3071 = vmax.xlane.f32.xlu1 %v3070_v44  ;;  %v3053_v46 = vsel %vm3037_vm5, %v3029_v59, %v3045_v32  ;;  %v3296_v59 = vmul.f32 0.2, %v3280_v24  ;;  %v3281_v32 = vadd.f32 %v8312_v34, %v3250_v3 }
 0x99d   : > { %v8305_v26 = vadd.f32 %v8302_v39, %v3053_v46 }
 0x99e   : > { %vm3038_vm6 = vcmp.gt.f32.partialorder %v3030_v17, 0.0  ;;  %v3046_v57 = vmul.f32 0.2, %v3030_v17  ;;  %vm3289_vm11 = vcmp.gt.f32.partialorder %v3281_v32, 0.0 }
 0x99f   : > { %v3006_v6 = vpop.permute.xlu1 %3005  ;;  %v3073_v52 = vsel %vm1688_vm1, %v8305_v26, -inf }
 0x9a0   : > { %v3031_v53 = vadd.f32 %v8279_v51, %v3006_v6  ;;  %3074 = vmax.xlane.f32.xlu0 %v3073_v52  ;;  %v3054_v31 = vsel %vm3038_vm6, %v3030_v17, %v3046_v57  ;;  %v8335_v17 = vld [vmem:[%s7170_s1 + $0x28] sm:$0xff]  ;;  %v3262_v57 = vpop.permute.xlu0 %3261 }
 0x9a1   : > { %v8318_v47 = vadd.f32 %v8315_v61, %v3054_v31  ;;  %v3304_v31 = vsel %vm3288_vm9, %v3280_v24, %v3296_v59 }
 0x9a2   : > { %vm3039_vm7 = vcmp.gt.f32.partialorder %v3031_v53, 0.0  ;;  %v3047_v50 = vmul.f32 0.2, %v3031_v53 }
 0x9a3   : > { %v3011_v58 = vpop.permute.xlu1 %3010  ;;  %v3076_v12 = vsel %vm1688_vm1, %v8318_v47, -inf }
 0x9a4   : > { %v3032_v21 = vadd.f32 %v8279_v51, %v3011_v58  ;;  %3077 = vmax.xlane.f32.xlu0 %v3076_v12  ;;  %v3055_v36 = vsel %vm3039_vm7, %v3031_v53, %v3047_v50  ;;  %v3297_v50 = vmul.f32 0.2, %v3281_v32 }
 0x9a5   : > { %v8328_v41 = vadd.f32 %v8325_v5, %v3055_v36  ;;  %v6155_v36 = vld [vmem:[%s7170_s1 + $0x30] sm:$0xff] }
 0x9a6   : > { %vm3040_vm8 = vcmp.gt.f32.partialorder %v3032_v21, 0.0  ;;  %v3048_v9 = vmul.f32 0.2, %v3032_v21 }
 0x9a7   : > { %v3016_v43 = vpop.permute.xlu1 %3015  ;;  %v3079_v4 = vsel %vm1688_vm1, %v8328_v41, -inf }
 0x9a8   : > { %v3033_v8 = vadd.f32 %v8279_v51, %v3016_v43  ;;  %3080 = vmax.xlane.f32.xlu1 %v3079_v4  ;;  %v3056_v44 = vsel %vm3040_vm8, %v3032_v21, %v3048_v9  ;;  %v3284_v21 = vadd.f32 %v8312_v34, %v3262_v57  ;;  %v3270_v9 = vpop.permute.xlu0 %3269  ;;  %v8348_v4 = vadd.f32 %v8284_v19, %v3304_v31 }
 0x9a9   : > { %v8338_v46 = vadd.f32 %v8335_v17, %v3056_v44 }
 0x9aa   : > { %vm3041_vm10 = vcmp.gt.f32.partialorder %v3033_v8, 0.0  ;;  %v3049_v6 = vmul.f32 0.2, %v3033_v8  ;;  %v3300_v44 = vmul.f32 0.2, %v3284_v21  ;;  %vm3292_vm13 = vcmp.gt.f32.partialorder %v3284_v21, 0.0 }
 0x9ab   : > { %v3021_v52 = vpop.permute.xlu1 %3020  ;;  %v3082_v53 = vsel %vm1688_vm1, %v8338_v46, -inf  ;;  %v3320_v19 = vsel %vm1688_vm1, %v8348_v4, -inf }
 0x9ac   : > { %v3034_v58 = vadd.f32 %v8279_v51, %v3021_v52  ;;  %3083 = vmax.xlane.f32.xlu0 %v3082_v53  ;;  %v3057_v12 = vsel %vm3041_vm10, %v3033_v8, %v3049_v6  ;;  %v3305_v8 = vsel %vm3289_vm11, %v3281_v32, %v3297_v50  ;;  %v3286_v6 = vadd.f32 %v8312_v34, %v3270_v9  ;;  %v6156_v52 = vld [vmem:[%s7170_s1 + $0x38] sm:$0xff]  ;;  %s5023_s1 = sshll.u32 %s8897_s0, 1 }
 0x9ad   : > { %v8345_v3 = vadd.f32 %v6155_v36, %v3057_v12  ;;  %s809_s20 = scalar_lea.vmem %s8891_s17, %s5023_s1 }
 0x9ae   : > { %vm3042_vm12 = vcmp.gt.f32.partialorder %v3034_v58, 0.0  ;;  %v3050_v43 = vmul.f32 0.2, %v3034_v58  ;;  %v3302_v50 = vmul.f32 0.2, %v3286_v6  ;;  %vm3294_vm15 = vcmp.gt.f32.partialorder %v3286_v6, 0.0 }
 0x9af   : > { %v3085_v24 = vsel %vm1688_vm1, %v8345_v3, -inf }
 0x9b0   : > { %3086 = vmax.xlane.f32.xlu1 %v3085_v24  ;;  %v3254_v51 = vpop.permute.xlu1 %3253  ;;  %v3058_v59 = vsel %vm3042_vm12, %v3034_v58, %v3050_v43  ;;  %v8362_v58 = vadd.f32 %v8293_v16, %v3305_v8  ;;  %v3308_v24 = vsel %vm3292_vm13, %v3284_v21, %v3300_v44  ;;  %v3310_v44 = vsel %vm3294_vm15, %v3286_v6, %v3302_v50 }
 0x9b1   : > { %v3282_v57 = vadd.f32 %v8312_v34, %v3254_v51  ;;  %v8355_v53 = vadd.f32 %v6156_v52, %v3058_v59  ;;  %v8373_v8 = vadd.f32 %v8325_v5, %v3308_v24 }
 0x9b2   : > { %v3323_v27 = vsel %vm1688_vm1, %v8362_v58, -inf }
 0x9b3   : > { %vm3290_vm14 = vcmp.gt.f32.partialorder %v3282_v57, 0.0  ;;  %v3298_v31 = vmul.f32 0.2, %v3282_v57  ;;  %v3088_v12 = vsel %vm1688_vm1, %v8355_v53, -inf }
 0x9b4   : > { %3321 = vmax.xlane.f32.xlu1 %v3320_v19  ;;  %v3258_v32 = vpop.permute.xlu1 %3257  ;;  %3089 = vmax.xlane.f32.xlu0 %v3088_v12  ;;  %v3332_v12 = vsel %vm1688_vm1, %v8373_v8, -inf }
 0x9b5   : > { %v3283_v9 = vadd.f32 %v8312_v34, %v3258_v32  ;;  %v3306_v43 = vsel %vm3290_vm14, %v3282_v57, %v3298_v31  ;;  %v8383_v32 = vadd.f32 %v6155_v36, %v3310_v44 }
 0x9b6   : > { %v8366_v51 = vadd.f32 %v8302_v39, %v3306_v43 }
 0x9b7   : > { %vm3291_vm0 = vcmp.gt.f32.partialorder %v3283_v9, 0.0  ;;  %v3299_v59 = vmul.f32 0.2, %v3283_v9 }
 0x9b8   : > { %v3266_v0 = vpop.permute.xlu1 %3265  ;;  %3324 = vmax.xlane.f32.xlu0 %v3323_v27  ;;  %v3326_v16 = vsel %vm1688_vm1, %v8366_v51, -inf }
 0x9b9   : > { %v3285_v57 = vadd.f32 %v8312_v34, %v3266_v0  ;;  %3327 = vmax.xlane.f32.xlu1 %v3326_v16  ;;  %v3307_v21 = vsel %vm3291_vm0, %v3283_v9, %v3299_v59  ;;  %v3338_v9 = vsel %vm1688_vm1, %v8383_v32, -inf }
 0x9ba   : > { %v8377_v39 = vadd.f32 %v8315_v61, %v3307_v21 }
 0x9bb   : > { %vm3293_vm2 = vcmp.gt.f32.partialorder %v3285_v57, 0.0  ;;  %v3301_v19 = vmul.f32 0.2, %v3285_v57 }
 0x9bc   : > { %v3274_v31 = vpop.permute.xlu1 %3273  ;;  %v3329_v27 = vsel %vm1688_vm1, %v8377_v39, -inf }
 0x9bd   : > { %v3287_v5 = vadd.f32 %v8312_v34, %v3274_v31  ;;  %3330 = vmax.xlane.f32.xlu0 %v3329_v27  ;;  %3333 = vmax.xlane.f32.xlu1 %v3332_v12  ;;  %v3309_v0 = vsel %vm3293_vm2, %v3285_v57, %v3301_v19 }
 0x9be   : > { %v8387_v6 = vadd.f32 %v8335_v17, %v3309_v0 }
 0x9bf   : > { %vm3295_vm3 = vcmp.gt.f32.partialorder %v3287_v5, 0.0  ;;  %v3303_v61 = vmul.f32 0.2, %v3287_v5 }
 0x9c0   : > { %v3335_v50 = vsel %vm1688_vm1, %v8387_v6, -inf }
 0x9c1   : > { %3336 = vmax.xlane.f32.xlu0 %v3335_v50  ;;  %3339 = vmax.xlane.f32.xlu1 %v3338_v9  ;;  %v3311_v36 = vsel %vm3295_vm3, %v3287_v5, %v3303_v61 }
 0x9c2   : > { %v8393_v43 = vadd.f32 %v6156_v52, %v3311_v36 }
 0x9c4   : > { %v3341_v34 = vsel %vm1688_vm1, %v8393_v43, -inf }
 0x9c5   : > { %3342 = vmax.xlane.f32.xlu0 %v3341_v34 }
 0xa24   : > { %v3069_v24 = vpop.xlane.xlu0 %3068 }
 0xa25   : > { %v3091_v17 = vsub.f32 %v8287_v20, %v3069_v24 }
 0xa27   : > { %v3099_v59 = vmul.f32 1.442695, %v3091_v17 }
 0xa29   : > { %v3072_v16 = vpop.xlane.xlu1 %3071  ;;  %6069 = vpow2.f32 %v3099_v59 }
 0xa2a   : > { %v3092_v57 = vsub.f32 %v8296_v30, %v3072_v16 }
 0xa2c   : > { %v3101_v21 = vmul.f32 1.442695, %v3092_v57 }
 0xa2d   : > { %v3075_v44 = vpop.xlane.xlu0 %3074 }
 0xa2e   : > { %6071 = vpow2.f32 %v3101_v21  ;;  %v3093_v19 = vsub.f32 %v8305_v26, %v3075_v44 }
 0xa30   : > { %v3103_v31 = vmul.f32 1.442695, %v3093_v19 }
 0xa31   : > { %v3078_v52 = vpop.xlane.xlu0 %3077 }
 0xa32   : > { %6073 = vpow2.f32 %v3103_v31  ;;  %v3094_v27 = vsub.f32 %v8318_v47, %v3078_v52 }
 0xa33   : > { %v8401_v12 = vpop.eup %6069 }
 0xa34   : > { %v3105_v5 = vmul.f32 1.442695, %v3094_v27  ;;  %v3115_v20 = vsel %vm1688_vm1, %v8401_v12, 0.0 }
 0xa35   : > { %v3081_v0 = vpop.xlane.xlu1 %3080  ;;  %3116 = vadd.xlane.f32.xlu1 %v3115_v20 }
 0xa36   : > { %6075 = vpow2.f32 %v3105_v5  ;;  %v3095_v30 = vsub.f32 %v8328_v41, %v3081_v0 }
 0xa38   : > { %v8406_v61 = vpop.eup %6071  ;;  %v3107_v50 = vmul.f32 1.442695, %v3095_v30 }
 0xa39   : > { %v3084_v26 = vpop.xlane.xlu0 %3083  ;;  %v3118_v9 = vsel %vm1688_vm1, %v8406_v61, 0.0 }
 0xa3a   : > { %6077 = vpow2.f32 %v3107_v50  ;;  %v3096_v47 = vsub.f32 %v8338_v46, %v3084_v26  ;;  %3119 = vadd.xlane.f32.xlu0 %v3118_v9 }
 0xa3c   : > { %v8411_v36 = vpop.eup %6073  ;;  %v3109_v34 = vmul.f32 1.442695, %v3096_v47 }
 0xa3d   : > { %v3087_v24 = vpop.xlane.xlu1 %3086  ;;  %v3121_v17 = vsel %vm1688_vm1, %v8411_v36, 0.0 }
 0xa3e   : > { %6079 = vpow2.f32 %v3109_v34  ;;  %v3097_v41 = vsub.f32 %v8345_v3, %v3087_v24  ;;  %3122 = vadd.xlane.f32.xlu1 %v3121_v17 }
 0xa40   : > { %v8416_v59 = vpop.eup %6075  ;;  %v3111_v16 = vmul.f32 1.442695, %v3097_v41 }
 0xa41   : > { %v3322_v57 = vpop.xlane.xlu1 %3321  ;;  %v3090_v21 = vpop.xlane.xlu0 %3089  ;;  %v3124_v46 = vsel %vm1688_vm1, %v8416_v59, 0.0 }
 0xa42   : > { %6081 = vpow2.f32 %v3111_v16  ;;  %v3344_v44 = vsub.f32 %v8348_v4, %v3322_v57  ;;  %v3098_v19 = vsub.f32 %v8355_v53, %v3090_v21  ;;  %3125 = vadd.xlane.f32.xlu0 %v3124_v46 }
 0xa44   : > { %v8422_v31 = vpop.eup %6077  ;;  %v3352_v52 = vmul.f32 1.442695, %v3344_v44  ;;  %v3113_v27 = vmul.f32 1.442695, %v3098_v19 }
 0xa45   : > { %v3325_v3 = vpop.xlane.xlu0 %3324  ;;  %v3127_v5 = vsel %vm1688_vm1, %v8422_v31, 0.0 }
 0xa46   : > { %6083 = vpow2.f32 %v3352_v52  ;;  %v3345_v0 = vsub.f32 %v8362_v58, %v3325_v3  ;;  %v3328_v20 = vpop.xlane.xlu1 %3327  ;;  %3128 = vadd.xlane.f32.xlu1 %v3127_v5 }
 0xa47   : > { %6085 = vpow2.f32 %v3113_v27  ;;  %v3346_v30 = vsub.f32 %v8366_v51, %v3328_v20 }
 0xa48   : > { %v8428_v4 = vpop.eup %6079  ;;  %v3354_v53 = vmul.f32 1.442695, %v3345_v0 }
 0xa49   : > { %v3356_v50 = vmul.f32 1.442695, %v3346_v30  ;;  %v3130_v26 = vsel %vm1688_vm1, %v8428_v4, 0.0 }
 0xa4a   : > { %6087 = vpow2.f32 %v3354_v53  ;;  %v3334_v9 = vpop.xlane.xlu1 %3333  ;;  %3131 = vadd.xlane.f32.xlu0 %v3130_v26  ;;  %v3331_v47 = vpop.xlane.xlu0 %3330 }
 0xa4b   : > { %6089 = vpow2.f32 %v3356_v50  ;;  %v3348_v34 = vsub.f32 %v8373_v8, %v3334_v9  ;;  %v3347_v58 = vsub.f32 %v8377_v39, %v3331_v47 }
 0xa4c   : > { %v8434_v24 = vpop.eup %6081 }
 0xa4d   : > { %v3360_v17 = vmul.f32 1.442695, %v3348_v34  ;;  %v3358_v51 = vmul.f32 1.442695, %v3347_v58  ;;  %v3133_v41 = vsel %vm1688_vm1, %v8434_v24, 0.0 }
 0xa4e   : > { %v3340_v16 = vpop.xlane.xlu1 %3339  ;;  %3134 = vadd.xlane.f32.xlu1 %v3133_v41  ;;  %v3337_v57 = vpop.xlane.xlu0 %3336 }
 0xa4f   : > { %6091 = vpow2.f32 %v3360_v17  ;;  %v3350_v21 = vsub.f32 %v8383_v32, %v3340_v16  ;;  %v3349_v46 = vsub.f32 %v8387_v6, %v3337_v57 }
 0xa50   : > { %v8440_v44 = vpop.eup %6083  ;;  %6093 = vpow2.f32 %v3358_v51 }
 0xa51   : > { %v8442_v8 = vpop.eup %6085  ;;  %v3364_v39 = vmul.f32 1.442695, %v3350_v21  ;;  %v3362_v19 = vmul.f32 1.442695, %v3349_v46  ;;  %v3368_v52 = vsel %vm1688_vm1, %v8440_v44, 0.0 }
 0xa52   : > { %3369 = vadd.xlane.f32.xlu1 %v3368_v52  ;;  %v3136_v27 = vsel %vm1688_vm1, %v8442_v8, 0.0  ;;  %v3343_v3 = vpop.xlane.xlu0 %3342 }
 0xa53   : > { %6095 = vpow2.f32 %v3364_v39  ;;  %3137 = vadd.xlane.f32.xlu0 %v3136_v27  ;;  %v3351_v32 = vsub.f32 %v8393_v43, %v3343_v3 }
 0xa54   : > { %v8449_v6 = vpop.eup %6087  ;;  %6097 = vpow2.f32 %v3362_v19 }
 0xa55   : > { %v8451_v5 = vpop.eup %6089  ;;  %v3366_v0 = vmul.f32 1.442695, %v3351_v32  ;;  %v3371_v20 = vsel %vm1688_vm1, %v8449_v6, 0.0 }
 0xa56   : > { %v3374_v30 = vsel %vm1688_vm1, %v8451_v5, 0.0 }
 0xa57   : > { %6099 = vpow2.f32 %v3366_v0  ;;  %3372 = vadd.xlane.f32.xlu0 %v3371_v20  ;;  %3375 = vadd.xlane.f32.xlu1 %v3374_v30 }
 0xa59   : > { %v8457_v53 = vpop.eup %6091 }
 0xa5a   : > { %v8459_v50 = vpop.eup %6093  ;;  %v3380_v43 = vsel %vm1688_vm1, %v8457_v53, 0.0 }
 0xa5b   : > { %3381 = vadd.xlane.f32.xlu1 %v3380_v43  ;;  %v3377_v26 = vsel %vm1688_vm1, %v8459_v50, 0.0 }
 0xa5c   : > { %3378 = vadd.xlane.f32.xlu0 %v3377_v26 }
 0xa5d   : > { %v8465_v9 = vpop.eup %6095 }
 0xa5e   : > { %v8467_v47 = vpop.eup %6097  ;;  %v3386_v34 = vsel %vm1688_vm1, %v8465_v9, 0.0 }
 0xa5f   : > { %3387 = vadd.xlane.f32.xlu1 %v3386_v34  ;;  %v3383_v58 = vsel %vm1688_vm1, %v8467_v47, 0.0 }
 0xa60   : > { %3384 = vadd.xlane.f32.xlu0 %v3383_v58 }
 0xa61   : > { %v8473_v17 = vpop.eup %6099 }
 0xa62   : > { %v3389_v51 = vsel %vm1688_vm1, %v8473_v17, 0.0 }
 0xa64   : > { %3390 = vadd.xlane.f32.xlu0 %v3389_v51 }
 0xac2   : > { %v3117_v41 = vpop.xlane.xlu1 %3116 }
 0xac3   : > { %6101 = vrcp.f32 %v3117_v41 }
 0xac7   : > { %v3120_v16 = vpop.xlane.xlu0 %3119 }
 0xac8   : > { %6103 = vrcp.f32 %v3120_v16 }
 0xacb   : > { %v3123_v57 = vpop.xlane.xlu1 %3122 }
 0xacc   : > { %6105 = vrcp.f32 %v3123_v57 }
 0xacd   : > { %v6102_v46 = vpop.eup %6101 }
 0xace   : > { %v3140_v52 = vmul.f32 %v6102_v46, %v8401_v12 }
 0xacf   : > { %v3126_v21 = vpop.xlane.xlu0 %3125 }
 0xad0   : > { %6107 = vrcp.f32 %v3126_v21 }
 0xad2   : > { %v6104_v39 = vpop.eup %6103 }
 0xad3   : > { %v3129_v19 = vpop.xlane.xlu1 %3128  ;;  %v3142_v27 = vmul.f32 %v6104_v39, %v8406_v61 }
 0xad4   : > { %6109 = vrcp.f32 %v3129_v19 }
 0xad5   : > { %v3155_v3 = vpack.c.bf16 %v3142_v27, %v3140_v52 }
 0xad6   : > { %v6106_v0 = vpop.eup %6105 }
 0xad7   : > { %5478 = vmatprep.mubr.msk.bf16.mxu0 %vm1688_vm1, %v3155_v3  ;;  %v3132_v32 = vpop.xlane.xlu0 %3131  ;;  %v3144_v30 = vmul.f32 %v6106_v0, %v8411_v36 }
 0xad8   : > { %6111 = vrcp.f32 %v3132_v32 }
 0xada   : > { %v6108_v20 = vpop.eup %6107 }
 0xadb   : > { %v3146_v43 = vmul.f32 %v6108_v20, %v8416_v59  ;;  %v3135_v26 = vpop.xlane.xlu1 %3134 }
 0xadc   : > { %6113 = vrcp.f32 %v3135_v26 }
 0xadd   : > { %v3156_v34 = vpack.c.bf16 %v3146_v43, %v3144_v30 }
 0xade   : > { %v6110_v12 = vpop.eup %6109 }
 0xadf   : > { %v3370_v58 = vpop.xlane.xlu1 %3369  ;;  %5479 = vmatmul.mubr.msk.bf16.vlgmr.msra.gmra.mrb[20].mxu0 %vm1688_vm1, %v3156_v34  ;;  %v3148_v41 = vmul.f32 %v6110_v12, %v8422_v31 }
 0xae0   : > { %5487 = vmatpush3.bf16.msra.mxu0 %v8263_v40  ;;  %v3138_v61 = vpop.xlane.xlu0 %3137 }
 0xae1   : > { %6115 = vrcp.f32 %v3138_v61  ;;  %5488 = vmatprep.subr.bf16.mxu0 %v8265_v29 }
 0xae2   : > { %v6112_v51 = vpop.eup %6111  ;;  %6117 = vrcp.f32 %v3370_v58 }
 0xae3   : > { %v3150_v36 = vmul.f32 %v6112_v51, %v8428_v4 }
 0xae4   : > { %5489 = vmatpush3.bf16.msra.mxu0 %v8265_v29  ;;  %v3373_v59 = vpop.xlane.xlu0 %3372  ;;  %v3376_v16 = vpop.xlane.xlu1 %3375 }
 0xae5   : > { %6119 = vrcp.f32 %v3373_v59  ;;  %5490 = vmatprep.subr.bf16.mxu0 %v8267_v28  ;;  %v3157_v57 = vpack.c.bf16 %v3150_v36, %v3148_v41 }
 0xae6   : > { %6121 = vrcp.f32 %v3376_v16  ;;  %v6114_v21 = vpop.eup %6113 }
 0xae7   : > { %5482 = vmatprep.mubr.msk.bf16.mxu0 %vm1688_vm1, %v3157_v57  ;;  %v3152_v29 = vmul.f32 %v6114_v21, %v8434_v24 }
 0xae8   : > { %5491 = vmatpush3.bf16.msra.mxu0 %v8267_v28  ;;  %v3382_v40 = vpop.xlane.xlu1 %3381 }
 0xae9   : > { %v3379_v46 = vpop.xlane.xlu0 %3378  ;;  %5492 = vmatprep.subr.bf16.mxu0 %v8269_v60 }
 0xaea   : > { %6123 = vrcp.f32 %v3379_v46 }
 0xaeb   : > { %v6116_v31 = vpop.eup %6115  ;;  %6125 = vrcp.f32 %v3382_v40 }
 0xaec   : > { %5493 = vmatpush3.bf16.msra.mxu0 %v8269_v60  ;;  %v3154_v4 = vmul.f32 %v6116_v31, %v8442_v8  ;;  %v6118_v39 = vpop.eup %6117  ;;  %v3388_v19 = vpop.xlane.xlu1 %3387 }
 0xaed   : > { %v3385_v52 = vpop.xlane.xlu0 %3384  ;;  %3923 = vmatprep.subr.bf16.mxu0 %v3858_v37  ;;  %v3393_v3 = vmul.f32 %v6118_v39, %v8440_v44 }
 0xaee   : > { %6127 = vrcp.f32 %v3385_v52  ;;  %v3158_v28 = vpack.c.bf16 %v3154_v4, %v3152_v29 }
 0xaef   : > { %v6120_v27 = vpop.eup %6119  ;;  %6129 = vrcp.f32 %v3388_v19 }
 0xaf0   : > { %5483 = vmatmul.mubr.msk.bf16.gmra.mrb[24].mxu0 %vm1688_vm1, %v3158_v28  ;;  %v3395_v60 = vmul.f32 %v6120_v27, %v8449_v6  ;;  %v6122_v32 = vpop.eup %6121 }
 0xaf1   : > { %v3391_v24 = vpop.xlane.xlu0 %3390  ;;  %v3397_v2 = vmul.f32 %v6122_v32, %v8451_v5  ;;  %v3805_v32 = vld [vmem:[%s7177_s13] sm:$0x3] }
 0xaf2   : > { %6131 = vrcp.f32 %v3391_v24  ;;  %v3408_v8 = vpack.c.bf16 %v3395_v60, %v3393_v3 }
 0xaf4   : > { %v6124_v0 = vpop.eup %6123  ;;  %5494 = vmatprep.mubr.msk.bf16.mxu0 %vm1688_vm1, %v3408_v8  ;;  %v8545_v8 = vpack.c.bf16 %v3805_v32, %v3805_v32  ;;  %v5853_v32 = vld [vmem:[#allocation20 + $0x24] ss:$8 sps:$4 sm:$0xff]  }
 0xaf5   : > { %v3399_v15 = vmul.f32 %v6124_v0, %v8459_v50  ;;  %v6126_v37 = vpop.eup %6125 }
 0xaf6   : > { %v3401_v44 = vmul.f32 %v6126_v37, %v8457_v53  ;;  %5222 = vmatmul.mubr.msk.bf16.vlgmr.msra.gmra.mrb[84].mxu1 %vm1688_vm1, %v8545_v8 }
 0xaf7   : > { %v3409_v20 = vpack.c.bf16 %v3399_v15, %v3397_v2  ;;  %3996 = vmatprep.mubr.bf16.mxu1 %v8887_v18 }
 0xaf8   : > { %v6128_v30 = vpop.eup %6127 }
 0xaf9   : > { %5495 = vmatmul.mubr.msk.bf16.vlgmr.msra.gmra.mrb[28].mxu0 %vm1688_vm1, %v3409_v20  ;;  %v3403_v6 = vmul.f32 %v6128_v30, %v8467_v47  ;;  %v6130_v43 = vpop.eup %6129 }
 0xafa   : > { %3924 = vmatpush1.bf16.msra.mxu0 %v3857_v22  ;;  %v3405_v26 = vmul.f32 %v6130_v43, %v8465_v9 }
 0xafb   : > { %3925 = vmatprep.subr.bf16.mxu0 %v3864_v42  ;;  %v3410_v5 = vpack.c.bf16 %v3403_v6, %v3401_v44 }
 0xafc   : > { %v6132_v50 = vpop.eup %6131 }
 0xafd   : > { %5498 = vmatprep.mubr.msk.bf16.mxu0 %vm1688_vm1, %v3410_v5  ;;  %v3407_v34 = vmul.f32 %v6132_v50, %v8473_v17 }
 0xafe   : > { %3926 = vmatpush1.bf16.msra.mxu0 %v3863_v48 }
 0xaff   : > { %3927 = vmatprep.subr.bf16.mxu0 %v3870_v35  ;;  %v3411_v55 = vpack.c.bf16 %v3407_v34, %v3405_v26  ;;  %v3523_v35 = vrot.slane %v3514_v13, %v7332_v62 }
 0xb01   : > { %5499 = vmatmul.mubr.msk.bf16.gmra.mrb[32].mxu0 %vm1688_vm1, %v3411_v55 }
 0xb02   : > { %3928 = vmatpush1.bf16.msra.mxu0 %v3869_v54  ;;  %3955 = vmatprep.mubr.bf16.mxu0 %v8887_v18 }
 0xb03   : > { %3929 = vmatprep.subr.bf16.mxu0 %v8889_v33 }
 0xb06   : > { %3930 = vmatpush1.bf16.msra.mxu0 %v8890_v45 }
 0xb09   : > { %5223 = vmatmul.mubr.msk.bf16.vlgmr.msra.gmra.mrb[36].mxu0 %vm1688_vm1, %v8545_v8 }
 0xbb2   : > { %v5480_v14 = vpop.f32.mrb[20].mxu0 }
 0xbb3   : > { %v3205_v10 = vpop.f32.mrb[21].mxu0  ;;  %v3530_v12 = vadd.f32 %v5480_v14, %v3519_v38 }
 0xbb4   : > { %v5481_v49 = vpop.f32.mrb[22].mxu0  ;;  %v3526_v25 = vadd.f32 %v3519_v38, %v3205_v10 }
 0xbb5   : > { %v3208_v11 = vpop.f32.mrb[23].mxu0  ;;  %v3532_v41 = vadd.f32 %v5481_v49, %v3519_v38 }
 0xbb6   : > { %v3528_v56 = vadd.f32 %v3519_v38, %v3208_v11 }
 0xbc3   : > { %v5484_v23 = vpop.f32.mrb[24].mxu0 }
 0xbc4   : > { %v3221_v22 = vpop.f32.mrb[25].mxu0  ;;  %v3538_v52 = vadd.f32 %v5484_v23, %v3519_v38 }
 0xbc5   : > { %v5485_v42 = vpop.f32.mrb[26].mxu0  ;;  %v3534_v57 = vadd.f32 %v3519_v38, %v3221_v22 }
 0xbc6   : > { %v3224_v48 = vpop.f32.mrb[27].mxu0  ;;  %v8539_v3 = vadd.f32 %v5485_v42, %v3519_v38 }
 0xbc7   : > { %v3536_v29 = vadd.f32 %v3519_v38, %v3224_v48 }
 0xbcc   : > { %v5496_v54 = vpop.f32.mrb[28].mxu0 }
 0xbcd   : > { %v3458_v63 = vpop.f32.mrb[29].mxu0  ;;  %v3531_v47 = vadd.f32 %v5496_v54, %v3523_v35 }
 0xbce   : > { %v3527_v53 = vadd.f32 %v3523_v35, %v3458_v63  ;;  %v5497_v9 = vpop.f32.mrb[30].mxu0 }
 0xbcf   : > { %v3461_v7 = vpop.f32.mrb[31].mxu0  ;;  %v3533_v61 = vadd.f32 %v5497_v9, %v3523_v35  ;;  %v3548_v36 = vadd.f32 %v3531_v47, %v3530_v12 }
 0xbd0   : > { %v3542_v17 = vadd.f32 %v3527_v53, %v3526_v25  ;;  %v3529_v58 = vadd.f32 %v3523_v35, %v3461_v7 }
 0xbd1   : > { %v3551_v40 = vadd.f32 %v3533_v61, %v3532_v41 }
 0xbd2   : > { %v3545_v51 = vadd.f32 %v3529_v58, %v3528_v56  ;;  %3543 = vadd.xlane.f32.xlu1 %v3542_v17 }
 0xbd4   : > { %3546 = vadd.xlane.f32.xlu0 %v3545_v51  ;;  %v5500_v59 = vpop.f32.mrb[32].mxu0 }
 0xbd5   : > { %v3474_v16 = vpop.f32.mrb[33].mxu0  ;;  %v8535_v4 = vadd.f32 %v5500_v59, %v3523_v35 }
 0xbd6   : > { %v3535_v21 = vadd.f32 %v3523_v35, %v3474_v16  ;;  %3549 = vadd.xlane.f32.xlu1 %v3548_v36  ;;  %v5501_v46 = vpop.f32.mrb[34].mxu0 }
 0xbd7   : > { %v3477_v31 = vpop.f32.mrb[35].mxu0  ;;  %v8537_v28 = vadd.f32 %v5501_v46, %v3523_v35  ;;  %v3560_v60 = vadd.f32 %v8535_v4, %v3538_v52 }
 0xbd8   : > { %v3554_v39 = vadd.f32 %v3535_v21, %v3534_v57  ;;  %v3537_v19 = vadd.f32 %v3523_v35, %v3477_v31  ;;  %3552 = vadd.xlane.f32.xlu0 %v3551_v40 }
 0xbd9   : > { %v3563_v24 = vadd.f32 %v8537_v28, %v8539_v3 }
 0xbda   : > { %v3557_v27 = vadd.f32 %v3537_v19, %v3536_v29  ;;  %3555 = vadd.xlane.f32.xlu1 %v3554_v39 }
 0xbdc   : > { %3558 = vadd.xlane.f32.xlu0 %v3557_v27 }
 0xbde   : > { %3561 = vadd.xlane.f32.xlu1 %v3560_v60  ;;  %v5845_v60 = vld [vmem:[#allocation20] ss:$8 sps:$4 sm:$0xff]  }
 0xbe0   : > { %3564 = vadd.xlane.f32.xlu0 %v3563_v24  ;;  %v5847_v24 = vld [vmem:[#allocation20 + $0x4] ss:$8 sps:$4 sm:$0xff]  }
 0xbe1   : > { %4599 = vmatprep.subr.bf16.mxu0 %v5847_v24  ;;  %v5896_v24 = vld [vmem:[#allocation20 + $0x110] ss:$8 sps:$4 sm:$0xff]  }
 0xbe2   : > { %4600 = vmatpush1.bf16.msra.mxu0 %v5845_v60  ;;  %v5898_v60 = vld [vmem:[#allocation20 + $0x114] ss:$8 sps:$4 sm:$0xff]  }
 0xc5f   : > { %v3544_v0 = vpop.xlane.xlu1 %3543 }
 0xc60   : > { %v3566_v2 = vmul.f32 0.00390625, %v3544_v0  ;;  %v5851_v0 = vld [vmem:[#allocation20 + $0x20] ss:$8 sps:$4 sm:$0xff]  }
 0xc61   : > { %v3547_v15 = vpop.xlane.xlu0 %3546 }
 0xc62   : > { %v8552_v37 = vsub.f32 %v3526_v25, %v3566_v2  ;;  %v8554_v20 = vsub.f32 %v3527_v53, %v3566_v2  ;;  %v3567_v30 = vmul.f32 0.00390625, %v3547_v15  ;;  %v5856_v2 = vld [vmem:[#allocation20 + $0x34] ss:$8 sps:$4 sm:$0xff]   ;;  %v5854_v15 = vld [vmem:[#allocation20 + $0x30] ss:$8 sps:$4 sm:$0xff]  }
 0xc63   : > { %v3550_v44 = vpop.xlane.xlu1 %3549 }
 0xc64   : > { %v3590_v6 = vmul.f32 %v8552_v37, %v8552_v37  ;;  %v3591_v43 = vmul.f32 %v8554_v20, %v8554_v20  ;;  %v8560_v5 = vsub.f32 %v3528_v56, %v3567_v30  ;;  %v8562_v50 = vsub.f32 %v3529_v58, %v3567_v30  ;;  %v5859_v30 = vld [vmem:[#allocation20 + $0x44] ss:$8 sps:$4 sm:$0xff]  }
 0xc65   : > { %v3568_v18 = vmul.f32 0.00390625, %v3550_v44  ;;  %v3553_v26 = vpop.xlane.xlu0 %3552  ;;  %v5857_v44 = vld [vmem:[#allocation20 + $0x40] ss:$8 sps:$4 sm:$0xff]  }
 0xc66   : > { %v3592_v34 = vmul.f32 %v8560_v5, %v8560_v5  ;;  %v3593_v55 = vmul.f32 %v8562_v50, %v8562_v50  ;;  %v3569_v33 = vmul.f32 0.00390625, %v3553_v26  ;;  %v3606_v45 = vadd.f32 %v3591_v43, %v3590_v6  ;;  %v5862_v6 = vld [vmem:[#allocation20 + $0x54] ss:$8 sps:$4 sm:$0xff]   ;;  %v5860_v43 = vld [vmem:[#allocation20 + $0x50] ss:$8 sps:$4 sm:$0xff]  }
 0xc67   : > { %v8568_v14 = vsub.f32 %v3530_v12, %v3568_v18  ;;  %v8570_v10 = vsub.f32 %v3531_v47, %v3568_v18  ;;  %v3556_v49 = vpop.xlane.xlu1 %3555  ;;  %v5865_v18 = vld [vmem:[#allocation20 + $0x64] ss:$8 sps:$4 sm:$0xff]   ;;  %v5863_v26 = vld [vmem:[#allocation20 + $0x60] ss:$8 sps:$4 sm:$0xff]  }
 0xc68   : > { %v8572_v11 = vsub.f32 %v3532_v41, %v3569_v33  ;;  %v8574_v23 = vsub.f32 %v3533_v61, %v3569_v33  ;;  %v3570_v22 = vmul.f32 0.00390625, %v3556_v49  ;;  %3607 = vadd.xlane.f32.xlu1 %v3606_v45  ;;  %v3609_v42 = vadd.f32 %v3593_v55, %v3592_v34  ;;  %v5868_v34 = vld [vmem:[#allocation20 + $0x74] ss:$8 sps:$4 sm:$0xff]   ;;  %v5866_v55 = vld [vmem:[#allocation20 + $0x70] ss:$8 sps:$4 sm:$0xff]  }
 0xc69   : > { %v3594_v48 = vmul.f32 %v8568_v14, %v8568_v14  ;;  %v3595_v13 = vmul.f32 %v8570_v10, %v8570_v10  ;;  %v3559_v38 = vpop.xlane.xlu0 %3558  ;;  %v5871_v33 = vld [vmem:[#allocation20 + $0x84] ss:$8 sps:$4 sm:$0xff]   ;;  %v5869_v45 = vld [vmem:[#allocation20 + $0x80] ss:$8 sps:$4 sm:$0xff]   ;;  %v5874_v49 = vld [vmem:[#allocation20 + $0x94] ss:$8 sps:$4 sm:$0xff]  }
 0xc6a   : > { %v3596_v35 = vmul.f32 %v8572_v11, %v8572_v11  ;;  %v3597_v54 = vmul.f32 %v8574_v23, %v8574_v23  ;;  %v8584_v63 = vsub.f32 %v3534_v57, %v3570_v22  ;;  %v8586_v25 = vsub.f32 %v3535_v21, %v3570_v22  ;;  %3610 = vadd.xlane.f32.xlu0 %v3609_v42  ;;  %v5872_v22 = vld [vmem:[#allocation20 + $0x90] ss:$8 sps:$4 sm:$0xff]   ;;  %v5877_v42 = vld [vmem:[#allocation20 + $0xa4] ss:$8 sps:$4 sm:$0xff]  }
 0xc6b   : > { %v3571_v53 = vmul.f32 0.00390625, %v3559_v38  ;;  %v3562_v9 = vpop.xlane.xlu1 %3561  ;;  %v3612_v7 = vadd.f32 %v3595_v13, %v3594_v48  ;;  %v3916_v48 = vpop.f32.mrb[84].mxu1 }
 0xc6c   : > { %v3598_v56 = vmul.f32 %v8584_v63, %v8584_v63  ;;  %v3599_v47 = vmul.f32 %v8586_v25, %v8586_v25  ;;  %v3572_v17 = vmul.f32 0.00390625, %v3562_v9  ;;  %v3615_v58 = vadd.f32 %v3597_v54, %v3596_v35  ;;  %v8619_v13 = vpop.f32.mrb[36].mxu0  ;;  %v3918_v38 = vpop.f32.mrb[85].mxu1 }
 0xc6d   : > { %v8592_v12 = vsub.f32 %v3536_v29, %v3571_v53  ;;  %v8594_v61 = vsub.f32 %v3537_v19, %v3571_v53  ;;  %3613 = vadd.xlane.f32.xlu1 %v3612_v7  ;;  %v3565_v51 = vpop.xlane.xlu0 %3564  ;;  %v3959_v35 = vpop.f32.mrb[37].mxu0  ;;  %v4006_v54 = vpack.c.bf16 %v3918_v38, %v3918_v38  ;;  %v5875_v7 = vld [vmem:[#allocation20 + $0xa0] ss:$8 sps:$4 sm:$0xff]  }
 0xc6e   : > { %v8596_v41 = vsub.f32 %v3538_v52, %v3572_v17  ;;  %v8599_v36 = vsub.f32 %v8535_v4, %v3572_v17  ;;  %v3573_v59 = vmul.f32 0.00390625, %v3565_v51  ;;  %3616 = vadd.xlane.f32.xlu0 %v3615_v58  ;;  %v3618_v16 = vadd.f32 %v3599_v47, %v3598_v56  ;;  %v3920_v53 = vpop.f32.mrb[86].mxu1  ;;  %v3961_v9 = vpop.f32.mrb[38].mxu0  ;;  %v5880_v17 = vld [vmem:[#allocation20 + $0xb4] ss:$8 sps:$4 sm:$0xff]  }
 0xc6f   : > { %v3600_v57 = vmul.f32 %v8592_v12, %v8592_v12  ;;  %v3601_v40 = vmul.f32 %v8594_v61, %v8594_v61  ;;  %v3921_v56 = vpop.f32.mrb[87].mxu1  ;;  %v3962_v47 = vpop.f32.mrb[39].mxu0  ;;  %4631 = vmatprep.mubr.bf16.mxu0 %v4006_v54  ;;  %v5878_v58 = vld [vmem:[#allocation20 + $0xb0] ss:$8 sps:$4 sm:$0xff]   ;;  %v5883_v51 = vld [vmem:[#allocation20 + $0xc4] ss:$8 sps:$4 sm:$0xff]  }
 0xc70   : > { %v3602_v21 = vmul.f32 %v8596_v41, %v8596_v41  ;;  %v3603_v46 = vmul.f32 %v8599_v36, %v8599_v36  ;;  %v8610_v31 = vsub.f32 %v8539_v3, %v3573_v59  ;;  %v8613_v29 = vsub.f32 %v8537_v28, %v3573_v59  ;;  %v5850_v3 = vld [vmem:[#allocation20 + $0x14] ss:$8 sps:$4 sm:$0xff]   ;;  %v5848_v28 = vld [vmem:[#allocation20 + $0x10] ss:$8 sps:$4 sm:$0xff]   ;;  %v5881_v59 = vld [vmem:[#allocation20 + $0xc0] ss:$8 sps:$4 sm:$0xff]  }
 0xc71   : > { %3619 = vadd.xlane.f32.xlu1 %v3618_v16  ;;  %v3621_v4 = vadd.f32 %v3601_v40, %v3600_v57  ;;  %4601 = vmatprep.subr.bf16.mxu0 %v5850_v3  ;;  %v5886_v16 = vld [vmem:[#allocation20 + $0xd4] ss:$8 sps:$4 sm:$0xff]   ;;  %v5884_v57 = vld [vmem:[#allocation20 + $0xd0] ss:$8 sps:$4 sm:$0xff]   ;;  %v5889_v40 = vld [vmem:[#allocation20 + $0xe4] ss:$8 sps:$4 sm:$0xff]  }
 0xc72   : > { %v3604_v39 = vmul.f32 %v8610_v31, %v8610_v31  ;;  %v3605_v19 = vmul.f32 %v8613_v29, %v8613_v29  ;;  %v3624_v52 = vadd.f32 %v3603_v46, %v3602_v21  ;;  %4602 = vmatpush1.bf16.msra.mxu0 %v5848_v28  ;;  %v5887_v21 = vld [vmem:[#allocation20 + $0xe0] ss:$8 sps:$4 sm:$0xff]   ;;  %v5892_v46 = vld [vmem:[#allocation20 + $0xf4] ss:$8 sps:$4 sm:$0xff]   ;;  %v5901_v3 = vld [vmem:[#allocation20 + $0x124] ss:$8 sps:$4 sm:$0xff]  }
 0xc73   : > { %3622 = vadd.xlane.f32.xlu0 %v3621_v4  ;;  %4603 = vmatprep.subr.bf16.mxu0 %v5853_v32  ;;  %v5890_v4 = vld [vmem:[#allocation20 + $0xf0] ss:$8 sps:$4 sm:$0xff]   ;;  %v5899_v28 = vld [vmem:[#allocation20 + $0x120] ss:$8 sps:$4 sm:$0xff]   ;;  %v5904_v32 = vld [vmem:[#allocation20 + $0x134] ss:$8 sps:$4 sm:$0xff]  }
 0xc74   : > { %v3627_v27 = vadd.f32 %v3605_v19, %v3604_v39  ;;  %v5895_v39 = vld [vmem:[#allocation20 + $0x104] ss:$8 sps:$4 sm:$0xff]   ;;  %v4005_v19 = vpack.c.bf16 %v3916_v48, %v3916_v48  ;;  %v3671_v53 = vld [vmem:[#allocation15 + $0x2] sm:$0x3]  ;;  %v5911_v56 = vld [vmem:[#allocation20 + $0x160] ss:$8 sps:$4 sm:$0xff]  }
 0xc75   : > { %3625 = vadd.xlane.f32.xlu1 %v3624_v52  ;;  %v5893_v52 = vld [vmem:[#allocation20 + $0x100] ss:$8 sps:$4 sm:$0xff]   ;;  %v5913_v48 = vld [vmem:[#allocation20 + $0x164] ss:$8 sps:$4 sm:$0xff]  }
 0xc76   : > { %4604 = vmatpush1.bf16.msra.mxu0 %v5851_v0  ;;  %v5902_v0 = vld [vmem:[#allocation20 + $0x130] ss:$8 sps:$4 sm:$0xff]  }
 0xc77   : > { %3628 = vadd.xlane.f32.xlu0 %v3627_v27  ;;  %4605 = vmatprep.subr.bf16.mxu0 %v5856_v2  ;;  %v4008_v27 = vpack.c.bf16 %v3959_v35, %v3959_v35 }
 0xc7a   : > { %4606 = vmatpush1.bf16.msra.mxu0 %v5854_v15  ;;  %v5907_v15 = vld [vmem:[#allocation20 + $0x144] ss:$8 sps:$4 sm:$0xff]  }
 0xc7b   : > { %4607 = vmatprep.subr.bf16.mxu0 %v5859_v30 }
 0xc7e   : > { %4608 = vmatpush1.bf16.msra.mxu0 %v5857_v44 }
 0xc7f   : > { %4609 = vmatprep.subr.bf16.mxu0 %v5862_v6 }
 0xc82   : > { %4610 = vmatpush1.bf16.msra.mxu0 %v5860_v43 }
 0xc83   : > { %4611 = vmatprep.subr.bf16.mxu0 %v5865_v18  ;;  %v5905_v18 = vld [vmem:[#allocation20 + $0x140] ss:$8 sps:$4 sm:$0xff]  }
 0xc86   : > { %4612 = vmatpush1.bf16.msra.mxu0 %v5863_v26  ;;  %v5910_v26 = vld [vmem:[#allocation20 + $0x154] ss:$8 sps:$4 sm:$0xff]  }
 0xc87   : > { %4613 = vmatprep.subr.bf16.mxu0 %v5868_v34 }
 0xc8a   : > { %4614 = vmatpush1.bf16.msra.mxu0 %v5866_v55 }
 0xc8b   : > { %4615 = vmatprep.subr.bf16.mxu0 %v5871_v33 }
 0xc8e   : > { %4616 = vmatpush1.bf16.msra.mxu0 %v5869_v45 }
 0xc8f   : > { %4617 = vmatprep.subr.bf16.mxu0 %v5874_v49 }
 0xc92   : > { %4618 = vmatpush1.bf16.msra.mxu0 %v5872_v22  ;;  %v5908_v22 = vld [vmem:[#allocation20 + $0x150] ss:$8 sps:$4 sm:$0xff]  }
 0xc93   : > { %4619 = vmatprep.subr.bf16.mxu0 %v5877_v42 }
 0xc96   : > { %4620 = vmatpush1.bf16.msra.mxu0 %v5875_v7  ;;  %v3700_v7 = vld [vmem:[#allocation17 + $0x2] sm:$0x3] }
 0xc97   : > { %4621 = vmatprep.subr.bf16.mxu0 %v5880_v17 }
 0xc9a   : > { %4622 = vmatpush1.bf16.msra.mxu0 %v5878_v58  ;;  %v5916_v58 = vld [vmem:[#allocation20 + $0x174] ss:$8 sps:$4 sm:$0xff]  }
 0xc9b   : > { %4623 = vmatprep.subr.bf16.mxu0 %v5883_v51 }
 0xc9e   : > { %4624 = vmatpush1.bf16.msra.mxu0 %v5881_v59  ;;  %v8622_v59 = vrot.slane %v3671_v53, %v7334_v1 }
 0xc9f   : > { %4625 = vmatprep.subr.bf16.mxu0 %v5886_v16 }
 0xca2   : > { %4626 = vmatpush1.bf16.msra.mxu0 %v5884_v57 }
 0xca3   : > { %4627 = vmatprep.subr.bf16.mxu0 %v5889_v40 }
 0xca6   : > { %4628 = vmatpush1.bf16.msra.mxu0 %v5887_v21 }
 0xca7   : > { %4629 = vmatprep.subr.bf16.mxu0 %v5892_v46  ;;  %v8625_v46 = vrot.slane %v3671_v53, %v7332_v62 }
 0xcaa   : > { %4630 = vmatpush1.bf16.msra.mxu0 %v5890_v4  ;;  %v8628_v4 = vrot.slane %v3700_v7, %v7334_v1 }
 0xcab   : > { %4640 = vmatprep.subr.bf16.mxu0 %v5895_v39  ;;  %v5914_v39 = vld [vmem:[#allocation20 + $0x170] ss:$8 sps:$4 sm:$0xff]  }
 0xcad   : > { %4632 = vmatmul.mubr.bf16.vlgmr.msra.gmra.mrb[40].mxu0 %v4005_v19 }
 0xcae   : > { %4641 = vmatpush1.bf16.msra.mxu0 %v5893_v52  ;;  %4672 = vmatprep.mubr.bf16.mxu0 %v4008_v27 }
 0xcaf   : > { %4642 = vmatprep.subr.bf16.mxu0 %v5898_v60  ;;  %v3745_v60 = vld [vmem:[#allocation18 + $0x2] sm:$0x3] }
 0xcb2   : > { %4643 = vmatpush1.bf16.msra.mxu0 %v5896_v24  ;;  %v5919_v24 = vld [vmem:[#allocation20 + $0x184] ss:$8 sps:$4 sm:$0xff]  }
 0xcb3   : > { %4644 = vmatprep.subr.bf16.mxu0 %v5901_v3 }
 0xcb6   : > { %4645 = vmatpush1.bf16.msra.mxu0 %v5899_v28 }
 0xcb7   : > { %4646 = vmatprep.subr.bf16.mxu0 %v5904_v32  ;;  %v8633_v32 = vrot.slane %v3700_v7, %v7332_v62 }
 0xcba   : > { %4647 = vmatpush1.bf16.msra.mxu0 %v5902_v0 }
 0xcbb   : > { %4648 = vmatprep.subr.bf16.mxu0 %v5907_v15 }
 0xcbe   : > { %4649 = vmatpush1.bf16.msra.mxu0 %v5905_v18 }
 0xcbf   : > { %4650 = vmatprep.subr.bf16.mxu0 %v5910_v26  ;;  %v8645_v26 = vrot.slane %v3745_v60, %v7334_v1 }
 0xcc2   : > { %4651 = vmatpush1.bf16.msra.mxu0 %v5908_v22 }
 0xcc3   : > { %4652 = vmatprep.subr.bf16.mxu0 %v5913_v48 }
 0xcc6   : > { %4653 = vmatpush1.bf16.msra.mxu0 %v5911_v56 }
 0xcc7   : > { %4654 = vmatprep.subr.bf16.mxu0 %v5916_v58 }
 0xcca   : > { %4655 = vmatpush1.bf16.msra.mxu0 %v5914_v39 }
 0xccb   : > { %4656 = vmatprep.subr.bf16.mxu0 %v5919_v24 }
 0xcf5   : > { %v3608_v2 = vpop.xlane.xlu1 %3607 }
 0xcf6   : > { %v3630_v30 = vmul.f32 0.00390625, %v3608_v2 }
 0xcf7   : > { %v3611_v44 = vpop.xlane.xlu0 %3610 }
 0xcf8   : > { %v3638_v6 = vadd.f32 1e-05, %v3630_v30  ;;  %v3631_v43 = vmul.f32 0.00390625, %v3611_v44  ;;  %v8640_v30 = vrot.slane %v3745_v60, %v7332_v62  ;;  %v5917_v44 = vld [vmem:[#allocation20 + $0x180] ss:$8 sps:$4 sm:$0xff]  }
 0xcf9   : > { %4657 = vmatpush1.bf16.msra.mxu0 %v5917_v44  ;;  %v5923_v60 = vld [vmem:[#allocation20 + $0x1a0] ss:$8 sps:$4 sm:$0xff]  }
 0xcfa   : > { %6133 = vrsqrt.f32 %v3638_v6  ;;  %v3639_v34 = vadd.f32 1e-05, %v3631_v43  ;;  %v3614_v55 = vpop.xlane.xlu1 %3613 }
 0xcfb   : > { %v3632_v33 = vmul.f32 0.00390625, %v3614_v55  ;;  %v3617_v45 = vpop.xlane.xlu0 %3616 }
 0xcfc   : > { %6135 = vrsqrt.f32 %v3639_v34  ;;  %v3633_v49 = vmul.f32 0.00390625, %v3617_v45 }
 0xcfd   : > { %v3640_v42 = vadd.f32 1e-05, %v3632_v33 }
 0xcfe   : > { %v3641_v38 = vadd.f32 1e-05, %v3633_v49  ;;  %v3620_v35 = vpop.xlane.xlu1 %3619 }
 0xcff   : > { %6137 = vrsqrt.f32 %v3640_v42  ;;  %v3634_v54 = vmul.f32 0.00390625, %v3620_v35 }
 0xd00   : > { %6139 = vrsqrt.f32 %v3641_v38  ;;  %v3623_v9 = vpop.xlane.xlu0 %3622 }
 0xd01   : > { %v3642_v47 = vadd.f32 1e-05, %v3634_v54  ;;  %v3635_v17 = vmul.f32 0.00390625, %v3623_v9 }
 0xd02   : > { %v3626_v51 = vpop.xlane.xlu1 %3625 }
 0xd03   : > { %6141 = vrsqrt.f32 %v3642_v47  ;;  %v3643_v16 = vadd.f32 1e-05, %v3635_v17  ;;  %v3636_v57 = vmul.f32 0.00390625, %v3626_v51 }
 0xd04   : > { %v6134_v40 = vpop.eup %6133  ;;  %v3629_v21 = vpop.xlane.xlu0 %3628 }
 0xd05   : > { %v3654_v19 = vmul.f32 %v6134_v40, %v8552_v37  ;;  %v3655_v52 = vmul.f32 %v6134_v40, %v8554_v20  ;;  %6143 = vrsqrt.f32 %v3643_v16  ;;  %v3644_v27 = vadd.f32 1e-05, %v3636_v57 }
 0xd06   : > { %v6136_v3 = vpop.eup %6135  ;;  %v3637_v28 = vmul.f32 0.00390625, %v3629_v21 }
 0xd07   : > { %v3683_v0 = vmul.f32 %v8622_v59, %v3654_v19  ;;  %v3656_v2 = vmul.f32 %v6136_v3, %v8560_v5  ;;  %v3657_v15 = vmul.f32 %v6136_v3, %v8562_v50  ;;  %6145 = vrsqrt.f32 %v3644_v27  ;;  %v5922_v50 = vld [vmem:[#allocation20 + $0x194] ss:$8 sps:$4 sm:$0xff]  }
 0xd08   : > { %v3645_v37 = vadd.f32 1e-05, %v3637_v28  ;;  %v3684_v20 = vmul.f32 %v8625_v46, %v3655_v52  ;;  %4658 = vmatprep.subr.bf16.mxu0 %v5922_v50  ;;  %v5928_v28 = vld [vmem:[#allocation20 + $0x1b4] ss:$8 sps:$4 sm:$0xff]  }
 0xd09   : > { %v6138_v6 = vpop.eup %6137  ;;  %v3685_v43 = vmul.f32 %v8622_v59, %v3656_v2  ;;  %v3686_v18 = vmul.f32 %v8625_v46, %v3657_v15  ;;  %v3712_v5 = vadd.f32 %v8628_v4, %v3683_v0 }
 0xd0a   : > { %v6140_v34 = vpop.eup %6139  ;;  %v3658_v55 = vmul.f32 %v6138_v6, %v8568_v14  ;;  %v3659_v33 = vmul.f32 %v6138_v6, %v8570_v10  ;;  %6147 = vrsqrt.f32 %v3645_v37  ;;  %v3713_v45 = vadd.f32 %v8633_v32, %v3684_v20  ;;  %v5920_v14 = vld [vmem:[#allocation20 + $0x190] ss:$8 sps:$4 sm:$0xff]  }
 0xd0b   : > { %v3660_v49 = vmul.f32 %v6140_v34, %v8572_v11  ;;  %v3661_v22 = vmul.f32 %v6140_v34, %v8574_v23  ;;  %v3715_v42 = vadd.f32 %v8633_v32, %v3686_v18  ;;  %v3714_v48 = vadd.f32 %v8628_v4, %v3685_v43  ;;  %v5925_v23 = vld [vmem:[#allocation20 + $0x1a4] ss:$8 sps:$4 sm:$0xff]   ;;  %4659 = vmatpush1.bf16.msra.mxu0 %v5920_v14  ;;  %v5929_v14 = vld [vmem:[#allocation20 + $0x1c0] ss:$8 sps:$4 sm:$0xff]  }
 0xd0c   : > { %v3687_v38 = vmul.f32 %v8622_v59, %v3658_v55  ;;  %vm3729_vm4 = vcmp.gt.f32.partialorder %v3713_v45, 0.0  ;;  %v3758_v35 = vmul.f32 %v8640_v30, %v3713_v45  ;;  %vm3728_vm5 = vcmp.gt.f32.partialorder %v3712_v5, 0.0  ;;  %4660 = vmatprep.subr.bf16.mxu0 %v5925_v23  ;;  %v5931_v55 = vld [vmem:[#allocation20 + $0x1c4] ss:$8 sps:$4 sm:$0xff]  }
 0xd0d   : > { %v6142_v10 = vpop.eup %6141  ;;  %v3689_v54 = vmul.f32 %v8622_v59, %v3660_v49  ;;  %vm3731_vm6 = vcmp.gt.f32.partialorder %v3715_v42, 0.0  ;;  %v3760_v11 = vmul.f32 %v8640_v30, %v3715_v42  ;;  %vm3730_vm7 = vcmp.gt.f32.partialorder %v3714_v48, 0.0 }
 0xd0e   : > { %v3662_v53 = vmul.f32 %v6142_v10, %v8584_v63  ;;  %v3663_v9 = vmul.f32 %v6142_v10, %v8586_v25  ;;  %v3774_v7 = vsel %vm3729_vm4, %v3713_v45, %v3758_v35  ;;  %v3757_v56 = vmul.f32 %v8645_v26, %v3712_v5 }
 0xd0f   : > { %v6144_v47 = vpop.eup %6143  ;;  %v3776_v17 = vsel %vm3731_vm6, %v3715_v42, %v3760_v11  ;;  %v3759_v58 = vmul.f32 %v8645_v26, %v3714_v48  ;;  %v3688_v51 = vmul.f32 %v8625_v46, %v3659_v33  ;;  %v3690_v16 = vmul.f32 %v8625_v46, %v3661_v22  ;;  %4661 = vmatpush1.bf16.msra.mxu0 %v5923_v60  ;;  %v5934_v11 = vld [vmem:[#allocation20 + $0x1d4] ss:$8 sps:$4 sm:$0xff]  }
 0xd10   : > { %v3691_v57 = vmul.f32 %v8622_v59, %v3662_v53  ;;  %v3664_v40 = vmul.f32 %v6144_v47, %v8592_v12  ;;  %v3665_v21 = vmul.f32 %v6144_v47, %v8594_v61  ;;  %v3860_v63 = vpack.c.bf16 %v3776_v17, %v3774_v7  ;;  %4662 = vmatprep.subr.bf16.mxu0 %v5928_v28  ;;  %v5938_v28 = vld [vmem:[#allocation20 + $0x1f0] ss:$8 sps:$4 sm:$0xff]  }
 0xd11   : > { %v6146_v25 = vpop.eup %6145  ;;  %v3773_v39 = vsel %vm3728_vm5, %v3712_v5, %v3757_v56  ;;  %v3775_v19 = vsel %vm3730_vm7, %v3714_v48, %v3759_v58  ;;  %v3717_v52 = vadd.f32 %v8633_v32, %v3688_v51  ;;  %v3719_v27 = vadd.f32 %v8633_v32, %v3690_v16  ;;  %v5926_v5 = vld [vmem:[#allocation20 + $0x1b0] ss:$8 sps:$4 sm:$0xff]  }
 0xd12   : > { %v3693_v24 = vmul.f32 %v8622_v59, %v3664_v40  ;;  %v3666_v3 = vmul.f32 %v6146_v25, %v8596_v41  ;;  %v3667_v12 = vmul.f32 %v6146_v25, %v8599_v36  ;;  %3964 = vmatprep.subr.bf16.mxu1 %v3860_v63  ;;  %v3859_v61 = vpack.c.bf16 %v3775_v19, %v3773_v39  ;;  %v5937_v25 = vld [vmem:[#allocation20 + $0x1e4] ss:$8 sps:$4 sm:$0xff]  }
 0xd13   : > { %vm3733_vm8 = vcmp.gt.f32.partialorder %v3717_v52, 0.0  ;;  %vm3735_vm9 = vcmp.gt.f32.partialorder %v3719_v27, 0.0  ;;  %v3762_v0 = vmul.f32 %v8640_v30, %v3717_v52  ;;  %v3764_v2 = vmul.f32 %v8640_v30, %v3719_v27  ;;  %4663 = vmatpush1.bf16.msra.mxu0 %v5926_v5  ;;  %v5964_v5 = vld [vmem:[#allocation20 + $0x274] ss:$8 sps:$4 sm:$0xff]  }
 0xd14   : > { %v6148_v15 = vpop.eup %6147  ;;  %v3695_v37 = vmul.f32 %v8622_v59, %v3666_v3  ;;  %3965 = vmatpush1.bf16.msra.mxu1 %v3859_v61  ;;  %v3716_v20 = vadd.f32 %v8628_v4, %v3687_v38  ;;  %v3718_v44 = vadd.f32 %v8628_v4, %v3689_v54  ;;  %v3692_v41 = vmul.f32 %v8625_v46, %v3663_v9  ;;  %v5940_v3 = vld [vmem:[#allocation20 + $0x1f4] ss:$8 sps:$4 sm:$0xff]  }
 0xd15   : > { %v3668_v36 = vmul.f32 %v6148_v15, %v8610_v31  ;;  %v3669_v6 = vmul.f32 %v6148_v15, %v8613_v29  ;;  %v3778_v43 = vsel %vm3733_vm8, %v3717_v52, %v3762_v0  ;;  %v3780_v18 = vsel %vm3735_vm9, %v3719_v27, %v3764_v2  ;;  %4664 = vmatprep.subr.bf16.mxu0 %v5931_v55  ;;  %v5935_v52 = vld [vmem:[#allocation20 + $0x1e0] ss:$8 sps:$4 sm:$0xff]   ;;  %v5943_v0 = vld [vmem:[#allocation20 + $0x204] ss:$8 sps:$4 sm:$0xff]   ;;  %v5946_v2 = vld [vmem:[#allocation20 + $0x214] ss:$8 sps:$4 sm:$0xff]  }
 0xd16   : > { %v3866_v50 = vpack.c.bf16 %v3780_v18, %v3778_v43  ;;  %vm3732_vm10 = vcmp.gt.f32.partialorder %v3716_v20, 0.0  ;;  %vm3734_vm11 = vcmp.gt.f32.partialorder %v3718_v44, 0.0  ;;  %v3761_v34 = vmul.f32 %v8645_v26, %v3716_v20  ;;  %v5944_v15 = vld [vmem:[#allocation20 + $0x210] ss:$8 sps:$4 sm:$0xff]   ;;  %v5961_v43 = vld [vmem:[#allocation20 + $0x264] ss:$8 sps:$4 sm:$0xff]  }
 0xd17   : > { %v3697_v33 = vmul.f32 %v8622_v59, %v3668_v36  ;;  %v3763_v45 = vmul.f32 %v8645_v26, %v3718_v44  ;;  %v3694_v49 = vmul.f32 %v8625_v46, %v3665_v21  ;;  %v3721_v31 = vadd.f32 %v8633_v32, %v3692_v41  ;;  %4665 = vmatpush1.bf16.msra.mxu0 %v5929_v14  ;;  %v5950_v41 = vld [vmem:[#allocation20 + $0x230] ss:$8 sps:$4 sm:$0xff]   ;;  %v5953_v36 = vld [vmem:[#allocation20 + $0x240] ss:$8 sps:$4 sm:$0xff]  }
 0xd18   : > { %3966 = vmatprep.subr.bf16.mxu1 %v3866_v50  ;;  %v3777_v29 = vsel %vm3732_vm10, %v3716_v20, %v3761_v34  ;;  %v3720_v22 = vadd.f32 %v8628_v4, %v3691_v57  ;;  %v3722_v42 = vadd.f32 %v8628_v4, %v3693_v24  ;;  %v3696_v48 = vmul.f32 %v8625_v46, %v3667_v12  ;;  %v5932_v57 = vld [vmem:[#allocation20 + $0x1d0] ss:$8 sps:$4 sm:$0xff]   ;;  %v5947_v20 = vld [vmem:[#allocation20 + $0x220] ss:$8 sps:$4 sm:$0xff]   ;;  %v5967_v34 = vld [vmem:[#allocation20 + $0x284] ss:$8 sps:$4 sm:$0xff]  }
 0xd19   : > { %v3779_v38 = vsel %vm3734_vm11, %v3718_v44, %v3763_v45  ;;  %v3723_v35 = vadd.f32 %v8633_v32, %v3694_v49  ;;  %vm3737_vm12 = vcmp.gt.f32.partialorder %v3721_v31, 0.0  ;;  %v3766_v59 = vmul.f32 %v8640_v30, %v3721_v31  ;;  %4666 = vmatprep.subr.bf16.mxu0 %v5934_v11  ;;  %v5952_v44 = vld [vmem:[#allocation20 + $0x234] ss:$8 sps:$4 sm:$0xff]   ;;  %v5959_v18 = vld [vmem:[#allocation20 + $0x260] ss:$8 sps:$4 sm:$0xff]  }
 0xd1a   : > { %v3865_v10 = vpack.c.bf16 %v3779_v38, %v3777_v29  ;;  %vm3736_vm13 = vcmp.gt.f32.partialorder %v3720_v22, 0.0  ;;  %vm3738_vm14 = vcmp.gt.f32.partialorder %v3722_v42, 0.0  ;;  %v3765_v54 = vmul.f32 %v8645_v26, %v3720_v22  ;;  %v5962_v50 = vld [vmem:[#allocation20 + $0x270] ss:$8 sps:$4 sm:$0xff]   ;;  %v5965_v55 = vld [vmem:[#allocation20 + $0x280] ss:$8 sps:$4 sm:$0xff]  }
 0xd1b   : > { %vm3739_vm15 = vcmp.gt.f32.partialorder %v3723_v35, 0.0  ;;  %v3768_v23 = vmul.f32 %v8640_v30, %v3723_v35  ;;  %v3767_v53 = vmul.f32 %v8645_v26, %v3722_v42  ;;  %v3782_v9 = vsel %vm3737_vm12, %v3721_v31, %v3766_v59  ;;  %4667 = vmatpush1.bf16.msra.mxu0 %v5932_v57  ;;  %v5968_v45 = vld [vmem:[#allocation20 + $0x290] ss:$8 sps:$4 sm:$0xff]   ;;  %v5973_v49 = vld [vmem:[#allocation20 + $0x2a4] ss:$8 sps:$4 sm:$0xff]  }
 0xd1c   : > { %3967 = vmatpush1.bf16.msra.mxu1 %v3865_v10  ;;  %v3698_v7 = vmul.f32 %v8625_v46, %v3669_v6  ;;  %v3725_v56 = vadd.f32 %v8633_v32, %v3696_v48  ;;  %v3724_v47 = vadd.f32 %v8628_v4, %v3695_v37  ;;  %v3781_v58 = vsel %vm3736_vm13, %v3720_v22, %v3765_v54  ;;  %v5949_v37 = vld [vmem:[#allocation20 + $0x224] ss:$8 sps:$4 sm:$0xff]   ;;  %v5956_v6 = vld [vmem:[#allocation20 + $0x250] ss:$8 sps:$4 sm:$0xff]   ;;  %v5971_v31 = vld [vmem:[#allocation20 + $0x2a0] ss:$8 sps:$4 sm:$0xff]  }
 0xd1d   : > { %v3784_v17 = vsel %vm3739_vm15, %v3723_v35, %v3768_v23  ;;  %v3783_v51 = vsel %vm3738_vm14, %v3722_v42, %v3767_v53  ;;  %v3726_v16 = vadd.f32 %v8628_v4, %v3697_v33  ;;  %4668 = vmatprep.subr.bf16.mxu0 %v5937_v25  ;;  %v5970_v33 = vld [vmem:[#allocation20 + $0x294] ss:$8 sps:$4 sm:$0xff]   ;;  %v5974_v22 = vld [vmem:[#allocation20 + $0x2b0] ss:$8 sps:$4 sm:$0xff]   ;;  %v5979_v42 = vld [vmem:[#allocation20 + $0x2c4] ss:$8 sps:$4 sm:$0xff]  }
 0xd1e   : > { %v3872_v40 = vpack.c.bf16 %v3784_v17, %v3782_v9  ;;  %v3871_v21 = vpack.c.bf16 %v3783_v51, %v3781_v58  ;;  %v3727_v63 = vadd.f32 %v8633_v32, %v3698_v7  ;;  %vm3741_vm0 = vcmp.gt.f32.partialorder %v3725_v56, 0.0  ;;  %v5976_v29 = vld [vmem:[#allocation20 + $0x2b4] ss:$8 sps:$4 sm:$0xff]   ;;  %v5977_v48 = vld [vmem:[#allocation20 + $0x2c0] ss:$8 sps:$4 sm:$0xff]  }
 0xd1f   : > { %v3770_v46 = vmul.f32 %v8640_v30, %v3725_v56  ;;  %vm3740_vm2 = vcmp.gt.f32.partialorder %v3724_v47, 0.0  ;;  %vm3742_vm3 = vcmp.gt.f32.partialorder %v3726_v16, 0.0  ;;  %v3769_v39 = vmul.f32 %v8645_v26, %v3724_v47  ;;  %4669 = vmatpush1.bf16.msra.mxu0 %v5935_v52  ;;  %v5982_v38 = vld [vmem:[#allocation20 + $0x2d4] ss:$8 sps:$4 sm:$0xff]   ;;  %v5980_v35 = vld [vmem:[#allocation20 + $0x2d0] ss:$8 sps:$4 sm:$0xff]  }
 0xd20   : > { %3968 = vmatprep.subr.bf16.mxu1 %v3872_v40  ;;  %vm3743_vm4 = vcmp.gt.f32.partialorder %v3727_v63, 0.0  ;;  %v3772_v19 = vmul.f32 %v8640_v30, %v3727_v63  ;;  %v3771_v4 = vmul.f32 %v8645_v26, %v3726_v16  ;;  %4670 = vmatprep.subr.bf16.mxu0 %v5940_v3  ;;  %v4007_v30 = vpack.c.bf16 %v8619_v13, %v8619_v13  ;;  %v5941_v26 = vld [vmem:[#allocation20 + $0x200] ss:$8 sps:$4 sm:$0xff]   ;;  %v5955_v13 = vld [vmem:[#allocation20 + $0x244] ss:$8 sps:$4 sm:$0xff]  }
 0xd21   : > { %3969 = vmatpush1.bf16.msra.mxu1 %v3871_v21  ;;  %v3786_v27 = vsel %vm3741_vm0, %v3725_v56, %v3770_v46  ;;  %v3785_v60 = vsel %vm3740_vm2, %v3724_v47, %v3769_v39  ;;  %v5985_v59 = vld [vmem:[#allocation20 + $0x2e4] ss:$8 sps:$4 sm:$0xff]   ;;  %v5983_v14 = vld [vmem:[#allocation20 + $0x2e0] ss:$8 sps:$4 sm:$0xff]   ;;  %v5986_v10 = vld [vmem:[#allocation20 + $0x2f0] ss:$8 sps:$4 sm:$0xff]  }
 0xd22   : > { %v3788_v32 = vsel %vm3743_vm4, %v3727_v63, %v3772_v19  ;;  %v3787_v24 = vsel %vm3742_vm3, %v3726_v16, %v3771_v4  ;;  %v5988_v54 = vld [vmem:[#allocation20 + $0x2f4] ss:$8 sps:$4 sm:$0xff]   ;;  %v4724_v47 = vld [vmem:[%s7183_s8] sm:$0x3]  ;;  %v5321_v17 = vld [vmem:[#allocation23] ss:$0 sm:$0xff] }
 0xd23   : > { %v3878_v12 = vpack.c.bf16 %v3788_v32, %v3786_v27  ;;  %v3877_v61 = vpack.c.bf16 %v3787_v24, %v3785_v60  ;;  %4671 = vmatpush1.bf16.msra.mxu0 %v5938_v28  ;;  %v4732_v58 = vmul.f32 %v5321_v17, %v4724_v47  ;;  %v4107_v16 = vld [vmem:[#allocation21] sm:$0x3]  ;;  %v4737_v40 = vld [vmem:[#allocation24] sm:$0x3]  ;;  %vm4751_vm5 = vcmask 1041408  }
 0xd24   : > { %4681 = vmatprep.subr.bf16.mxu0 %v5943_v0  ;;  %v4112_v57 = vrot.slane %v4107_v16, %v7334_v1  ;;  %v4116_v21 = vrot.slane %v4107_v16, %v7332_v62  ;;  %v4742_v46 = vrot.slane %v4737_v40, %v7334_v1  ;;  %v4746_v4 = vrot.slane %v4737_v40, %v7332_v62 }
 0xd25   : > { %3970 = vmatprep.subr.bf16.mxu1 %v3878_v12  ;;  %vm4758_vm6 = vcmask 1024  }
 0xd26   : > { %3971 = vmatpush1.bf16.msra.mxu1 %v3877_v61  ;;  %4673 = vmatmul.mubr.bf16.vlgmr.msra.gmra.mrb[40].mxu0 %v4007_v30 }
 0xd27   : > { %4682 = vmatpush1.bf16.msra.mxu0 %v5941_v26 }
 0xd28   : > { %4683 = vmatprep.subr.bf16.mxu0 %v5946_v2 }
 0xd29   : > { %5224 = vmatmul.mubr.msk.bf16.vlgmr.msra.gmra.mrb[88].mxu1 %vm1688_vm1, %v8545_v8  ;;  %v5958_v8 = vld [vmem:[#allocation20 + $0x254] ss:$8 sps:$4 sm:$0xff]   ;;  %vm4733_vm1 = vcmask 25600  }
 0xd2a   : > { %v4734_v51 = vsel %vm4733_vm1, %v4732_v58, 0.0 }
 0xd2b   : > { %4684 = vmatpush1.bf16.msra.mxu0 %v5944_v15  ;;  %4735 = vadd.xlane.f32.xlu1 %v4734_v51 }
 0xd2c   : > { %4685 = vmatprep.subr.bf16.mxu0 %v5949_v37 }
 0xd2f   : > { %4686 = vmatpush1.bf16.msra.mxu0 %v5947_v20 }
 0xd30   : > { %4687 = vmatprep.subr.bf16.mxu0 %v5952_v44 }
 0xd33   : > { %4688 = vmatpush1.bf16.msra.mxu0 %v5950_v41 }
 0xd34   : > { %4689 = vmatprep.subr.bf16.mxu0 %v5955_v13 }
 0xd37   : > { %4690 = vmatpush1.bf16.msra.mxu0 %v5953_v36 }
 0xd38   : > { %4691 = vmatprep.subr.bf16.mxu0 %v5958_v8 }
 0xd3b   : > { %4692 = vmatpush1.bf16.msra.mxu0 %v5956_v6 }
 0xd3c   : > { %4693 = vmatprep.subr.bf16.mxu0 %v5961_v43 }
 0xd3f   : > { %4694 = vmatpush1.bf16.msra.mxu0 %v5959_v18 }
 0xd40   : > { %4695 = vmatprep.subr.bf16.mxu0 %v5964_v5 }
 0xd43   : > { %4696 = vmatpush1.bf16.msra.mxu0 %v5962_v50 }
 0xd44   : > { %4697 = vmatprep.subr.bf16.mxu0 %v5967_v34 }
 0xd47   : > { %4698 = vmatpush1.bf16.msra.mxu0 %v5965_v55 }
 0xd48   : > { %4699 = vmatprep.subr.bf16.mxu0 %v5970_v33 }
 0xd4b   : > { %4700 = vmatpush1.bf16.msra.mxu0 %v5968_v45 }
 0xd4c   : > { %4701 = vmatprep.subr.bf16.mxu0 %v5973_v49 }
 0xd4f   : > { %4702 = vmatpush1.bf16.msra.mxu0 %v5971_v31 }
 0xd50   : > { %4703 = vmatprep.subr.bf16.mxu0 %v5976_v29 }
 0xd53   : > { %4704 = vmatpush1.bf16.msra.mxu0 %v5974_v22 }
 0xd54   : > { %4705 = vmatprep.subr.bf16.mxu0 %v5979_v42 }
 0xd57   : > { %4706 = vmatpush1.bf16.msra.mxu0 %v5977_v48 }
 0xd58   : > { %4707 = vmatprep.subr.bf16.mxu0 %v5982_v38 }
 0xd5b   : > { %4708 = vmatpush1.bf16.msra.mxu0 %v5980_v35 }
 0xd5c   : > { %4709 = vmatprep.subr.bf16.mxu0 %v5985_v59 }
 0xd5f   : > { %4710 = vmatpush1.bf16.msra.mxu0 %v5983_v14 }
 0xd60   : > { %4711 = vmatprep.subr.bf16.mxu0 %v5988_v54 }
 0xd63   : > { %4712 = vmatpush1.bf16.msra.mxu0 %v5986_v10 }
 0xdb8   : > { %v4736_v0 = vpop.xlane.xlu1 %4735 }
 0xdfc   : > { %v3998_v11 = vpop.f32.mrb[88].mxu1 }
 0xdfd   : > { %v4000_v23 = vpop.f32.mrb[89].mxu1  ;;  %v4009_v7 = vpack.c.bf16 %v3998_v11, %v3998_v11 }
 0xdfe   : > { %v4010_v53 = vpack.c.bf16 %v4000_v23, %v4000_v23  ;;  %v4002_v9 = vpop.f32.mrb[90].mxu1 }
 0xdff   : > { %v4003_v56 = vpop.f32.mrb[91].mxu1 }
 0xe00   : > { %4713 = vmatprep.mubr.bf16.mxu0 %v4010_v53 }
 0xe01   : > { %4714 = vmatmul.mubr.bf16.vlgmr.msra.gmra.mrb[40].mxu0 %v4009_v7 }
 0xed4   : > { %v4715_v63 = vpop.f32.mrb[40].mxu0 }
 0xed5   : > { %v5502_v25 = vadd.f32 %v4715_v63, %v4112_v57  ;;  %v4717_v39 = vpop.f32.mrb[41].mxu0 }
 0xed6   : > { %v5503_v19 = vadd.f32 %v4717_v39, %v4116_v21  ;;  %v4719_v52 = vpop.f32.mrb[42].mxu0 }
 0xed7   : > { %v4722_v27 = vmax.f32 %v5502_v25, 0.0  ;;  %v4720_v32 = vpop.f32.mrb[43].mxu0 }
 0xed8   : > { %v4723_v60 = vmax.f32 %v5503_v19, 0.0 }
 0xed9   : > { %v4749_v24 = vmul.f32 %v4742_v46, %v4722_v27 }
 0xeda   : > { %v4750_v3 = vmul.f32 %v4746_v4, %v4723_v60 }
 0xedb   : > { %v4752_v12 = vsel %vm4751_vm5, %v4749_v24, 0.0 }
 0xedc   : > { %v4753_v61 = vsel %vm4751_vm5, %v4750_v3, 0.0 }
 0xedd   : > { %v4754_v28 = vadd.f32 %v4753_v61, %v4752_v12 }
 0xedf   : > { %4755 = vadd.xlane.f32.xlu0 %v4754_v28 }
 0xf6c   : > { %v4756_v1 = vpop.xlane.xlu0 %4755 }
 0xf6d   : > { %v4757_v62 = vadd.f32 %v4756_v1, %v4736_v0 }
 0xf6f   : > { %4759 = vst.msk [vmem:[%s809_s20] sm:$0x3] %vm4758_vm6, %v4757_v62 }
 0xf70 PF: > { %p36_p5 = scmp.ge.s32.totalorder %s6894_s4, 4   ;;  %s8892_s24 = smov %s6609_s25 }
 0xf71   : > { %s8893_s25 = smov %s6613_s26  ;;  %s8894_s26 = smov %s6905_s30 }
 0xf72   : > { %s8895_s27 = smov %s6894_s4  ;;  %38 = sbr.rel (!%p36_p5) target bundleno = 29 (0x1d), region = 206 }
 0xf79   :  { %4779 = vsyncpa [#allocation5], 1 }
 0xf7a   :  { %4781 = vsyncpa [#allocation5 + $0x1], 1 }
 0xf7b   :  { %4782 = vsyncpa [#allocation7], 1 }
 0xf7c   :  { %4784 = vsyncpa [#allocation7 + $0x1], 1 }
 0xf7d   :  { %4785 = vsyncpa [#allocation10], 1 }
 0xf7e   :  { %4786 = vsyncpa [#allocation13], 1 }
 0xf7f   :  { %4787 = vsyncpa [#allocation16], 1 }
 0xf80   :  { %4788 = vsyncpa [#allocation19], 1 }
 0xf81   :  { %4789 = vsyncpa [#allocation22], 1 }
 0xf82   :  { %4790 = vsyncpa [#allocation25], 1 }

</bundles_post_ra>
